<compile_context>
chip_gen: v5e
topology: v5e:2x2
jax: 0.10.0
libtpu: 0.0.40
codegen_flags: <defaults>
</compile_context>

<pallas_src>
import functools

import jax
import jax.numpy as jnp
import numpy as np
from jax.experimental import pallas as pl
from jax.experimental.pallas import tpu as pltpu


# ------------------------------ fused kernel --------------------------------

def _make_fused_kernel(H, W, Cmid, off, padlen):
    """Fused bottleneck kernel for a static (H, W, Cmid) configuration.

    Flat padded layout: padded pixel (r, w), r in [0, H+2), w in [0, W), lives
    at flat row `off + r*W + w` of the scratch.  Interior output pixel
    m = h*W + w therefore lives at `off + W + m`.  Tap (kh, kw) for output m
    reads flat row `m + off + kh*W + (kw-1)`; left/right column wrap-around is
    killed with per-column masks.
    """
    HW = H * W
    int_off = off + W  # sublane-aligned by construction (off = (-W) % 8 or 8)

    def kernel(x_ref, w1_ref, w2_ref, w3_ref,
               s1_ref, b1_ref, s2_ref, b2_ref, s3_ref, b3_ref,
               o_ref, y1f_ref):
        x = x_ref[0]                                             # (HW, Cin) f32

        # ---- conv1 (1x1) + bn1 + relu --------------------------------------
        y1 = jnp.dot(x, w1_ref[...], preferred_element_type=jnp.float32)
        y1 = jnp.maximum(y1 * s1_ref[...] + b1_ref[...], 0.0)    # (HW, Cmid)

        # ---- place conv1 output into the flat zero-padded VMEM scratch -----
        y1f_ref[0:int_off, :] = jnp.zeros((int_off, Cmid), jnp.float32)
        y1f_ref[int_off + HW:padlen, :] = jnp.zeros(
            (padlen - int_off - HW, Cmid), jnp.float32)
        y1f_ref[int_off:int_off + HW, :] = y1

        # ---- conv2 (3x3, pad=1, stride=1) + bn2 + relu ----------------------
        col = jax.lax.broadcasted_iota(jnp.int32, (HW, 1), 0) % W
        not_left = (col != 0).astype(jnp.float32)        # kill w-1 wrap at w==0
        not_right = (col != W - 1).astype(jnp.float32)   # kill w+1 wrap at w==W-1

        acc = jnp.zeros((HW, Cmid), jnp.float32)
        for kh in range(3):
            for kw in range(3):
                start = off + kh * W + (kw - 1)
                slab = y1f_ref[start:start + HW, :]              # (HW, Cmid)
                if kw == 0:
                    slab = slab * not_left
                elif kw == 2:
                    slab = slab * not_right
                acc = acc + jnp.dot(slab, w2_ref[kh * 3 + kw],
                                    preferred_element_type=jnp.float32)
        y2 = jnp.maximum(acc * s2_ref[...] + b2_ref[...], 0.0)   # (HW, Cmid)

        # ---- conv3 (1x1) + bn3 + residual add + relu ------------------------
        y3 = jnp.dot(y2, w3_ref[...], preferred_element_type=jnp.float32)
        y3 = y3 * s3_ref[...] + b3_ref[...] + x                  # identity == x
        o_ref[0] = jnp.maximum(y3, 0.0).astype(o_ref.dtype)

    return kernel


# ------------------------------ host wrapper ---------------------------------

def fold_bn(gamma, beta, mean, var, eps=1e-5):
    scale = gamma / jnp.sqrt(var + eps)
    return scale, beta - mean * scale


@functools.partial(jax.jit, static_argnames=("stride",))
def bottleneck_block(x_nchw, params, stride=1):
    """Forward pass of the PyTorch `block` module (eval-mode BN)."""
    w1, bn1, w2, bn2, w3, bn3 = params
    s1, b1 = fold_bn(*bn1)
    s2, b2 = fold_bn(*bn2)
    s3, b3 = fold_bn(*bn3)

    N, Cin, H, W = x_nchw.shape
    Cmid = w1.shape[0]
    Cout = w3.shape[0]
    HW = H * W
    # TODO(synk): generalize to stride>1 / identity_downsample.
    assert stride == 1 and Cin == Cout, (
        "fused bottleneck kernel requires stride==1 and Cin == Cout")

    # Layout glue only: NCHW -> channels-last flattened spatial slabs.
    x = jnp.transpose(x_nchw, (0, 2, 3, 1)).reshape(N, HW, Cin)

    w1m = jnp.transpose(w1[:, :, 0, 0], (1, 0))                   # (Cin, Cmid)
    w2t = jnp.transpose(w2, (2, 3, 1, 0)).reshape(9, Cmid, Cmid)  # (9, Ci, Co)
    w3m = jnp.transpose(w3[:, :, 0, 0], (1, 0))                   # (Cmid, Cout)

    s1r, b1r = s1.reshape(1, Cmid), b1.reshape(1, Cmid)
    s2r, b2r = s2.reshape(1, Cmid), b2.reshape(1, Cmid)
    s3r, b3r = s3.reshape(1, Cout), b3.reshape(1, Cout)

    # Flat padded-scratch geometry (interior start sublane-aligned).
    off = (-W) % 8
    if off == 0:
        off = 8
    padlen = ((off + (H + 2) * W + 1 + 7) // 8) * 8

    kernel = _make_fused_kernel(H, W, Cmid, off, padlen)

    def full_spec(a):
        nd = a.ndim
        return pl.BlockSpec(a.shape, lambda n, _nd=nd: (0,) * _nd)

    out = pl.pallas_call(
        kernel,
        out_shape=jax.ShapeDtypeStruct((N, HW, Cout), x.dtype),
        grid_spec=pltpu.PrefetchScalarGridSpec(
            num_scalar_prefetch=0,
            grid=(N,),
            in_specs=[
                pl.BlockSpec((1, HW, Cin), lambda n: (n, 0, 0)),
                full_spec(w1m), full_spec(w2t), full_spec(w3m),
                full_spec(s1r), full_spec(b1r),
                full_spec(s2r), full_spec(b2r),
                full_spec(s3r), full_spec(b3r),
            ],
            out_specs=pl.BlockSpec((1, HW, Cout), lambda n: (n, 0, 0)),
            scratch_shapes=[pltpu.VMEM((padlen, Cmid), jnp.float32)],
        ),
        compiler_params=pltpu.CompilerParams(
            dimension_semantics=("parallel",),        # megacore split on v7x
            vmem_limit_bytes=48 * 1024 * 1024,        # headroom on v7x's 64 MiB
        ),
    )(x, w1m, w2t, w3m, s1r, b1r, s2r, b2r, s3r, b3r)

    return jnp.transpose(out.reshape(N, H, W, Cout), (0, 3, 1, 2))


# ------------------------------ pure-JAX reference ---------------------------

def reference_block(x_nchw, params, stride=1):
    w1, bn1, w2, bn2, w3, bn3 = params
    s1, b1 = fold_bn(*bn1)
    s2, b2 = fold_bn(*bn2)
    s3, b3 = fold_bn(*bn3)

    x = jnp.transpose(x_nchw, (0, 2, 3, 1))
    identity = x
    N, H, W, Cin = x.shape

    y = jnp.einsum("nhwc,dc->nhwd", x, w1[:, :, 0, 0])
    y = jnp.maximum(y * s1 + b1, 0.0)

    Ho = (H + 2 - 3) // stride + 1
    Wo = (W + 2 - 3) // stride + 1
    yp = jnp.pad(y, ((0, 0), (1, 1), (1, 1), (0, 0)))
    acc = jnp.zeros((N, Ho, Wo, w2.shape[0]), jnp.float32)
    for kh in range(3):
        for kw in range(3):
            sl = yp[:,
                    kh:kh + (Ho - 1) * stride + 1:stride,
                    kw:kw + (Wo - 1) * stride + 1:stride, :]
            acc += jnp.einsum("nhwc,dc->nhwd", sl, w2[:, :, kh, kw])
    y = jnp.maximum(acc * s2 + b2, 0.0)

    y = jnp.einsum("nhwc,dc->nhwd", y, w3[:, :, 0, 0])
    y = jnp.maximum(y * s3 + b3 + identity, 0.0)
    return jnp.transpose(y, (0, 3, 1, 2))


# ----------------------------------- main ------------------------------------

if __name__ == "__main__":
    key = jax.random.PRNGKey(0)
    N, H, W = 2, 16, 16
    intermediate = 4
    expansion = 4
    Cin = intermediate * expansion   # 16: residual add valid (no downsample)
    Cmid = intermediate
    Cout = intermediate * expansion
    stride = 1

    ks = jax.random.split(key, 16)
    x_nchw = jax.random.normal(ks[0], (N, Cin, H, W), jnp.float32)

    def bn_params(k, c):
        ka, kb, kc, kd = jax.random.split(k, 4)
        gamma = 1.0 + 0.1 * jax.random.normal(ka, (c,), jnp.float32)
        beta = 0.1 * jax.random.normal(kb, (c,), jnp.float32)
        mean = 0.1 * jax.random.normal(kc, (c,), jnp.float32)
        var = jnp.abs(jax.random.normal(kd, (c,), jnp.float32)) + 0.5
        return (gamma, beta, mean, var)

    w1 = 0.2 * jax.random.normal(ks[1], (Cmid, Cin, 1, 1), jnp.float32)
    w2 = 0.2 * jax.random.normal(ks[2], (Cmid, Cmid, 3, 3), jnp.float32)
    w3 = 0.2 * jax.random.normal(ks[3], (Cout, Cmid, 1, 1), jnp.float32)
    params = (w1, bn_params(ks[4], Cmid),
              w2, bn_params(ks[5], Cmid),
              w3, bn_params(ks[6], Cout))

    out = bottleneck_block(x_nchw, params, stride=stride)
    jax.block_until_ready(out)

    ref = reference_block(x_nchw, params, stride=stride)
    np.testing.assert_allclose(np.asarray(out), np.asarray(ref),
                               rtol=5e-2, atol=5e-2)
    assert out.shape == (N, Cout, H, W)
    print("KERNEL_OK")
</pallas_src>

<mosaic_0001>
module attributes {stable_mosaic.version = 11 : i64} {
  func.func @kernel(%arg0: i32, %arg1: memref<1x256x16xf32, #tpu.memory_space<vmem>>, %arg2: memref<16x4xf32, #tpu.memory_space<vmem>>, %arg3: memref<9x4x4xf32, #tpu.memory_space<vmem>>, %arg4: memref<4x16xf32, #tpu.memory_space<vmem>>, %arg5: memref<1x4xf32, #tpu.memory_space<vmem>>, %arg6: memref<1x4xf32, #tpu.memory_space<vmem>>, %arg7: memref<1x4xf32, #tpu.memory_space<vmem>>, %arg8: memref<1x4xf32, #tpu.memory_space<vmem>>, %arg9: memref<1x16xf32, #tpu.memory_space<vmem>>, %arg10: memref<1x16xf32, #tpu.memory_space<vmem>>, %arg11: memref<1x256x16xf32, #tpu.memory_space<vmem>>, %arg12: memref<304x4xf32, #tpu.memory_space<vmem>>) attributes {dimension_semantics = [#tpu.dimension_semantics<parallel>], iteration_bounds = array<i64: 2>, scalar_prefetch = 0 : i64, scratch_operands = 1 : i64, tpu.core_type = #tpu.core_type<tc>, window_params = [{transform_indices = @transform_0, window_bounds = array<i64: 1, 256, 16>}, {pipeline_mode = #tpu.pipeline_mode<synchronous>, transform_indices = @transform_1, window_bounds = array<i64: 16, 4>}, {pipeline_mode = #tpu.pipeline_mode<synchronous>, transform_indices = @transform_2, window_bounds = array<i64: 9, 4, 4>}, {pipeline_mode = #tpu.pipeline_mode<synchronous>, transform_indices = @transform_3, window_bounds = array<i64: 4, 16>}, {pipeline_mode = #tpu.pipeline_mode<synchronous>, transform_indices = @transform_4, window_bounds = array<i64: 1, 4>}, {pipeline_mode = #tpu.pipeline_mode<synchronous>, transform_indices = @transform_5, window_bounds = array<i64: 1, 4>}, {pipeline_mode = #tpu.pipeline_mode<synchronous>, transform_indices = @transform_6, window_bounds = array<i64: 1, 4>}, {pipeline_mode = #tpu.pipeline_mode<synchronous>, transform_indices = @transform_7, window_bounds = array<i64: 1, 4>}, {pipeline_mode = #tpu.pipeline_mode<synchronous>, transform_indices = @transform_8, window_bounds = array<i64: 1, 16>}, {pipeline_mode = #tpu.pipeline_mode<synchronous>, transform_indices = @transform_9, window_bounds = array<i64: 1, 16>}, {transform_indices = @transform_10, window_bounds = array<i64: 1, 256, 16>}]} {
    %c0 = arith.constant 0 : index
    %c0_0 = arith.constant 0 : index
    %c0_1 = arith.constant 0 : index
    %0 = vector.load %arg1[%c0, %c0_0, %c0_1] : memref<1x256x16xf32, #tpu.memory_space<vmem>>, vector<1x256x16xf32>
    %1 = vector.shape_cast %0 : vector<1x256x16xf32> to vector<256x16xf32>
    %c0_2 = arith.constant 0 : index
    %c0_3 = arith.constant 0 : index
    %2 = vector.load %arg2[%c0_2, %c0_3] : memref<16x4xf32, #tpu.memory_space<vmem>>, vector<16x4xf32>
    %cst = arith.constant dense<0.000000e+00> : vector<256x4xf32>
    %3 = tpu.matmul %1, %2, %cst {dimension_numbers = #tpu.dot_dimension_numbers<[1], [0], [0], [1], [0, 0, 1, 1], [], []>} : vector<256x16xf32>, vector<16x4xf32>, vector<256x4xf32> -> vector<256x4xf32>
    %c0_4 = arith.constant 0 : index
    %c0_5 = arith.constant 0 : index
    %4 = vector.load %arg5[%c0_4, %c0_5] : memref<1x4xf32, #tpu.memory_space<vmem>>, vector<1x4xf32>
    %5 = vector.broadcast %4 : vector<1x4xf32> to vector<256x4xf32>
    %6 = arith.mulf %3, %5 : vector<256x4xf32>
    %c0_6 = arith.constant 0 : index
    %c0_7 = arith.constant 0 : index
    %7 = vector.load %arg6[%c0_6, %c0_7] : memref<1x4xf32, #tpu.memory_space<vmem>>, vector<1x4xf32>
    %8 = vector.broadcast %7 : vector<1x4xf32> to vector<256x4xf32>
    %9 = arith.addf %6, %8 : vector<256x4xf32>
    %cst_8 = arith.constant 0.000000e+00 : f32
    %10 = vector.broadcast %cst_8 : f32 to vector<256x4xf32>
    %11 = arith.maximumf %9, %10 : vector<256x4xf32>
    %cst_9 = arith.constant 0.000000e+00 : f32
    %12 = vector.broadcast %cst_9 : f32 to vector<24x4xf32>
    %c0_10 = arith.constant 0 : index
    %c0_11 = arith.constant 0 : index
    %13 = vector.load %arg12[%c0_10, %c0_11] : memref<304x4xf32, #tpu.memory_space<vmem>>, vector<24x4xf32>
    tpu.vector_store %arg12[%c0_10, %c0_11], %12 {strides = array<i32>} : memref<304x4xf32, #tpu.memory_space<vmem>>, vector<24x4xf32>,
    %cst_12 = arith.constant 0.000000e+00 : f32
    %14 = vector.broadcast %cst_12 : f32 to vector<24x4xf32>
    %c280 = arith.constant 280 : index
    %c0_13 = arith.constant 0 : index
    %15 = vector.load %arg12[%c280, %c0_13] : memref<304x4xf32, #tpu.memory_space<vmem>>, vector<24x4xf32>
    tpu.vector_store %arg12[%c280, %c0_13], %14 {strides = array<i32>} : memref<304x4xf32, #tpu.memory_space<vmem>>, vector<24x4xf32>,
    %c24 = arith.constant 24 : index
    %c0_14 = arith.constant 0 : index
    %16 = vector.load %arg12[%c24, %c0_14] : memref<304x4xf32, #tpu.memory_space<vmem>>, vector<256x4xf32>
    tpu.vector_store %arg12[%c24, %c0_14], %11 {strides = array<i32>} : memref<304x4xf32, #tpu.memory_space<vmem>>, vector<256x4xf32>,
    %17 = tpu.iota {dimensions = array<i32: 0>} : vector<256x1xi32>
    %c16_i32 = arith.constant 16 : i32
    %c0_i32 = arith.constant 0 : i32
    %18 = arith.cmpi eq, %c16_i32, %c0_i32 : i32
    %c1_i32 = arith.constant 1 : i32
    %19 = arith.select %18, %c1_i32, %c16_i32 : i32
    %20 = vector.broadcast %19 : i32 to vector<256x1xi32>
    %21 = arith.remsi %17, %20 : vector<256x1xi32>
    %c0_i32_15 = arith.constant 0 : i32
    %22 = vector.broadcast %c0_i32_15 : i32 to vector<256x1xi32>
    %23 = arith.cmpi ne, %21, %22 : vector<256x1xi32>
    %c0_i32_16 = arith.constant 0 : i32
    %24 = vector.broadcast %c0_i32_16 : i32 to vector<256x1xi32>
    %25 = arith.cmpi slt, %21, %24 : vector<256x1xi32>
    %c0_i32_17 = arith.constant 0 : i32
    %26 = arith.cmpi slt, %19, %c0_i32_17 : i32
    %27 = vector.broadcast %26 : i1 to vector<256x1xi1>
    %28 = vector.broadcast %27 : vector<256x1xi1> to vector<256x1xi1>
    %29 = arith.xori %25, %28 : vector<256x1xi1>
    %30 = arith.andi %29, %23 : vector<256x1xi1>
    %31 = vector.broadcast %19 : i32 to vector<256x1xi32>
    %32 = arith.addi %21, %31 : vector<256x1xi32>
    %33 = arith.select %30, %32, %21 : vector<256x1xi1>, vector<256x1xi32>
    %c0_i32_18 = arith.constant 0 : i32
    %34 = vector.broadcast %c0_i32_18 : i32 to vector<256x1xi32>
    %35 = arith.cmpi ne, %33, %34 : vector<256x1xi32>
    %36 = arith.extui %35 : vector<256x1xi1> to vector<256x1xi32>
    %37 = arith.sitofp %36 : vector<256x1xi32> to vector<256x1xf32>
    %c15_i32 = arith.constant 15 : i32
    %38 = vector.broadcast %c15_i32 : i32 to vector<256x1xi32>
    %39 = arith.cmpi ne, %33, %38 : vector<256x1xi32>
    %40 = arith.extui %39 : vector<256x1xi1> to vector<256x1xi32>
    %41 = arith.sitofp %40 : vector<256x1xi32> to vector<256x1xf32>
    %cst_19 = arith.constant 0.000000e+00 : f32
    %42 = vector.broadcast %cst_19 : f32 to vector<256x4xf32>
    %c7 = arith.constant 7 : index
    %c0_20 = arith.constant 0 : index
    %43 = vector.load %arg12[%c7, %c0_20] : memref<304x4xf32, #tpu.memory_space<vmem>>, vector<256x4xf32>
    %44 = vector.broadcast %37 : vector<256x1xf32> to vector<256x4xf32>
    %45 = arith.mulf %43, %44 : vector<256x4xf32>
    %c0_21 = arith.constant 0 : index
    %c0_22 = arith.constant 0 : index
    %c0_23 = arith.constant 0 : index
    %46 = vector.load %arg3[%c0_21, %c0_22, %c0_23] : memref<9x4x4xf32, #tpu.memory_space<vmem>>, vector<1x4x4xf32>
    %47 = vector.shape_cast %46 : vector<1x4x4xf32> to vector<4x4xf32>
    %cst_24 = arith.constant dense<0.000000e+00> : vector<256x4xf32>
    %48 = tpu.matmul %45, %47, %cst_24 {dimension_numbers = #tpu.dot_dimension_numbers<[1], [0], [0], [1], [0, 0, 1, 1], [], []>} : vector<256x4xf32>, vector<4x4xf32>, vector<256x4xf32> -> vector<256x4xf32>
    %49 = arith.addf %42, %48 : vector<256x4xf32>
    %c8 = arith.constant 8 : index
    %c0_25 = arith.constant 0 : index
    %50 = vector.load %arg12[%c8, %c0_25] : memref<304x4xf32, #tpu.memory_space<vmem>>, vector<256x4xf32>
    %c1 = arith.constant 1 : index
    %c0_26 = arith.constant 0 : index
    %c0_27 = arith.constant 0 : index
    %51 = vector.load %arg3[%c1, %c0_26, %c0_27] : memref<9x4x4xf32, #tpu.memory_space<vmem>>, vector<1x4x4xf32>
    %52 = vector.shape_cast %51 : vector<1x4x4xf32> to vector<4x4xf32>
    %cst_28 = arith.constant dense<0.000000e+00> : vector<256x4xf32>
    %53 = tpu.matmul %50, %52, %cst_28 {dimension_numbers = #tpu.dot_dimension_numbers<[1], [0], [0], [1], [0, 0, 1, 1], [], []>} : vector<256x4xf32>, vector<4x4xf32>, vector<256x4xf32> -> vector<256x4xf32>
    %54 = arith.addf %49, %53 : vector<256x4xf32>
    %c9 = arith.constant 9 : index
    %c0_29 = arith.constant 0 : index
    %55 = vector.load %arg12[%c9, %c0_29] : memref<304x4xf32, #tpu.memory_space<vmem>>, vector<256x4xf32>
    %56 = vector.broadcast %41 : vector<256x1xf32> to vector<256x4xf32>
    %57 = arith.mulf %55, %56 : vector<256x4xf32>
    %c2 = arith.constant 2 : index
    %c0_30 = arith.constant 0 : index
    %c0_31 = arith.constant 0 : index
    %58 = vector.load %arg3[%c2, %c0_30, %c0_31] : memref<9x4x4xf32, #tpu.memory_space<vmem>>, vector<1x4x4xf32>
    %59 = vector.shape_cast %58 : vector<1x4x4xf32> to vector<4x4xf32>
    %cst_32 = arith.constant dense<0.000000e+00> : vector<256x4xf32>
    %60 = tpu.matmul %57, %59, %cst_32 {dimension_numbers = #tpu.dot_dimension_numbers<[1], [0], [0], [1], [0, 0, 1, 1], [], []>} : vector<256x4xf32>, vector<4x4xf32>, vector<256x4xf32> -> vector<256x4xf32>
    %61 = arith.addf %54, %60 : vector<256x4xf32>
    %c23 = arith.constant 23 : index
    %c0_33 = arith.constant 0 : index
    %62 = vector.load %arg12[%c23, %c0_33] : memref<304x4xf32, #tpu.memory_space<vmem>>, vector<256x4xf32>
    %63 = vector.broadcast %37 : vector<256x1xf32> to vector<256x4xf32>
    %64 = arith.mulf %62, %63 : vector<256x4xf32>
    %c3 = arith.constant 3 : index
    %c0_34 = arith.constant 0 : index
    %c0_35 = arith.constant 0 : index
    %65 = vector.load %arg3[%c3, %c0_34, %c0_35] : memref<9x4x4xf32, #tpu.memory_space<vmem>>, vector<1x4x4xf32>
    %66 = vector.shape_cast %65 : vector<1x4x4xf32> to vector<4x4xf32>
    %cst_36 = arith.constant dense<0.000000e+00> : vector<256x4xf32>
    %67 = tpu.matmul %64, %66, %cst_36 {dimension_numbers = #tpu.dot_dimension_numbers<[1], [0], [0], [1], [0, 0, 1, 1], [], []>} : vector<256x4xf32>, vector<4x4xf32>, vector<256x4xf32> -> vector<256x4xf32>
    %68 = arith.addf %61, %67 : vector<256x4xf32>
    %c24_37 = arith.constant 24 : index
    %c0_38 = arith.constant 0 : index
    %69 = vector.load %arg12[%c24_37, %c0_38] : memref<304x4xf32, #tpu.memory_space<vmem>>, vector<256x4xf32>
    %c4 = arith.constant 4 : index
    %c0_39 = arith.constant 0 : index
    %c0_40 = arith.constant 0 : index
    %70 = vector.load %arg3[%c4, %c0_39, %c0_40] : memref<9x4x4xf32, #tpu.memory_space<vmem>>, vector<1x4x4xf32>
    %71 = vector.shape_cast %70 : vector<1x4x4xf32> to vector<4x4xf32>
    %cst_41 = arith.constant dense<0.000000e+00> : vector<256x4xf32>
    %72 = tpu.matmul %69, %71, %cst_41 {dimension_numbers = #tpu.dot_dimension_numbers<[1], [0], [0], [1], [0, 0, 1, 1], [], []>} : vector<256x4xf32>, vector<4x4xf32>, vector<256x4xf32> -> vector<256x4xf32>
    %73 = arith.addf %68, %72 : vector<256x4xf32>
    %c25 = arith.constant 25 : index
    %c0_42 = arith.constant 0 : index
    %74 = vector.load %arg12[%c25, %c0_42] : memref<304x4xf32, #tpu.memory_space<vmem>>, vector<256x4xf32>
    %75 = vector.broadcast %41 : vector<256x1xf32> to vector<256x4xf32>
    %76 = arith.mulf %74, %75 : vector<256x4xf32>
    %c5 = arith.constant 5 : index
    %c0_43 = arith.constant 0 : index
    %c0_44 = arith.constant 0 : index
    %77 = vector.load %arg3[%c5, %c0_43, %c0_44] : memref<9x4x4xf32, #tpu.memory_space<vmem>>, vector<1x4x4xf32>
    %78 = vector.shape_cast %77 : vector<1x4x4xf32> to vector<4x4xf32>
    %cst_45 = arith.constant dense<0.000000e+00> : vector<256x4xf32>
    %79 = tpu.matmul %76, %78, %cst_45 {dimension_numbers = #tpu.dot_dimension_numbers<[1], [0], [0], [1], [0, 0, 1, 1], [], []>} : vector<256x4xf32>, vector<4x4xf32>, vector<256x4xf32> -> vector<256x4xf32>
    %80 = arith.addf %73, %79 : vector<256x4xf32>
    %c39 = arith.constant 39 : index
    %c0_46 = arith.constant 0 : index
    %81 = vector.load %arg12[%c39, %c0_46] : memref<304x4xf32, #tpu.memory_space<vmem>>, vector<256x4xf32>
    %82 = vector.broadcast %37 : vector<256x1xf32> to vector<256x4xf32>
    %83 = arith.mulf %81, %82 : vector<256x4xf32>
    %c6 = arith.constant 6 : index
    %c0_47 = arith.constant 0 : index
    %c0_48 = arith.constant 0 : index
    %84 = vector.load %arg3[%c6, %c0_47, %c0_48] : memref<9x4x4xf32, #tpu.memory_space<vmem>>, vector<1x4x4xf32>
    %85 = vector.shape_cast %84 : vector<1x4x4xf32> to vector<4x4xf32>
    %cst_49 = arith.constant dense<0.000000e+00> : vector<256x4xf32>
    %86 = tpu.matmul %83, %85, %cst_49 {dimension_numbers = #tpu.dot_dimension_numbers<[1], [0], [0], [1], [0, 0, 1, 1], [], []>} : vector<256x4xf32>, vector<4x4xf32>, vector<256x4xf32> -> vector<256x4xf32>
    %87 = arith.addf %80, %86 : vector<256x4xf32>
    %c40 = arith.constant 40 : index
    %c0_50 = arith.constant 0 : index
    %88 = vector.load %arg12[%c40, %c0_50] : memref<304x4xf32, #tpu.memory_space<vmem>>, vector<256x4xf32>
    %c7_51 = arith.constant 7 : index
    %c0_52 = arith.constant 0 : index
    %c0_53 = arith.constant 0 : index
    %89 = vector.load %arg3[%c7_51, %c0_52, %c0_53] : memref<9x4x4xf32, #tpu.memory_space<vmem>>, vector<1x4x4xf32>
    %90 = vector.shape_cast %89 : vector<1x4x4xf32> to vector<4x4xf32>
    %cst_54 = arith.constant dense<0.000000e+00> : vector<256x4xf32>
    %91 = tpu.matmul %88, %90, %cst_54 {dimension_numbers = #tpu.dot_dimension_numbers<[1], [0], [0], [1], [0, 0, 1, 1], [], []>} : vector<256x4xf32>, vector<4x4xf32>, vector<256x4xf32> -> vector<256x4xf32>
    %92 = arith.addf %87, %91 : vector<256x4xf32>
    %c41 = arith.constant 41 : index
    %c0_55 = arith.constant 0 : index
    %93 = vector.load %arg12[%c41, %c0_55] : memref<304x4xf32, #tpu.memory_space<vmem>>, vector<256x4xf32>
    %94 = vector.broadcast %41 : vector<256x1xf32> to vector<256x4xf32>
    %95 = arith.mulf %93, %94 : vector<256x4xf32>
    %c8_56 = arith.constant 8 : index
    %c0_57 = arith.constant 0 : index
    %c0_58 = arith.constant 0 : index
    %96 = vector.load %arg3[%c8_56, %c0_57, %c0_58] : memref<9x4x4xf32, #tpu.memory_space<vmem>>, vector<1x4x4xf32>
    %97 = vector.shape_cast %96 : vector<1x4x4xf32> to vector<4x4xf32>
    %cst_59 = arith.constant dense<0.000000e+00> : vector<256x4xf32>
    %98 = tpu.matmul %95, %97, %cst_59 {dimension_numbers = #tpu.dot_dimension_numbers<[1], [0], [0], [1], [0, 0, 1, 1], [], []>} : vector<256x4xf32>, vector<4x4xf32>, vector<256x4xf32> -> vector<256x4xf32>
    %99 = arith.addf %92, %98 : vector<256x4xf32>
    %c0_60 = arith.constant 0 : index
    %c0_61 = arith.constant 0 : index
    %100 = vector.load %arg7[%c0_60, %c0_61] : memref<1x4xf32, #tpu.memory_space<vmem>>, vector<1x4xf32>
    %101 = vector.broadcast %100 : vector<1x4xf32> to vector<256x4xf32>
    %102 = arith.mulf %99, %101 : vector<256x4xf32>
    %c0_62 = arith.constant 0 : index
    %c0_63 = arith.constant 0 : index
    %103 = vector.load %arg8[%c0_62, %c0_63] : memref<1x4xf32, #tpu.memory_space<vmem>>, vector<1x4xf32>
    %104 = vector.broadcast %103 : vector<1x4xf32> to vector<256x4xf32>
    %105 = arith.addf %102, %104 : vector<256x4xf32>
    %cst_64 = arith.constant 0.000000e+00 : f32
    %106 = vector.broadcast %cst_64 : f32 to vector<256x4xf32>
    %107 = arith.maximumf %105, %106 : vector<256x4xf32>
    %c0_65 = arith.constant 0 : index
    %c0_66 = arith.constant 0 : index
    %108 = vector.load %arg4[%c0_65, %c0_66] : memref<4x16xf32, #tpu.memory_space<vmem>>, vector<4x16xf32>
    %cst_67 = arith.constant dense<0.000000e+00> : vector<256x16xf32>
    %109 = tpu.matmul %107, %108, %cst_67 {dimension_numbers = #tpu.dot_dimension_numbers<[1], [0], [0], [1], [0, 0, 1, 1], [], []>} : vector<256x4xf32>, vector<4x16xf32>, vector<256x16xf32> -> vector<256x16xf32>
    %c0_68 = arith.constant 0 : index
    %c0_69 = arith.constant 0 : index
    %110 = vector.load %arg9[%c0_68, %c0_69] : memref<1x16xf32, #tpu.memory_space<vmem>>, vector<1x16xf32>
    %111 = vector.broadcast %110 : vector<1x16xf32> to vector<256x16xf32>
    %112 = arith.mulf %109, %111 : vector<256x16xf32>
    %c0_70 = arith.constant 0 : index
    %c0_71 = arith.constant 0 : index
    %113 = vector.load %arg10[%c0_70, %c0_71] : memref<1x16xf32, #tpu.memory_space<vmem>>, vector<1x16xf32>
    %114 = vector.broadcast %113 : vector<1x16xf32> to vector<256x16xf32>
    %115 = arith.addf %112, %114 : vector<256x16xf32>
    %116 = arith.addf %115, %1 : vector<256x16xf32>
    %cst_72 = arith.constant 0.000000e+00 : f32
    %117 = vector.broadcast %cst_72 : f32 to vector<256x16xf32>
    %118 = arith.maximumf %116, %117 : vector<256x16xf32>
    %c0_73 = arith.constant 0 : index
    %c0_74 = arith.constant 0 : index
    %c0_75 = arith.constant 0 : index
    %119 = vector.load %arg11[%c0_73, %c0_74, %c0_75] : memref<1x256x16xf32, #tpu.memory_space<vmem>>, vector<1x256x16xf32>
    %120 = vector.shape_cast %119 : vector<1x256x16xf32> to vector<256x16xf32>
    %121 = vector.shape_cast %118 : vector<256x16xf32> to vector<1x256x16xf32>
    tpu.vector_store %arg11[%c0_73, %c0_74, %c0_75], %121 {strides = array<i32>} : memref<1x256x16xf32, #tpu.memory_space<vmem>>, vector<1x256x16xf32>,
    return
  }
  func.func @transform_0(%arg0: i32) -> (i32, i32, i32) {
    %c0_i32 = arith.constant 0 : i32
    %c0_i32_0 = arith.constant 0 : i32
    %c0_i32_1 = arith.constant 0 : i32
    return %arg0, %c0_i32, %c0_i32_0 : i32, i32, i32
  }
  func.func @transform_1(%arg0: i32) -> (i32, i32) {
    %c0_i32 = arith.constant 0 : i32
    %c0_i32_0 = arith.constant 0 : i32
    %c0_i32_1 = arith.constant 0 : i32
    return %c0_i32, %c0_i32_0 : i32, i32
  }
  func.func @transform_2(%arg0: i32) -> (i32, i32, i32) {
    %c0_i32 = arith.constant 0 : i32
    %c0_i32_0 = arith.constant 0 : i32
    %c0_i32_1 = arith.constant 0 : i32
    %c0_i32_2 = arith.constant 0 : i32
    return %c0_i32, %c0_i32_0, %c0_i32_1 : i32, i32, i32
  }
  func.func @transform_3(%arg0: i32) -> (i32, i32) {
    %c0_i32 = arith.constant 0 : i32
    %c0_i32_0 = arith.constant 0 : i32
    %c0_i32_1 = arith.constant 0 : i32
    return %c0_i32, %c0_i32_0 : i32, i32
  }
  func.func @transform_4(%arg0: i32) -> (i32, i32) {
    %c0_i32 = arith.constant 0 : i32
    %c0_i32_0 = arith.constant 0 : i32
    %c0_i32_1 = arith.constant 0 : i32
    return %c0_i32, %c0_i32_0 : i32, i32
  }
  func.func @transform_5(%arg0: i32) -> (i32, i32) {
    %c0_i32 = arith.constant 0 : i32
    %c0_i32_0 = arith.constant 0 : i32
    %c0_i32_1 = arith.constant 0 : i32
    return %c0_i32, %c0_i32_0 : i32, i32
  }
  func.func @transform_6(%arg0: i32) -> (i32, i32) {
    %c0_i32 = arith.constant 0 : i32
    %c0_i32_0 = arith.constant 0 : i32
    %c0_i32_1 = arith.constant 0 : i32
    return %c0_i32, %c0_i32_0 : i32, i32
  }
  func.func @transform_7(%arg0: i32) -> (i32, i32) {
    %c0_i32 = arith.constant 0 : i32
    %c0_i32_0 = arith.constant 0 : i32
    %c0_i32_1 = arith.constant 0 : i32
    return %c0_i32, %c0_i32_0 : i32, i32
  }
  func.func @transform_8(%arg0: i32) -> (i32, i32) {
    %c0_i32 = arith.constant 0 : i32
    %c0_i32_0 = arith.constant 0 : i32
    %c0_i32_1 = arith.constant 0 : i32
    return %c0_i32, %c0_i32_0 : i32, i32
  }
  func.func @transform_9(%arg0: i32) -> (i32, i32) {
    %c0_i32 = arith.constant 0 : i32
    %c0_i32_0 = arith.constant 0 : i32
    %c0_i32_1 = arith.constant 0 : i32
    return %c0_i32, %c0_i32_0 : i32, i32
  }
  func.func @transform_10(%arg0: i32) -> (i32, i32, i32) {
    %c0_i32 = arith.constant 0 : i32
    %c0_i32_0 = arith.constant 0 : i32
    %c0_i32_1 = arith.constant 0 : i32
    return %arg0, %c0_i32, %c0_i32_0 : i32, i32, i32
  }
}

</mosaic_0001>

<bundles_post_ra>
// kernel: bottleneck_block.1
= control target key start
LH: loop header
LB: loop body
LE: loop exit
PB: predicated region body
PF: predicated region fallthrough
CT: control target
= control target key end

     0   :  { %s5068_s13 = smov 0   ;;  %s6856_s0 = inlined_call_operand.vmem [shape: f32[2,256,16], index: 0, kind: input, shape index: {}]   ;;  %s6857_s1 = inlined_call_operand.vmem [shape: f32[16,4], index: 1, kind: input, shape index: {}]   ;;  %s6858_s2 = inlined_call_operand.vmem [shape: f32[9,4,4], index: 2, kind: input, shape index: {}]   ;;  %s6859_s3 = inlined_call_operand.vmem [shape: f32[4,16], index: 3, kind: input, shape index: {}]   ;;  %s6860_s4 = inlined_call_operand.vmem [shape: f32[1,4], index: 4, kind: input, shape index: {}]   ;;  %s6861_s5 = inlined_call_operand.vmem [shape: f32[1,4], index: 5, kind: input, shape index: {}]   ;;  %s6862_s6 = inlined_call_operand.vmem [shape: f32[1,4], index: 6, kind: input, shape index: {}]   ;;  %s6863_s7 = inlined_call_operand.vmem [shape: f32[1,4], index: 7, kind: input, shape index: {}]   ;;  %s6864_s8 = inlined_call_operand.vmem [shape: f32[1,16], index: 8, kind: input, shape index: {}]   ;;  %s6865_s9 = inlined_call_operand.vmem [shape: f32[1,16], index: 9, kind: input, shape index: {}]   ;;  %s6866_s10 = inlined_call_operand.vmem [shape: f32[2,256,16], index: 10, kind: output, shape index: {}]  }
   0x1 LB: > { %s4526_s14 = sadd.s32 4294967295, %s5010_s13   ;;  %p4530_p0 = scmp.ge.s32.totalorder %s5010_s13, 1  ;;  %s5010_s13 = sphi %s5068_s13, %s20_s13  }
   0x2   : > { %p312_p1 = scmp.lt.s32.totalorder %s5010_s13, 3 }
   0x4   : > { %p313_p2 = pnand %p4530_p0, %p312_p1 }
   0x6   : > { %316 = sbr.rel (%p313_p2) target bundleno = 1185 (0x4a1), region = 60 }
   0xb   : > { %v393_v0 = vld [vmem:[%s6857_s1 + $0x8] sm:$0xff]  ;;  %v392_v1 = vld [vmem:[%s6857_s1] sm:$0xff]  ;;  %p350_p3 = scmp.lt.s32.totalorder %s4526_s14, 1  ;;  %vm394_vm0 = vcmask 130048   ;;  %vm708_vm1 = vcmask 31744   ;;  %v6867_v15 = vmov 0.0   ;;  %v747_v40 = vlaneseq }
   0xc   : > { %505 = vmatpush.msra.mxu0 %v393_v0  ;;  %709 = vst.msk [vmem:[#allocation2] sm:$0xff] %vm708_vm1, %v6867_v15  ;;  %v5139_v19 = vld [vmem:[%s6860_s4] ss:$0 sm:$0xff]  ;;  %v4599_v42 = vld [vmem:[%s6858_s2 + $0x4] sm:$0xf]  ;;  %vm1551_vm2 = vcmask 1043456  }
   0xd   : > { %s7047_s14 = smov (!%p350_p3, %s4526_s14), 1  ;;  %710 = vst.msk [vmem:[#allocation2 + $0x8] sm:$0xff] %vm708_vm1, %v6867_v15  ;;  %v5144_v20 = vld [vmem:[%s6861_s5] ss:$0 sm:$0xff]  ;;  %4941 = vmatpush.msk.msra.mxu1 %vm1551_vm2, %v4599_v42  ;;  %v5176_v46 = vshrl.u32 %v747_v40, 7 }
   0xe   : > { %506 = vmatpush.msra.mxu0 %v392_v1  ;;  %s4939_s19 = sshll.u32 %s7047_s14, 8  ;;  %711 = vst.msk [vmem:[#allocation2 + $0x10] sm:$0xff] %vm708_vm1, %v6867_v15  ;;  %v1420_v43 = vld [vmem:[%s6858_s2] sm:$0xf]  ;;  %v5187_v52 = vld [vmem:[%s6858_s2 + $0x8] sm:$0xf] }
   0xf   : > { %s5090_s22 = scalar_lea.vmem %s6856_s0, %s4939_s19  ;;  %712 = vst.msk [vmem:[#allocation2 + $0x118] sm:$0xff] %vm708_vm1, %v6867_v15  ;;  %4942 = vmatpush.msk.msra.mxu2 %vm1551_vm2, %v1420_v43  ;;  %v750_v49 = vadd.s32 16, %v5176_v46  ;;  %v749_v50 = vadd.s32 8, %v5176_v46  ;;  %4943 = vmatpush.msk.msra.mxu3 %vm1551_vm2, %v5187_v52  ;;  %v4734_v53 = vld [vmem:[%s6858_s2 + $0x10] sm:$0xf]  ;;  %s6626_s29 = scalar_lea.vmem %s6866_s10, %s4939_s19 }
  0x10   : > { %v360_v2 = vld [vmem:[%s5090_s22] sm:$0xff]  ;;  %v361_v3 = vld [vmem:[%s5090_s22 + $0x8] sm:$0xff]  ;;  %v362_v4 = vld [vmem:[%s5090_s22 + $0x10] sm:$0xff]  ;;  %713 = vst.msk [vmem:[#allocation2 + $0x120] sm:$0xff] %vm708_vm1, %v6867_v15  ;;  %4600 = vmatpush.msk.msrb.mxu0 %vm1551_vm2, %v4599_v42 }
  0x11   : > { %4535 = vmatmul.msk.f32.vlgmr.msra.gmra.mxu0 %vm394_vm0, %v360_v2  ;;  %v363_v5 = vld [vmem:[%s5090_s22 + $0x18] sm:$0xff]  ;;  %v364_v6 = vld [vmem:[%s5090_s22 + $0x20] sm:$0xff]  ;;  %v365_v7 = vld [vmem:[%s5090_s22 + $0x28] sm:$0xff]  ;;  %714 = vst.msk [vmem:[#allocation2 + $0x128] sm:$0xff] %vm708_vm1, %v6867_v15  ;;  %4735 = vmatpush.msk.msrb.mxu2 %vm1551_vm2, %v4734_v53  ;;  %v798_v57 = vand.u32 15, %v750_v49  ;;  %v791_v58 = vand.u32 15, %v749_v50 }
  0x12   : > { %v366_v8 = vld [vmem:[%s5090_s22 + $0x30] sm:$0xff]  ;;  %v367_v9 = vld [vmem:[%s5090_s22 + $0x38] sm:$0xff]  ;;  %v368_v10 = vld [vmem:[%s5090_s22 + $0x40] sm:$0xff]  ;;  %4633 = vmatpush.msk.msra.mxu0 %vm1551_vm2, %v1420_v43 }
  0x13   : > { %v369_v11 = vld [vmem:[%s5090_s22 + $0x48] sm:$0xff]  ;;  %v370_v12 = vld [vmem:[%s5090_s22 + $0x50] sm:$0xff]  ;;  %v371_v13 = vld [vmem:[%s5090_s22 + $0x58] sm:$0xff]  ;;  %vm1166_vm3 = vcmp.ne.s32.totalorder %v798_v57, 0  ;;  %vm1261_vm4 = vcmp.ne.s32.totalorder %v791_v58, 15 }
  0x14   : > { %v372_v14 = vld [vmem:[%s5090_s22 + $0x60] sm:$0xff]  ;;  %v373_v16 = vld [vmem:[%s5090_s22 + $0x68] sm:$0xff]  ;;  %v374_v17 = vld [vmem:[%s5090_s22 + $0x70] sm:$0xff]  ;;  %v5206_v0 = vsel %vm1166_vm3, 1.0, %v6867_v15  ;;  %v5209_v1 = vsel %vm1261_vm4, 1.0, %v6867_v15 }
  0x15   : > { %v375_v18 = vld [vmem:[%s5090_s22 + $0x78] sm:$0xff]  ;;  %v376_v22 = vld [vmem:[%s5090_s22 + $0x80] sm:$0xff]  ;;  %v377_v27 = vld [vmem:[%s5090_s22 + $0x88] sm:$0xff] }
  0x16   : > { %v378_v32 = vld [vmem:[%s5090_s22 + $0x90] sm:$0xff]  ;;  %v379_v37 = vld [vmem:[%s5090_s22 + $0x98] sm:$0xff]  ;;  %v380_v45 = vld [vmem:[%s5090_s22 + $0xa0] sm:$0xff] }
  0x17   : > { %v4700_v54 = vld [vmem:[%s6858_s2 + $0xc] sm:$0xf] }
  0x18   : > { %v381_v56 = vld [vmem:[%s5090_s22 + $0xa8] sm:$0xff]  ;;  %4701 = vmatpush.msk.msrb.mxu1 %vm1551_vm2, %v4700_v54 }
  0x19   : > { %4536 = vmatmul.msk.f32.gmra.mxu0 %vm394_vm0, %v361_v3  ;;  %v382_v3 = vld [vmem:[%s5090_s22 + $0xb0] sm:$0xff]  ;;  %v385_v42 = vld [vmem:[%s5090_s22 + $0xc8] sm:$0xff] }
  0x21   : > { %4537 = vmatmul.msk.f32.gmra.mxu0 %vm394_vm0, %v362_v4 }
  0x29   : > { %4538 = vmatmul.msk.f32.gmra.mxu0 %vm394_vm0, %v363_v5 }
  0x31   : > { %4539 = vmatmul.msk.f32.gmra.mxu0 %vm394_vm0, %v364_v6 }
  0x39   : > { %4540 = vmatmul.msk.f32.gmra.mxu0 %vm394_vm0, %v365_v7  ;;  %v756_v7 = vadd.s32 64, %v5176_v46 }
  0x41   : > { %4541 = vmatmul.msk.f32.gmra.mxu0 %vm394_vm0, %v366_v8 }
  0x49   : > { %4542 = vmatmul.msk.f32.gmra.mxu0 %vm394_vm0, %v367_v9  ;;  %v751_v9 = vadd.s32 24, %v5176_v46 }
  0x51   : > { %4543 = vmatmul.msk.f32.gmra.mxu0 %vm394_vm0, %v368_v10 }
  0x59   : > { %4544 = vmatmul.msk.f32.gmra.mxu0 %vm394_vm0, %v369_v11  ;;  %v840_v11 = vand.u32 15, %v756_v7 }
  0x5b   : > { %vm1172_vm5 = vcmp.ne.s32.totalorder %v840_v11, 0 }
  0x61   : > { %4545 = vmatmul.msk.f32.gmra.mxu0 %vm394_vm0, %v370_v12 }
  0x69   : > { %4546 = vmatmul.msk.f32.gmra.mxu0 %vm394_vm0, %v371_v13  ;;  %v383_v13 = vld [vmem:[%s5090_s22 + $0xb8] sm:$0xff] }
  0x71   : > { %4547 = vmatmul.msk.f32.gmra.mxu0 %vm394_vm0, %v372_v14  ;;  %v805_v14 = vand.u32 15, %v751_v9 }
  0x73   : > { %vm1263_vm6 = vcmp.ne.s32.totalorder %v805_v14, 15 }
  0x79   : > { %4548 = vmatmul.msk.f32.gmra.mxu0 %vm394_vm0, %v373_v16 }
  0x81   : > { %4549 = vmatmul.msk.f32.gmra.mxu0 %vm394_vm0, %v374_v17 }
  0x89   : > { %4550 = vmatmul.msk.f32.gmra.mxu0 %vm394_vm0, %v375_v18  ;;  %v5229_v18 = vsel %vm1172_vm5, 1.0, %v6867_v15 }
  0x8e   : > { %v508_v21 = vpop.f32.mrf.mxu0 }
  0x8f   : > { %v608_v23 = vmul.f32 %v5139_v19, %v508_v21 }
  0x91   : > { %v644_v24 = vadd.f32 %v5144_v20, %v608_v23  ;;  %4551 = vmatmul.msk.f32.gmra.mxu0 %vm394_vm0, %v376_v22 }
  0x93   : > { %v676_v25 = vmax.f32 %v644_v24, 0.0 }
  0x95   : > { %715 = vst.msk [vmem:[#allocation2 + $0x18] sm:$0xff] %vm708_vm1, %v676_v25  ;;  %v5235_v25 = vsel %vm1263_vm6, 1.0, %v6867_v15 }
  0x96   : > { %v511_v26 = vpop.f32.mrf.mxu0 }
  0x97   : > { %v609_v28 = vmul.f32 %v5139_v19, %v511_v26 }
  0x99   : > { %v645_v29 = vadd.f32 %v5144_v20, %v609_v28  ;;  %4552 = vmatmul.msk.f32.gmra.mxu0 %vm394_vm0, %v377_v27  ;;  %v384_v28 = vld [vmem:[%s5090_s22 + $0xc0] sm:$0xff] }
  0x9b   : > { %v677_v30 = vmax.f32 %v645_v29, 0.0 }
  0x9d   : > { %716 = vst.msk [vmem:[#allocation2 + $0x20] sm:$0xff] %vm708_vm1, %v677_v30 }
  0x9e   : > { %v514_v31 = vpop.f32.mrf.mxu0 }
  0x9f   : > { %v610_v33 = vmul.f32 %v5139_v19, %v514_v31  ;;  %v758_v31 = vadd.s32 80, %v5176_v46 }
  0xa1   : > { %v646_v34 = vadd.f32 %v5144_v20, %v610_v33  ;;  %4553 = vmatmul.msk.f32.gmra.mxu0 %vm394_vm0, %v378_v32  ;;  %v757_v32 = vadd.s32 72, %v5176_v46 }
  0xa3   : > { %v678_v35 = vmax.f32 %v646_v34, 0.0  ;;  %v753_v34 = vadd.s32 40, %v5176_v46 }
  0xa5   : > { %717 = vst.msk [vmem:[#allocation2 + $0x28] sm:$0xff] %vm708_vm1, %v678_v35  ;;  %v819_v43 = vand.u32 15, %v753_v34  ;;  %v388_v34 = vld [vmem:[%s5090_s22 + $0xe0] sm:$0xff] }
  0xa6   : > { %v517_v36 = vpop.f32.mrf.mxu0 }
  0xa7   : > { %v611_v38 = vmul.f32 %v5139_v19, %v517_v36  ;;  %v854_v36 = vand.u32 15, %v758_v31  ;;  %vm1265_vm9 = vcmp.ne.s32.totalorder %v819_v43, 15 }
  0xa9   : > { %v647_v39 = vadd.f32 %v5144_v20, %v611_v38  ;;  %4554 = vmatmul.msk.f32.gmra.mxu0 %vm394_vm0, %v379_v37  ;;  %v847_v37 = vand.u32 15, %v757_v32  ;;  %vm1174_vm7 = vcmp.ne.s32.totalorder %v854_v36, 0 }
  0xab   : > { %v679_v41 = vmax.f32 %v647_v39, 0.0  ;;  %vm1269_vm8 = vcmp.ne.s32.totalorder %v847_v37, 15  ;;  %v762_v37 = vadd.s32 112, %v5176_v46 }
  0xad   : > { %718 = vst.msk [vmem:[#allocation2 + $0x30] sm:$0xff] %vm708_vm1, %v679_v41 }
  0xae   : > { %v520_v44 = vpop.f32.mrf.mxu0 }
  0xaf   : > { %v612_v47 = vmul.f32 %v5139_v19, %v520_v44 }
  0xb1   : > { %v648_v48 = vadd.f32 %v5144_v20, %v612_v47  ;;  %4555 = vmatmul.msk.f32.gmra.mxu0 %vm394_vm0, %v380_v45  ;;  %v5257_v47 = vsel %vm1174_vm7, 1.0, %v6867_v15 }
  0xb3   : > { %v680_v51 = vmax.f32 %v648_v48, 0.0  ;;  %v5260_v48 = vsel %vm1269_vm8, 1.0, %v6867_v15 }
  0xb5   : > { %719 = vst.msk [vmem:[#allocation2 + $0x38] sm:$0xff] %vm708_vm1, %v680_v51 }
  0xb6   : > { %v523_v55 = vpop.f32.mrf.mxu0 }
  0xb7   : > { %v613_v59 = vmul.f32 %v5139_v19, %v523_v55 }
  0xb9   : > { %v649_v60 = vadd.f32 %v5144_v20, %v613_v59  ;;  %4556 = vmatmul.msk.f32.gmra.mxu0 %vm394_vm0, %v381_v56  ;;  %v5267_v56 = vsel %vm1265_vm9, 1.0, %v6867_v15  ;;  %v386_v59 = vld [vmem:[%s5090_s22 + $0xd0] sm:$0xff] }
  0xbb   : > { %v681_v61 = vmax.f32 %v649_v60, 0.0 }
  0xbc   : > { %v1362_v62 = vld [vmem:[#allocation2 + $0x37] sm:$0xff] }
  0xbd   : > { %v2781_v63 = vld [vmem:[#allocation2 + $0x31] sm:$0xff]  ;;  %720 = vst.msk [vmem:[#allocation2 + $0x40] sm:$0xff] %vm708_vm1, %v681_v61  ;;  %v5213_v4 = vmul.f32 %v5206_v0, %v1362_v62  ;;  %v760_v62 = vadd.s32 96, %v5176_v46 }
  0xbe   : > { %v526_v2 = vpop.f32.mrf.mxu0  ;;  %v5216_v5 = vmul.f32 %v5209_v1, %v2781_v63  ;;  %v759_v63 = vadd.s32 88, %v5176_v46 }
  0xbf   : > { %v614_v6 = vmul.f32 %v5139_v19, %v526_v2  ;;  %v868_v7 = vand.u32 15, %v760_v62 }
  0xc0   : > { %6898 = vst [vmem:[#allocation3_spill] sm:$0xff] %v5216_v5 }
  0xc1   : > { %v650_v8 = vadd.f32 %v5144_v20, %v614_v6  ;;  %4557 = vmatmul.msk.f32.gmra.mxu0 %vm394_vm0, %v382_v3  ;;  %v755_v3 = vadd.s32 56, %v5176_v46  ;;  %vm1176_vm10 = vcmp.ne.s32.totalorder %v868_v7, 0 }
  0xc3   : > { %v682_v10 = vmax.f32 %v650_v8, 0.0  ;;  %v861_v8 = vand.u32 15, %v759_v63  ;;  %v833_v14 = vand.u32 15, %v755_v3 }
  0xc5   : > { %721 = vst.msk [vmem:[#allocation2 + $0x48] sm:$0xff] %vm708_vm1, %v682_v10  ;;  %vm1271_vm11 = vcmp.ne.s32.totalorder %v861_v8, 15  ;;  %vm1267_vm12 = vcmp.ne.s32.totalorder %v833_v14, 15 }
  0xc6   : > { %v529_v12 = vpop.f32.mrf.mxu0  ;;  %v5300_v31 = vsel %vm1267_vm12, 1.0, %v6867_v15 }
  0xc7   : > { %v615_v16 = vmul.f32 %v5139_v19, %v529_v12 }
  0xc9   : > { %v651_v17 = vadd.f32 %v5144_v20, %v615_v16  ;;  %4558 = vmatmul.msk.f32.gmra.mxu0 %vm394_vm0, %v383_v13  ;;  %v387_v13 = vld [vmem:[%s5090_s22 + $0xd8] sm:$0xff] }
  0xcb   : > { %v683_v21 = vmax.f32 %v651_v17, 0.0 }
  0xcc   : > { %v1429_v22 = vld [vmem:[#allocation2 + $0x48] sm:$0xff] }
  0xcd   : > { %v1364_v23 = vld [vmem:[#allocation2 + $0x47] sm:$0xff]  ;;  %722 = vst.msk [vmem:[#allocation2 + $0x50] sm:$0xff] %vm708_vm1, %v683_v21  ;;  %4609 = vmatmul.msk.f32.vlgmr.msra.gmra.mxu1 %vm708_vm1, %v1429_v22  ;;  %v5290_v21 = vsel %vm1176_vm10, 1.0, %v6867_v15  ;;  %v5293_v22 = vsel %vm1271_vm11, 1.0, %v6867_v15 }
  0xce   : > { %v1396_v24 = vmul.f32 %v5229_v18, %v1364_v23  ;;  %v2783_v26 = vld [vmem:[#allocation2 + $0x41] sm:$0xff]  ;;  %v532_v27 = vpop.f32.mrf.mxu0 }
  0xcf   : > { %v5239_v29 = vmul.f32 %v5235_v25, %v2783_v26  ;;  %v616_v30 = vmul.f32 %v5139_v19, %v532_v27 }
  0xd0   : > { %4642 = vmatmul.msk.f32.vlgmr.msra.gmra.mxu2 %vm708_vm1, %v1396_v24 }
  0xd1   : > { %6899 = vst [vmem:[#allocation4_spill] sm:$0xff] %v5239_v29  ;;  %v652_v33 = vadd.f32 %v5144_v20, %v616_v30  ;;  %4559 = vmatmul.msk.f32.gmra.mxu0 %vm394_vm0, %v384_v28 }
  0xd3   : > { %v684_v35 = vmax.f32 %v652_v33, 0.0 }
  0xd4   : > { %v1430_v38 = vld [vmem:[#allocation2 + $0x50] sm:$0xff] }
  0xd5   : > { %v1888_v39 = vld [vmem:[#allocation2 + $0x49] sm:$0xff]  ;;  %723 = vst.msk [vmem:[#allocation2 + $0x58] sm:$0xff] %vm708_vm1, %v684_v35  ;;  %4610 = vmatmul.msk.f32.gmra.mxu1 %vm708_vm1, %v1430_v38  ;;  %v761_v38 = vadd.s32 104, %v5176_v46 }
  0xd6   : > { %4676 = vmatmul.msk.f32.vlgmr.msra.gmra.mxu3 %vm708_vm1, %v1888_v39  ;;  %v535_v40 = vpop.f32.mrf.mxu0  ;;  %v1365_v41 = vld [vmem:[#allocation2 + $0x4f] sm:$0xff] }
  0xd7   : > { %v617_v44 = vmul.f32 %v5139_v19, %v535_v40 }
  0xd8   : > { %4643 = vmatmul.msk.f32.gmra.mxu2 %vm708_vm1, %v1365_v41  ;;  %v882_v41 = vand.u32 15, %v762_v37 }
  0xd9   : > { %v653_v45 = vadd.f32 %v5144_v20, %v617_v44  ;;  %4560 = vmatmul.msk.f32.gmra.mxu0 %vm394_vm0, %v385_v42  ;;  %v875_v42 = vand.u32 15, %v761_v38 }
  0xda   : > { %vm1178_vm13 = vcmp.ne.s32.totalorder %v882_v41, 0 }
  0xdb   : > { %v685_v49 = vmax.f32 %v653_v45, 0.0  ;;  %vm1273_vm14 = vcmp.ne.s32.totalorder %v875_v42, 15  ;;  %v1421_v42 = vld [vmem:[#allocation2 + $0x8] sm:$0xff] }
  0xdc   : > { %v1431_v50 = vld [vmem:[#allocation2 + $0x58] sm:$0xff] }
  0xdd   : > { %v1366_v51 = vld [vmem:[#allocation2 + $0x57] sm:$0xff]  ;;  %724 = vst.msk [vmem:[#allocation2 + $0x60] sm:$0xff] %vm708_vm1, %v685_v49  ;;  %4611 = vmatmul.msk.f32.gmra.mxu1 %vm708_vm1, %v1431_v50  ;;  %v389_v50 = vld [vmem:[%s5090_s22 + $0xe8] sm:$0xff] }
  0xde   : > { %v1889_v53 = vld [vmem:[#allocation2 + $0x51] sm:$0xff]  ;;  %v1398_v54 = vmul.f32 %v5257_v47, %v1366_v51  ;;  %v538_v58 = vpop.f32.mrf.mxu0 }
  0xdf   : > { %v1921_v55 = vmul.f32 %v5260_v48, %v1889_v53  ;;  %v2785_v57 = vld [vmem:[#allocation2 + $0x51] sm:$0xff]  ;;  %v618_v61 = vmul.f32 %v5139_v19, %v538_v58 }
  0xe0   : > { %v5271_v60 = vmul.f32 %v5267_v56, %v2785_v57  ;;  %4644 = vmatmul.msk.f32.gmra.mxu2 %vm708_vm1, %v1398_v54  ;;  %v5322_v54 = vsel %vm1178_vm13, 1.0, %v6867_v15 }
  0xe1   : > { %4677 = vmatmul.msk.f32.gmra.mxu3 %vm708_vm1, %v1921_v55  ;;  %v654_v2 = vadd.f32 %v5144_v20, %v618_v61  ;;  %4561 = vmatmul.msk.f32.gmra.mxu0 %vm394_vm0, %v386_v59  ;;  %v5325_v55 = vsel %vm1273_vm14, 1.0, %v6867_v15 }
  0xe2   : > { %6900 = vst [vmem:[#allocation5_spill] sm:$0xff] %v5271_v60 }
  0xe3   : > { %v686_v6 = vmax.f32 %v654_v2, 0.0 }
  0xe4   : > { %v1432_v9 = vld [vmem:[#allocation2 + $0x60] sm:$0xff] }
  0xe5   : > { %725 = vst.msk [vmem:[#allocation2 + $0x68] sm:$0xff] %vm708_vm1, %v686_v6  ;;  %4612 = vmatmul.msk.f32.gmra.mxu1 %vm708_vm1, %v1432_v9  ;;  %v1367_v11 = vld [vmem:[#allocation2 + $0x5f] sm:$0xff]  ;;  %v390_v6 = vld [vmem:[%s5090_s22 + $0xf0] sm:$0xff]  ;;  %v764_v9 = vadd.s32 128, %v5176_v46 }
  0xe6   : > { %v541_v10 = vpop.f32.mrf.mxu0  ;;  %v1890_v12 = vld [vmem:[#allocation2 + $0x59] sm:$0xff] }
  0xe7   : > { %v619_v16 = vmul.f32 %v5139_v19, %v541_v10  ;;  %v763_v10 = vadd.s32 120, %v5176_v46 }
  0xe8   : > { %4645 = vmatmul.msk.f32.gmra.mxu2 %vm708_vm1, %v1367_v11 }
  0xe9   : > { %4678 = vmatmul.msk.f32.gmra.mxu3 %vm708_vm1, %v1890_v12  ;;  %v655_v17 = vadd.f32 %v5144_v20, %v619_v16  ;;  %4562 = vmatmul.msk.f32.gmra.mxu0 %vm394_vm0, %v387_v13  ;;  %v896_v13 = vand.u32 15, %v764_v9  ;;  %v889_v14 = vand.u32 15, %v763_v10 }
  0xeb   : > { %v687_v23 = vmax.f32 %v655_v17, 0.0  ;;  %vm1180_vm15 = vcmp.ne.s32.totalorder %v896_v13, 0  ;;  %vm1275_vm3 = vcmp.ne.s32.totalorder %v889_v14, 15 }
  0xec   : > { %v1433_v24 = vld [vmem:[#allocation2 + $0x68] sm:$0xff] }
  0xed   : > { %v1368_v26 = vld [vmem:[#allocation2 + $0x67] sm:$0xff]  ;;  %726 = vst.msk [vmem:[#allocation2 + $0x70] sm:$0xff] %vm708_vm1, %v687_v23  ;;  %4613 = vmatmul.msk.f32.gmra.mxu1 %vm708_vm1, %v1433_v24 }
  0xee   : > { %v1891_v27 = vld [vmem:[#allocation2 + $0x61] sm:$0xff]  ;;  %v1400_v28 = vmul.f32 %v5290_v21, %v1368_v26  ;;  %v544_v33 = vpop.f32.mrf.mxu0  ;;  %v391_v26 = vld [vmem:[%s5090_s22 + $0xf8] sm:$0xff] }
  0xef   : > { %v1923_v30 = vmul.f32 %v5293_v22, %v1891_v27  ;;  %v2787_v32 = vld [vmem:[#allocation2 + $0x61] sm:$0xff]  ;;  %v620_v36 = vmul.f32 %v5139_v19, %v544_v33 }
  0xf0   : > { %v5304_v35 = vmul.f32 %v5300_v31, %v2787_v32  ;;  %4646 = vmatmul.msk.f32.gmra.mxu2 %vm708_vm1, %v1400_v28  ;;  %v5354_v32 = vsel %vm1275_vm3, 1.0, %v6867_v15 }
  0xf1   : > { %4679 = vmatmul.msk.f32.gmra.mxu3 %vm708_vm1, %v1923_v30  ;;  %v656_v39 = vadd.f32 %v5144_v20, %v620_v36  ;;  %4563 = vmatmul.msk.f32.gmra.mxu0 %vm394_vm0, %v388_v34  ;;  %v5351_v30 = vsel %vm1180_vm15, 1.0, %v6867_v15 }
  0xf2   : > { %6901 = vst [vmem:[#allocation6_spill] sm:$0xff] %v5304_v35 }
  0xf3   : > { %v688_v40 = vmax.f32 %v656_v39, 0.0 }
  0xf4   : > { %v1434_v43 = vld [vmem:[#allocation2 + $0x70] sm:$0xff] }
  0xf5   : > { %727 = vst.msk [vmem:[#allocation2 + $0x78] sm:$0xff] %vm708_vm1, %v688_v40  ;;  %4614 = vmatmul.msk.f32.gmra.mxu1 %vm708_vm1, %v1434_v43  ;;  %v1369_v45 = vld [vmem:[#allocation2 + $0x6f] sm:$0xff] }
  0xf6   : > { %v547_v44 = vpop.f32.mrf.mxu0  ;;  %v1892_v49 = vld [vmem:[#allocation2 + $0x69] sm:$0xff] }
  0xf7   : > { %v621_v51 = vmul.f32 %v5139_v19, %v547_v44 }
  0xf8   : > { %4647 = vmatmul.msk.f32.gmra.mxu2 %vm708_vm1, %v1369_v45  ;;  %v766_v45 = vadd.s32 144, %v5176_v46 }
  0xf9   : > { %4680 = vmatmul.msk.f32.gmra.mxu3 %vm708_vm1, %v1892_v49  ;;  %v657_v53 = vadd.f32 %v5144_v20, %v621_v51  ;;  %4564 = vmatmul.msk.f32.gmra.mxu0 %vm394_vm0, %v389_v50  ;;  %v765_v49 = vadd.s32 136, %v5176_v46 }
  0xfb   : > { %v689_v57 = vmax.f32 %v657_v53, 0.0  ;;  %v910_v53 = vand.u32 15, %v766_v45 }
  0xfc   : > { %v1435_v58 = vld [vmem:[#allocation2 + $0x78] sm:$0xff] }
  0xfd   : > { %v1370_v59 = vld [vmem:[#allocation2 + $0x77] sm:$0xff]  ;;  %728 = vst.msk [vmem:[#allocation2 + $0x80] sm:$0xff] %vm708_vm1, %v689_v57  ;;  %4615 = vmatmul.msk.f32.gmra.mxu1 %vm708_vm1, %v1435_v58  ;;  %v903_v57 = vand.u32 15, %v765_v49  ;;  %vm1182_vm4 = vcmp.ne.s32.totalorder %v910_v53, 0 }
  0xfe   : > { %v1893_v61 = vld [vmem:[#allocation2 + $0x71] sm:$0xff]  ;;  %v1402_v62 = vmul.f32 %v5322_v54, %v1370_v59  ;;  %v550_v3 = vpop.f32.mrf.mxu0 }
  0xff   : > { %v1925_v63 = vmul.f32 %v5325_v55, %v1893_v61  ;;  %v2789_v2 = vld [vmem:[#allocation2 + $0x71] sm:$0xff]  ;;  %v622_v8 = vmul.f32 %v5139_v19, %v550_v3  ;;  %vm1277_vm5 = vcmp.ne.s32.totalorder %v903_v57, 15  ;;  %v5380_v3 = vsel %vm1182_vm4, 1.0, %v6867_v15 }
 0x100   : > { %v5333_v7 = vmul.f32 %v5260_v48, %v2789_v2  ;;  %4648 = vmatmul.msk.f32.gmra.mxu2 %vm708_vm1, %v1402_v62 }
 0x101   : > { %4681 = vmatmul.msk.f32.gmra.mxu3 %vm708_vm1, %v1925_v63  ;;  %v658_v11 = vadd.f32 %v5144_v20, %v622_v8  ;;  %4565 = vmatmul.msk.f32.gmra.mxu0 %vm394_vm0, %v390_v6  ;;  %v1422_v63 = vld [vmem:[#allocation2 + $0x10] sm:$0xff]  ;;  %v5383_v6 = vsel %vm1277_vm5, 1.0, %v6867_v15 }
 0x102   : > { %6902 = vst [vmem:[#allocation7_spill] sm:$0xff] %v5333_v7 }
 0x103   : > { %v690_v12 = vmax.f32 %v658_v11, 0.0 }
 0x104   : > { %v1436_v16 = vld [vmem:[#allocation2 + $0x80] sm:$0xff] }
 0x105   : > { %729 = vst.msk [vmem:[#allocation2 + $0x88] sm:$0xff] %vm708_vm1, %v690_v12  ;;  %4616 = vmatmul.msk.f32.gmra.mxu1 %vm708_vm1, %v1436_v16  ;;  %v1371_v23 = vld [vmem:[#allocation2 + $0x7f] sm:$0xff] }
 0x106   : > { %v553_v17 = vpop.f32.mrf.mxu0  ;;  %v1894_v24 = vld [vmem:[#allocation2 + $0x79] sm:$0xff] }
 0x107   : > { %v623_v27 = vmul.f32 %v5139_v19, %v553_v17 }
 0x108   : > { %4649 = vmatmul.msk.f32.gmra.mxu2 %vm708_vm1, %v1371_v23 }
 0x109   : > { %4682 = vmatmul.msk.f32.gmra.mxu3 %vm708_vm1, %v1894_v24  ;;  %v659_v28 = vadd.f32 %v5144_v20, %v623_v27  ;;  %4566 = vmatmul.msk.f32.gmra.mxu0 %vm394_vm0, %v391_v26  ;;  %v768_v24 = vadd.s32 160, %v5176_v46  ;;  %v767_v26 = vadd.s32 152, %v5176_v46  ;;  %v5397_v27 = vld [vmem:[#allocation2 + $0x18] sm:$0xff] }
 0x10b   : > { %v691_v33 = vmax.f32 %v659_v28, 0.0 }
 0x10c   : > { %v1437_v34 = vld [vmem:[#allocation2 + $0x88] sm:$0xff] }
 0x10d   : > { %v1372_v36 = vld [vmem:[#allocation2 + $0x87] sm:$0xff]  ;;  %730 = vst.msk [vmem:[#allocation2 + $0x90] sm:$0xff] %vm708_vm1, %v691_v33  ;;  %4617 = vmatmul.msk.f32.gmra.mxu1 %vm708_vm1, %v1437_v34  ;;  %v924_v34 = vand.u32 15, %v768_v24 }
 0x10e   : > { %v1895_v37 = vld [vmem:[#allocation2 + $0x81] sm:$0xff]  ;;  %v1404_v38 = vmul.f32 %v5351_v30, %v1372_v36  ;;  %v556_v41 = vpop.f32.mrf.mxu0  ;;  %v917_v36 = vand.u32 15, %v767_v26 }
 0x10f   : > { %v1927_v39 = vmul.f32 %v5354_v32, %v1895_v37  ;;  %v2791_v40 = vld [vmem:[#allocation2 + $0x81] sm:$0xff]  ;;  %v624_v44 = vmul.f32 %v5139_v19, %v556_v41  ;;  %vm1184_vm6 = vcmp.ne.s32.totalorder %v924_v34, 0 }
 0x110   : > { %v5361_v43 = vmul.f32 %v5293_v22, %v2791_v40  ;;  %4650 = vmatmul.msk.f32.gmra.mxu2 %vm708_vm1, %v1404_v38  ;;  %vm1279_vm7 = vcmp.ne.s32.totalorder %v917_v36, 15  ;;  %v5413_v45 = vsel %vm1184_vm6, 1.0, %v6867_v15 }
 0x111   : > { %4683 = vmatmul.msk.f32.gmra.mxu3 %vm708_vm1, %v1927_v39  ;;  %v660_v50 = vadd.f32 %v5144_v20, %v624_v44  ;;  %4601 = vmatmul.msk.f32.vlgmr.msrb.gmra.mxu0 %vm708_vm1, %v1421_v42  ;;  %v5407_v42 = vld [vmem:[#allocation2 + $0x20] sm:$0xff]  ;;  %v5416_v49 = vsel %vm1279_vm7, 1.0, %v6867_v15 }
 0x112   : > { %6903 = vst [vmem:[#allocation8_spill] sm:$0xff] %v5361_v43  ;;  %4667 = vmatpush.msk.msrb.mxu0 %vm1551_vm2, %v5187_v52 }
 0x113   : > { %v692_v51 = vmax.f32 %v660_v50, 0.0 }
 0x114   : > { %v1438_v58 = vld [vmem:[#allocation2 + $0x90] sm:$0xff] }
 0x115   : > { %731 = vst.msk [vmem:[#allocation2 + $0x98] sm:$0xff] %vm708_vm1, %v692_v51  ;;  %4618 = vmatmul.msk.f32.gmra.mxu1 %vm708_vm1, %v1438_v58  ;;  %v1373_v61 = vld [vmem:[#allocation2 + $0x8f] sm:$0xff] }
 0x116   : > { %v559_v59 = vpop.f32.mrf.mxu0  ;;  %v1896_v62 = vld [vmem:[#allocation2 + $0x89] sm:$0xff] }
 0x117   : > { %v625_v2 = vmul.f32 %v5139_v19, %v559_v59 }
 0x118   : > { %4651 = vmatmul.msk.f32.gmra.mxu2 %vm708_vm1, %v1373_v61 }
 0x119   : > { %4684 = vmatmul.msk.f32.gmra.mxu3 %vm708_vm1, %v1896_v62  ;;  %v661_v52 = vadd.f32 %v5144_v20, %v625_v2  ;;  %4602 = vmatmul.msk.f32.gmra.mxu0 %vm708_vm1, %v1422_v63 }
 0x11b   : > { %v693_v8 = vmax.f32 %v661_v52, 0.0  ;;  %v770_v52 = vadd.s32 176, %v5176_v46 }
 0x11c   : > { %v1439_v9 = vld [vmem:[#allocation2 + $0x98] sm:$0xff] }
 0x11d   : > { %v1374_v10 = vld [vmem:[#allocation2 + $0x97] sm:$0xff]  ;;  %732 = vst.msk [vmem:[#allocation2 + $0xa0] sm:$0xff] %vm708_vm1, %v693_v8  ;;  %4619 = vmatmul.msk.f32.gmra.mxu1 %vm708_vm1, %v1439_v9  ;;  %v769_v8 = vadd.s32 168, %v5176_v46  ;;  %v5430_v9 = vld [vmem:[#allocation2 + $0x28] sm:$0xff] }
 0x11e   : > { %v1897_v11 = vld [vmem:[#allocation2 + $0x91] sm:$0xff]  ;;  %v1406_v12 = vmul.f32 %v5380_v3, %v1374_v10  ;;  %v562_v16 = vpop.f32.mrf.mxu0 }
 0x11f   : > { %v1929_v13 = vmul.f32 %v5383_v6, %v1897_v11  ;;  %v2793_v14 = vld [vmem:[#allocation2 + $0x91] sm:$0xff]  ;;  %v626_v23 = vmul.f32 %v5139_v19, %v562_v16 }
 0x120   : > { %v5390_v17 = vmul.f32 %v5325_v55, %v2793_v14  ;;  %4652 = vmatmul.msk.f32.gmra.mxu2 %vm708_vm1, %v1406_v12  ;;  %v938_v12 = vand.u32 15, %v770_v52 }
 0x121   : > { %4685 = vmatmul.msk.f32.gmra.mxu3 %vm708_vm1, %v1929_v13  ;;  %v662_v28 = vadd.f32 %v5144_v20, %v626_v23  ;;  %4603 = vmatmul.msk.f32.gmra.mxu0 %vm708_vm1, %v5397_v27  ;;  %v931_v13 = vand.u32 15, %v769_v8 }
 0x122   : > { %6904 = vst [vmem:[#allocation9_spill] sm:$0xff] %v5390_v17  ;;  %vm1186_vm8 = vcmp.ne.s32.totalorder %v938_v12, 0  ;;  %v784_v12 = vand.u32 15, %v5176_v46 }
 0x123   : > { %v694_v33 = vmax.f32 %v662_v28, 0.0  ;;  %vm1281_vm9 = vcmp.ne.s32.totalorder %v931_v13, 15  ;;  %v5440_v28 = vld [vmem:[#allocation2 + $0x30] sm:$0xff]  ;;  %v5446_v34 = vsel %vm1186_vm8, 1.0, %v6867_v15 }
 0x124   : > { %v1440_v37 = vld [vmem:[#allocation2 + $0xa0] sm:$0xff]  ;;  %v5449_v36 = vsel %vm1281_vm9, 1.0, %v6867_v15  ;;  %vm1164_vm12 = vcmp.ne.s32.totalorder %v784_v12, 0 }
 0x125   : > { %733 = vst.msk [vmem:[#allocation2 + $0xa8] sm:$0xff] %vm708_vm1, %v694_v33  ;;  %4620 = vmatmul.msk.f32.gmra.mxu1 %vm708_vm1, %v1440_v37  ;;  %v1375_v39 = vld [vmem:[#allocation2 + $0x9f] sm:$0xff] }
 0x126   : > { %v565_v38 = vpop.f32.mrf.mxu0  ;;  %v1898_v40 = vld [vmem:[#allocation2 + $0x99] sm:$0xff] }
 0x127   : > { %v627_v41 = vmul.f32 %v5139_v19, %v565_v38 }
 0x128   : > { %4653 = vmatmul.msk.f32.gmra.mxu2 %vm708_vm1, %v1375_v39 }
 0x129   : > { %4686 = vmatmul.msk.f32.gmra.mxu3 %vm708_vm1, %v1898_v40  ;;  %v663_v44 = vadd.f32 %v5144_v20, %v627_v41  ;;  %4604 = vmatmul.msk.f32.gmra.mxu0 %vm708_vm1, %v5407_v42 }
 0x12b   : > { %v695_v50 = vmax.f32 %v663_v44, 0.0 }
 0x12c   : > { %v1441_v51 = vld [vmem:[#allocation2 + $0xa8] sm:$0xff] }
 0x12d   : > { %v1376_v53 = vld [vmem:[#allocation2 + $0xa7] sm:$0xff]  ;;  %734 = vst.msk [vmem:[#allocation2 + $0xb0] sm:$0xff] %vm708_vm1, %v695_v50  ;;  %4621 = vmatmul.msk.f32.gmra.mxu1 %vm708_vm1, %v1441_v51  ;;  %v4768_v50 = vld [vmem:[%s6858_s2 + $0x14] sm:$0xf] }
 0x12e   : > { %v1899_v57 = vld [vmem:[#allocation2 + $0xa1] sm:$0xff]  ;;  %v1408_v58 = vmul.f32 %v5413_v45, %v1376_v53  ;;  %v568_v62 = vpop.f32.mrf.mxu0  ;;  %4769 = vmatpush.msk.msrb.mxu3 %vm1551_vm2, %v4768_v50 }
 0x12f   : > { %v1931_v59 = vmul.f32 %v5416_v49, %v1899_v57  ;;  %v2795_v61 = vld [vmem:[#allocation2 + $0xa1] sm:$0xff]  ;;  %v628_v2 = vmul.f32 %v5139_v19, %v568_v62  ;;  %v5467_v62 = vld [vmem:[#allocation2 + $0x38] sm:$0xff] }
 0x130   : > { %v5423_v63 = vmul.f32 %v5354_v32, %v2795_v61  ;;  %4654 = vmatmul.msk.f32.gmra.mxu2 %vm708_vm1, %v1408_v58  ;;  %v772_v58 = vadd.s32 192, %v5176_v46 }
 0x131   : > { %4687 = vmatmul.msk.f32.gmra.mxu3 %vm708_vm1, %v1931_v59  ;;  %v664_v10 = vadd.f32 %v5144_v20, %v628_v2  ;;  %4605 = vmatmul.msk.f32.gmra.mxu0 %vm708_vm1, %v5430_v9  ;;  %v771_v59 = vadd.s32 184, %v5176_v46 }
 0x132   : > { %6905 = vst [vmem:[#allocation10_spill] sm:$0xff] %v5423_v63  ;;  %v952_v8 = vand.u32 15, %v772_v58 }
 0x133   : > { %v696_v11 = vmax.f32 %v664_v10, 0.0  ;;  %v945_v10 = vand.u32 15, %v771_v59 }
 0x134   : > { %v1442_v14 = vld [vmem:[#allocation2 + $0xb0] sm:$0xff]  ;;  %vm1188_vm10 = vcmp.ne.s32.totalorder %v952_v8, 0 }
 0x135   : > { %735 = vst.msk [vmem:[#allocation2 + $0xb8] sm:$0xff] %vm708_vm1, %v696_v11  ;;  %4622 = vmatmul.msk.f32.gmra.mxu1 %vm708_vm1, %v1442_v14  ;;  %v1377_v23 = vld [vmem:[#allocation2 + $0xaf] sm:$0xff]  ;;  %vm1283_vm11 = vcmp.ne.s32.totalorder %v945_v10, 15  ;;  %v774_v10 = vadd.s32 208, %v5176_v46 }
 0x136   : > { %v571_v16 = vpop.f32.mrf.mxu0  ;;  %v1900_v24 = vld [vmem:[#allocation2 + $0xa9] sm:$0xff] }
 0x137   : > { %v629_v26 = vmul.f32 %v5139_v19, %v571_v16 }
 0x138   : > { %4655 = vmatmul.msk.f32.gmra.mxu2 %vm708_vm1, %v1377_v23 }
 0x139   : > { %4688 = vmatmul.msk.f32.gmra.mxu3 %vm708_vm1, %v1900_v24  ;;  %v665_v33 = vadd.f32 %v5144_v20, %v629_v26  ;;  %4606 = vmatmul.msk.f32.gmra.mxu0 %vm708_vm1, %v5440_v28  ;;  %v5478_v24 = vld [vmem:[#allocation2 + $0x40] sm:$0xff] }
 0x13b   : > { %v697_v37 = vmax.f32 %v665_v33, 0.0 }
 0x13c   : > { %v1443_v38 = vld [vmem:[#allocation2 + $0xb8] sm:$0xff] }
 0x13d   : > { %v1378_v39 = vld [vmem:[#allocation2 + $0xb7] sm:$0xff]  ;;  %736 = vst.msk [vmem:[#allocation2 + $0xc0] sm:$0xff] %vm708_vm1, %v697_v37  ;;  %4623 = vmatmul.msk.f32.gmra.mxu1 %vm708_vm1, %v1443_v38  ;;  %v5484_v37 = vsel %vm1188_vm10, 1.0, %v6867_v15  ;;  %v5487_v38 = vsel %vm1283_vm11, 1.0, %v6867_v15 }
 0x13e   : > { %v1901_v40 = vld [vmem:[#allocation2 + $0xb1] sm:$0xff]  ;;  %v1410_v41 = vmul.f32 %v5446_v34, %v1378_v39  ;;  %v574_v51 = vpop.f32.mrf.mxu0  ;;  %v1356_v39 = vld [vmem:[#allocation2 + $0x7] sm:$0xff] }
 0x13f   : > { %v1933_v44 = vmul.f32 %v5449_v36, %v1901_v40  ;;  %v2797_v53 = vld [vmem:[#allocation2 + $0xb1] sm:$0xff]  ;;  %v630_v57 = vmul.f32 %v5139_v19, %v574_v51  ;;  %v5490_v51 = vsel %vm1164_vm12, 1.0, %v6867_v15 }
 0x140   : > { %4656 = vmatmul.msk.f32.gmra.mxu2 %vm708_vm1, %v1410_v41  ;;  %v5465_v61 = vmul.f32 %v5383_v6, %v2797_v53  ;;  %v1388_v58 = vmul.f32 %v5490_v51, %v1356_v39 }
 0x141   : > { %4689 = vmatmul.msk.f32.gmra.mxu3 %vm708_vm1, %v1933_v44  ;;  %v666_v2 = vadd.f32 %v5144_v20, %v630_v57  ;;  %4607 = vmatmul.msk.f32.gmra.mxu0 %vm708_vm1, %v5467_v62 }
 0x142   : > { %6906 = vst [vmem:[#allocation11_spill] sm:$0xff] %v5465_v61 }
 0x143   : > { %v698_v52 = vmax.f32 %v666_v2, 0.0 }
 0x144   : > { %v1444_v11 = vld [vmem:[#allocation2 + $0xc0] sm:$0xff] }
 0x145   : > { %737 = vst.msk [vmem:[#allocation2 + $0xc8] sm:$0xff] %vm708_vm1, %v698_v52  ;;  %4624 = vmatmul.msk.f32.gmra.mxu1 %vm708_vm1, %v1444_v11  ;;  %v1379_v14 = vld [vmem:[#allocation2 + $0xbf] sm:$0xff]  ;;  %v773_v11 = vadd.s32 200, %v5176_v46 }
 0x146   : > { %v577_v13 = vpop.f32.mrf.mxu0  ;;  %v1902_v16 = vld [vmem:[#allocation2 + $0xb9] sm:$0xff] }
 0x147   : > { %v631_v23 = vmul.f32 %v5139_v19, %v577_v13  ;;  %v959_v39 = vand.u32 15, %v773_v11 }
 0x148   : > { %4657 = vmatmul.msk.f32.gmra.mxu2 %vm708_vm1, %v1379_v14 }
 0x149   : > { %4690 = vmatmul.msk.f32.gmra.mxu3 %vm708_vm1, %v1902_v16  ;;  %v667_v26 = vadd.f32 %v5144_v20, %v631_v23  ;;  %4608 = vmatmul.msk.f32.gmra.mxu0 %vm708_vm1, %v5478_v24  ;;  %vm1285_vm14 = vcmp.ne.s32.totalorder %v959_v39, 15 }
 0x14a   : > { %v1596_v33 = vpop.f32.mrf.mxu1  ;;  %v5520_v11 = vsel %vm1285_vm14, 1.0, %v6867_v15 }
 0x14b   : > { %v699_v40 = vmax.f32 %v667_v26, 0.0  ;;  %v966_v26 = vand.u32 15, %v774_v10 }
 0x14c   : > { %v1445_v41 = vld [vmem:[#allocation2 + $0xc8] sm:$0xff] }
 0x14d   : > { %v1380_v44 = vld [vmem:[#allocation2 + $0xc7] sm:$0xff]  ;;  %738 = vst.msk [vmem:[#allocation2 + $0xd0] sm:$0xff] %vm708_vm1, %v699_v40  ;;  %4625 = vmatmul.msk.f32.gmra.mxu1 %vm708_vm1, %v1445_v41  ;;  %vm1190_vm13 = vcmp.ne.s32.totalorder %v966_v26, 0 }
 0x14e   : > { %v1903_v50 = vld [vmem:[#allocation2 + $0xc1] sm:$0xff]  ;;  %v1412_v53 = vmul.f32 %v5484_v37, %v1380_v44  ;;  %v580_v2 = vpop.f32.mrf.mxu0  ;;  %v5517_v10 = vsel %vm1190_vm13, 1.0, %v6867_v15 }
 0x14f   : > { %v1935_v57 = vmul.f32 %v5487_v38, %v1903_v50  ;;  %v2799_v59 = vld [vmem:[#allocation2 + $0xc1] sm:$0xff]  ;;  %v632_v8 = vmul.f32 %v5139_v19, %v580_v2 }
 0x150   : > { %v5498_v52 = vmul.f32 %v5416_v49, %v2799_v59  ;;  %4658 = vmatmul.msk.f32.gmra.mxu2 %vm708_vm1, %v1412_v53  ;;  %v1357_v53 = vld [vmem:[#allocation2 + $0xf] sm:$0xff] }
 0x151   : > { %4691 = vmatmul.msk.f32.gmra.mxu3 %vm708_vm1, %v1935_v57  ;;  %v668_v12 = vadd.f32 %v5144_v20, %v632_v8  ;;  %4634 = vmatmul.msk.f32.vlgmr.msra.gmra.mxu0 %vm708_vm1, %v1388_v58 }
 0x152   : > { %6907 = vst [vmem:[#allocation12_spill] sm:$0xff] %v5498_v52  ;;  %v1599_v13 = vpop.f32.mrf.mxu1 }
 0x153   : > { %v1808_v14 = vpop.f32.mrf.mxu2  ;;  %v700_v16 = vmax.f32 %v668_v12, 0.0 }
 0x154   : > { %v1809_v23 = vadd.f32 %v1808_v14, %v1596_v33  ;;  %v1446_v40 = vld [vmem:[#allocation2 + $0xd0] sm:$0xff] }
 0x155   : > { %739 = vst.msk [vmem:[#allocation2 + $0xd8] sm:$0xff] %vm708_vm1, %v700_v16  ;;  %4626 = vmatmul.msk.f32.gmra.mxu1 %vm708_vm1, %v1446_v40  ;;  %v1381_v44 = vld [vmem:[#allocation2 + $0xcf] sm:$0xff]  ;;  %v5522_v16 = vld [vmem:[#allocation2 + $0x17] sm:$0xff] }
 0x156   : > { %v583_v41 = vpop.f32.mrf.mxu0  ;;  %v1904_v50 = vld [vmem:[#allocation2 + $0xc9] sm:$0xff] }
 0x157   : > { %v633_v57 = vmul.f32 %v5139_v19, %v583_v41 }
 0x158   : > { %4659 = vmatmul.msk.f32.gmra.mxu2 %vm708_vm1, %v1381_v44 }
 0x159   : > { %4692 = vmatmul.msk.f32.gmra.mxu3 %vm708_vm1, %v1904_v50  ;;  %v2086_v33 = vpop.f32.mrf.mxu3  ;;  %v669_v58 = vadd.f32 %v5144_v20, %v633_v57  ;;  %4635 = vmatmul.msk.f32.gmra.mxu0 %vm708_vm1, %v1357_v53  ;;  %v1390_v57 = vmul.f32 %v5206_v0, %v5522_v16 }
 0x15a   : > { %v5513_v59 = vadd.f32 %v2086_v33, %v1809_v23  ;;  %v1602_v2 = vpop.f32.mrf.mxu1  ;;  %v776_v33 = vadd.s32 224, %v5176_v46 }
 0x15b   : > { %v1811_v8 = vpop.f32.mrf.mxu2  ;;  %v701_v12 = vmax.f32 %v669_v58, 0.0  ;;  %v775_v58 = vadd.s32 216, %v5176_v46 }
 0x15c   : > { %v1812_v14 = vadd.f32 %v1811_v8, %v1599_v13  ;;  %v1447_v26 = vld [vmem:[#allocation2 + $0xd8] sm:$0xff]  ;;  %v980_v15 = vand.u32 15, %v776_v33 }
 0x15d   : > { %v1382_v39 = vld [vmem:[#allocation2 + $0xd7] sm:$0xff]  ;;  %740 = vst.msk [vmem:[#allocation2 + $0xe0] sm:$0xff] %vm708_vm1, %v701_v12  ;;  %4627 = vmatmul.msk.f32.gmra.mxu1 %vm708_vm1, %v1447_v26  ;;  %v752_v12 = vadd.s32 32, %v5176_v46 }
 0x15e   : > { %v1905_v40 = vld [vmem:[#allocation2 + $0xd1] sm:$0xff]  ;;  %v1414_v23 = vmul.f32 %v5517_v10, %v1382_v39  ;;  %v586_v50 = vpop.f32.mrf.mxu0  ;;  %vm1192_vm15 = vcmp.ne.s32.totalorder %v980_v15, 0 }
 0x15f   : > { %v1937_v41 = vmul.f32 %v5520_v11, %v1905_v40  ;;  %v5528_v44 = vld [vmem:[#allocation2 + $0xd1] sm:$0xff]  ;;  %v634_v13 = vmul.f32 %v5139_v19, %v586_v50  ;;  %v812_v61 = vand.u32 15, %v752_v12 }
 0x160   : > { %v5532_v53 = vmul.f32 %v5449_v36, %v5528_v44  ;;  %4660 = vmatmul.msk.f32.gmra.mxu2 %vm708_vm1, %v1414_v23 }
 0x161   : > { %4693 = vmatmul.msk.f32.gmra.mxu3 %vm708_vm1, %v1937_v41  ;;  %v670_v8 = vadd.f32 %v5144_v20, %v634_v13  ;;  %4636 = vmatmul.msk.f32.gmra.mxu0 %vm708_vm1, %v1390_v57  ;;  %v973_v41 = vand.u32 15, %v775_v58  ;;  %vm1168_vm4 = vcmp.ne.s32.totalorder %v812_v61, 0  ;;  %v6909_v58 = vmov 0.0  }
 0x162   : > { %6908 = vst [vmem:[#allocation13_spill] sm:$0xff] %v5532_v53  ;;  %v1605_v26 = vpop.f32.mrf.mxu1  ;;  %v5567_v61 = vsel %vm1168_vm4, 1.0, %v6909_v58 }
 0x163   : > { %v1814_v39 = vpop.f32.mrf.mxu2  ;;  %v702_v40 = vmax.f32 %v670_v8, 0.0  ;;  %vm1287_vm3 = vcmp.ne.s32.totalorder %v973_v41, 15  ;;  %v5557_v8 = vsel %vm1192_vm15, 1.0, %v6909_v58 }
 0x164   : > { %v1815_v50 = vadd.f32 %v1814_v39, %v1602_v2  ;;  %v2089_v23 = vpop.f32.mrf.mxu3  ;;  %v1448_v52 = vld [vmem:[#allocation2 + $0xe0] sm:$0xff]  ;;  %6910 = vst [vmem:[#allocation14_spill] sm:$0xff] %v5557_v8 }
 0x165   : > { %v5544_v53 = vadd.f32 %v2089_v23, %v1812_v14  ;;  %741 = vst.msk [vmem:[#allocation2 + $0xe8] sm:$0xff] %vm708_vm1, %v702_v40  ;;  %4628 = vmatmul.msk.f32.gmra.mxu1 %vm708_vm1, %v1448_v52  ;;  %v1383_v63 = vld [vmem:[#allocation2 + $0xdf] sm:$0xff]  ;;  %v5562_v39 = vld [vmem:[#allocation2 + $0x27] sm:$0xff] }
 0x166   : > { %v589_v13 = vpop.f32.mrf.mxu0  ;;  %v1906_v57 = vld [vmem:[#allocation2 + $0xd9] sm:$0xff] }
 0x167   : > { %v635_v17 = vmul.f32 %v5139_v19, %v589_v13  ;;  %v5551_v2 = vld [vmem:[#allocation2 + $0x1f] sm:$0xff]  ;;  %v5560_v19 = vsel %vm1287_vm3, 1.0, %v6909_v58 }
 0x168   : > { %4661 = vmatmul.msk.f32.gmra.mxu2 %vm708_vm1, %v1383_v63 }
 0x169   : > { %4694 = vmatmul.msk.f32.gmra.mxu3 %vm708_vm1, %v1906_v57  ;;  %v671_v14 = vadd.f32 %v5144_v20, %v635_v17  ;;  %4637 = vmatmul.msk.f32.gmra.mxu0 %vm708_vm1, %v5551_v2 }
 0x16a   : > { %v1608_v52 = vpop.f32.mrf.mxu1 }
 0x16b   : > { %v1817_v33 = vpop.f32.mrf.mxu2  ;;  %v703_v63 = vmax.f32 %v671_v14, 0.0  ;;  %v5582_v14 = vld [vmem:[%s6860_s4] ss:$0 sm:$0xff] }
 0x16c   : > { %v1818_v12 = vadd.f32 %v1817_v33, %v1605_v26  ;;  %v2092_v15 = vpop.f32.mrf.mxu3  ;;  %v1449_v20 = vld [vmem:[#allocation2 + $0xe8] sm:$0xff] }
 0x16d   : > { %v5564_v40 = vadd.f32 %v2092_v15, %v1815_v50  ;;  %v1384_v17 = vld [vmem:[#allocation2 + $0xe7] sm:$0xff]  ;;  %742 = vst.msk [vmem:[#allocation2 + $0xf0] sm:$0xff] %vm708_vm1, %v703_v63  ;;  %4629 = vmatmul.msk.f32.gmra.mxu1 %vm708_vm1, %v1449_v20  ;;  %v1392_v63 = vmul.f32 %v5567_v61, %v5562_v39  ;;  %v778_v15 = vadd.s32 240, %v5176_v46  ;;  %v777_v20 = vadd.s32 232, %v5176_v46 }
 0x16e   : > { %v1907_v23 = vld [vmem:[#allocation2 + $0xe1] sm:$0xff]  ;;  %v1416_v41 = vmul.f32 %v5557_v8, %v1384_v17  ;;  %v592_v57 = vpop.f32.mrf.mxu0 }
 0x16f   : > { %6911 = vst [vmem:[#allocation15_spill] sm:$0xff] %v5564_v40  ;;  %v1939_v13 = vmul.f32 %v5560_v19, %v1907_v23  ;;  %v5573_v26 = vld [vmem:[#allocation2 + $0xe1] sm:$0xff]  ;;  %v636_v33 = vmul.f32 %v5582_v14, %v592_v57  ;;  %v5598_v23 = vld [vmem:[%s6861_s5] ss:$0 sm:$0xff]  ;;  %v994_v60 = vand.u32 15, %v778_v15  ;;  %v987_v29 = vand.u32 15, %v777_v20 }
 0x170   : > { %6912 = vst [vmem:[#allocation16_spill] sm:$0xff] %v5573_v26  ;;  %v5577_v50 = vmul.f32 %v5487_v38, %v5573_v26  ;;  %4662 = vmatmul.msk.f32.gmra.mxu2 %vm708_vm1, %v1416_v41  ;;  %v4870_v17 = vld [vmem:[%s6858_s2 + $0x20] sm:$0xf] }
 0x171   : > { %4695 = vmatmul.msk.f32.gmra.mxu3 %vm708_vm1, %v1939_v13  ;;  %4871 = vmatpush.msk.msra.mxu2 %vm1551_vm2, %v4870_v17  ;;  %v672_v41 = vadd.f32 %v5598_v23, %v636_v33  ;;  %v754_v13 = vadd.s32 48, %v5176_v46  ;;  %v4836_v33 = vld [vmem:[%s6858_s2 + $0x1c] sm:$0xf]  ;;  %vm1194_vm5 = vcmp.ne.s32.totalorder %v994_v60, 0  ;;  %vm1289_vm6 = vcmp.ne.s32.totalorder %v987_v29, 15 }
 0x172   : > { %6913 = vst [vmem:[#allocation17_spill] sm:$0xff] %v5577_v50  ;;  %4638 = vmatmul.msk.f32.gmra.mxu0 %vm708_vm1, %v1392_v63  ;;  %v1611_v57 = vpop.f32.mrf.mxu1  ;;  %4837 = vmatpush.msk.msra.mxu1 %vm1551_vm2, %v4836_v33  ;;  %v5620_v15 = vsel %vm1194_vm5, 1.0, %v6909_v58  ;;  %v5623_v20 = vsel %vm1289_vm6, 1.0, %v6909_v58 }
 0x173   : > { %v1820_v50 = vpop.f32.mrf.mxu2  ;;  %v704_v43 = vmax.f32 %v672_v41, 0.0  ;;  %v826_v8 = vand.u32 15, %v754_v13  ;;  %6914 = vst [vmem:[#allocation18_spill] sm:$0xff] %v5620_v15 }
 0x174   : > { %v1821_v7 = vadd.f32 %v1820_v50, %v1608_v52  ;;  %v2095_v35 = vpop.f32.mrf.mxu3  ;;  %v1450_v17 = vld [vmem:[#allocation2 + $0xf0] sm:$0xff]  ;;  %6915 = vst [vmem:[#allocation19_spill] sm:$0xff] %v5623_v20 }
 0x175   : > { %v5603_v5 = vadd.f32 %v2095_v35, %v1818_v12  ;;  %743 = vst.msk [vmem:[#allocation2 + $0xf8] sm:$0xff] %vm708_vm1, %v704_v43  ;;  %4630 = vmatmul.msk.f32.gmra.mxu1 %vm708_vm1, %v1450_v17  ;;  %v1385_v40 = vld [vmem:[#allocation2 + $0xef] sm:$0xff]  ;;  %vm1170_vm7 = vcmp.ne.s32.totalorder %v826_v8, 0 }
 0x176   : > { %v595_v63 = vpop.f32.mrf.mxu0  ;;  %v1908_v26 = vld [vmem:[#allocation2 + $0xe9] sm:$0xff]  ;;  %v5628_v33 = vsel %vm1170_vm7, 1.0, %v6909_v58 }
 0x177   : > { %v637_v52 = vmul.f32 %v5582_v14, %v595_v63  ;;  %v5614_v35 = vld [vmem:[#allocation2 + $0x2f] sm:$0xff] }
 0x178   : > { %4663 = vmatmul.msk.f32.gmra.mxu2 %vm708_vm1, %v1385_v40 }
 0x179   : > { %4696 = vmatmul.msk.f32.gmra.mxu3 %vm708_vm1, %v1908_v26  ;;  %v673_v43 = vadd.f32 %v5598_v23, %v637_v52 }
 0x17a   : > { %4639 = vmatmul.msk.f32.gmra.mxu0 %vm708_vm1, %v5614_v35  ;;  %v1614_v12 = vpop.f32.mrf.mxu1 }
 0x17b   : > { %v1823_v50 = vpop.f32.mrf.mxu2  ;;  %v705_v40 = vmax.f32 %v673_v43, 0.0 }
 0x17c   : > { %v1824_v26 = vadd.f32 %v1823_v50, %v1611_v57  ;;  %v2098_v60 = vpop.f32.mrf.mxu3  ;;  %v1451_v41 = vld [vmem:[#allocation2 + $0xf8] sm:$0xff] }
 0x17d   : > { %v5625_v29 = vadd.f32 %v2098_v60, %v1821_v7  ;;  %v1386_v13 = vld [vmem:[#allocation2 + $0xf7] sm:$0xff]  ;;  %744 = vst.msk [vmem:[#allocation2 + $0x100] sm:$0xff] %vm708_vm1, %v705_v40  ;;  %4631 = vmatmul.msk.f32.gmra.mxu1 %vm708_vm1, %v1451_v41  ;;  %v779_v60 = vadd.s32 248, %v5176_v46 }
 0x17e   : > { %v1909_v17 = vld [vmem:[#allocation2 + $0xf1] sm:$0xff]  ;;  %v1418_v8 = vmul.f32 %v5620_v15, %v1386_v13  ;;  %v598_v57 = vpop.f32.mrf.mxu0 }
 0x17f   : > { %6916 = vst [vmem:[#allocation20_spill] sm:$0xff] %v5625_v29  ;;  %v1941_v63 = vmul.f32 %v5623_v20, %v1909_v17  ;;  %v5634_v52 = vld [vmem:[#allocation2 + $0xf1] sm:$0xff]  ;;  %v638_v43 = vmul.f32 %v5582_v14, %v598_v57  ;;  %v1001_v15 = vand.u32 15, %v779_v60 }
 0x180   : > { %6917 = vst [vmem:[#allocation21_spill] sm:$0xff] %v5634_v52  ;;  %v5638_v7 = vmul.f32 %v5520_v11, %v5634_v52  ;;  %4664 = vmatmul.msk.f32.gmra.mxu2 %vm708_vm1, %v1418_v8  ;;  %v5643_v50 = vld [vmem:[#allocation2 + $0x37] sm:$0xff] }
 0x181   : > { %4697 = vmatmul.msk.f32.gmra.mxu3 %vm708_vm1, %v1941_v63  ;;  %v1394_v40 = vmul.f32 %v5643_v50, %v5628_v33  ;;  %v674_v41 = vadd.f32 %v5598_v23, %v638_v43  ;;  %vm1291_vm8 = vcmp.ne.s32.totalorder %v1001_v15, 15 }
 0x182   : > { %6918 = vst [vmem:[#allocation22_spill] sm:$0xff] %v5638_v7  ;;  %v1617_v13 = vpop.f32.mrf.mxu1  ;;  %v5663_v60 = vsel %vm1291_vm8, 1.0, %v6909_v58  ;;  %v1880_v58 = vld [vmem:[#allocation2 + $0x9] sm:$0xff] }
 0x183   : > { %4640 = vmatmul.msk.f32.gmra.mxu0 %vm708_vm1, %v1394_v40  ;;  %v1826_v17 = vpop.f32.mrf.mxu2  ;;  %v706_v7 = vmax.f32 %v674_v41, 0.0  ;;  %6919 = vst [vmem:[#allocation23_spill] sm:$0xff] %v5663_v60 }
 0x184   : > { %v1827_v20 = vadd.f32 %v1826_v17, %v1614_v12  ;;  %v2101_v57 = vpop.f32.mrf.mxu3  ;;  %v1452_v63 = vld [vmem:[#allocation2 + $0x100] sm:$0xff] }
 0x185   : > { %v5650_v8 = vadd.f32 %v2101_v57, %v1824_v26  ;;  %745 = vst.msk [vmem:[#allocation2 + $0x108] sm:$0xff] %vm708_vm1, %v706_v7  ;;  %4632 = vmatmul.msk.f32.gmra.mxu1 %vm708_vm1, %v1452_v63  ;;  %v1387_v52 = vld [vmem:[#allocation2 + $0xff] sm:$0xff] }
 0x186   : > { %v601_v29 = vpop.f32.mrf.mxu0  ;;  %v1910_v46 = vld [vmem:[#allocation2 + $0xf9] sm:$0xff] }
 0x187   : > { %v639_v43 = vmul.f32 %v5582_v14, %v601_v29  ;;  %v5657_v12 = vld [vmem:[#allocation2 + $0x3f] sm:$0xff]  ;;  %v2222_v29 = vmul.f32 %v5490_v51, %v5522_v16 }
 0x188   : > { %4665 = vmatmul.msk.f32.gmra.mxu2 %vm708_vm1, %v1387_v52 }
 0x189   : > { %4698 = vmatmul.msk.f32.gmra.mxu3 %vm708_vm1, %v1910_v46  ;;  %v675_v26 = vadd.f32 %v5598_v23, %v639_v43 }
 0x18a   : > { %v1620_v7 = vpop.f32.mrf.mxu1 }
 0x18b   : > { %4641 = vmatmul.msk.f32.gmra.mxu0 %vm708_vm1, %v5657_v12  ;;  %v1829_v40 = vpop.f32.mrf.mxu2  ;;  %v707_v41 = vmax.f32 %v675_v26, 0.0 }
 0x18c   : > { %v1830_v17 = vadd.f32 %v1829_v40, %v1617_v13  ;;  %v2104_v14 = vpop.f32.mrf.mxu3  ;;  %v1911_v15 = vld [vmem:[#allocation2 + $0x101] sm:$0xff]  ;;  %v1881_v40 = vld [vmem:[#allocation2 + $0x11] sm:$0xff] }
 0x18d   : > { %v5667_v52 = vadd.f32 %v2104_v14, %v1827_v20  ;;  %v5669_v57 = vld [vmem:[#allocation2 + $0x101] sm:$0xff]  ;;  %746 = vst.msk [vmem:[#allocation2 + $0x110] sm:$0xff] %vm708_vm1, %v707_v41  ;;  %4702 = vmatmul.msk.f32.vlgmr.msrb.gmra.mxu1 %vm708_vm1, %v2222_v29  ;;  %v1943_v23 = vmul.f32 %v5663_v60, %v1911_v15  ;;  %v2778_v14 = vld [vmem:[#allocation2 + $0x19] sm:$0xff] }
 0x18e   : > { %v5674_v63 = vpop.f32.mrf.mxu0  ;;  %v5678_v13 = vmul.f32 %v5560_v19, %v5669_v57 }
 0x190   : > { %6920 = vst [vmem:[#allocation24_spill] sm:$0xff] %v5678_v13  ;;  %4736 = vmatmul.msk.f32.vlgmr.msrb.gmra.mxu2 %vm708_vm1, %v5397_v27  ;;  %v1913_v27 = vmul.f32 %v5209_v1, %v1881_v40 }
 0x191   : > { %4699 = vmatmul.msk.f32.gmra.mxu3 %vm708_vm1, %v1943_v23 }
 0x192   : > { %v1623_v16 = vpop.f32.mrf.mxu1 }
 0x193   : > { %4668 = vmatmul.msk.f32.vlgmr.msrb.gmra.mxu0 %vm708_vm1, %v1880_v58  ;;  %v1832_v20 = vpop.f32.mrf.mxu2 }
 0x194   : > { %v1833_v46 = vadd.f32 %v1832_v20, %v1620_v7  ;;  %v2107_v43 = vpop.f32.mrf.mxu3 }
 0x195   : > { %v5684_v26 = vadd.f32 %v2107_v43, %v1830_v17  ;;  %4703 = vmatmul.msk.f32.gmra.mxu1 %vm708_vm1, %v5551_v2  ;;  %v2779_v17 = vld [vmem:[#allocation2 + $0x21] sm:$0xff]  ;;  %v2224_v2 = vmul.f32 %v5206_v0, %v5562_v39 }
 0x196   : > { %v5688_v41 = vpop.f32.mrf.mxu0 }
 0x198   : > { %4737 = vmatmul.msk.f32.gmra.mxu2 %vm708_vm1, %v5407_v42  ;;  %v2811_v42 = vmul.f32 %v5209_v1, %v2779_v17  ;;  %v5713_v1 = vld [vmem:[#allocation2 + $0x29] sm:$0xff] }
 0x199   : > { %4770 = vmatmul.msk.f32.vlgmr.msrb.gmra.mxu3 %vm708_vm1, %v2778_v14 }
 0x19a   : > { %v1626_v7 = vpop.f32.mrf.mxu1 }
 0x19b   : > { %4669 = vmatmul.msk.f32.gmra.mxu0 %vm708_vm1, %v1913_v27  ;;  %v1835_v29 = vpop.f32.mrf.mxu2 }
 0x19c   : > { %v1836_v15 = vadd.f32 %v1835_v29, %v1623_v16  ;;  %v2110_v23 = vpop.f32.mrf.mxu3 }
 0x19d   : > { %v5697_v58 = vadd.f32 %v2110_v23, %v1833_v46  ;;  %4704 = vmatmul.msk.f32.gmra.mxu1 %vm708_vm1, %v2224_v2  ;;  %v2226_v23 = vmul.f32 %v5643_v50, %v5567_v61 }
 0x19e   : > { %v5701_v20 = vpop.f32.mrf.mxu0 }
 0x19f   : > { %6921 = vst [vmem:[#allocation25_spill] sm:$0xff] %v5697_v58  ;;  %v5944_v58 = vld [vmem:[#allocation2 + $0x98] sm:$0xff] }
 0x1a0   : > { %4738 = vmatmul.msk.f32.gmra.mxu2 %vm708_vm1, %v5430_v9  ;;  %v1915_v9 = vmul.f32 %v5235_v25, %v2779_v17  ;;  %v4802_v17 = vld [vmem:[%s6858_s2 + $0x18] sm:$0xf] }
 0x1a1   : > { %4771 = vmatmul.msk.f32.gmra.mxu3 %vm708_vm1, %v2811_v42  ;;  %v4962_v42 = vld [vmem:[#allocation2 + $0x31] sm:$0xff]  ;;  %4803 = vmatpush.msk.msra.mxu0 %vm1551_vm2, %v4802_v17 }
 0x1a2   : > { %v1629_v16 = vpop.f32.mrf.mxu1 }
 0x1a3   : > { %4670 = vmatmul.msk.f32.gmra.mxu0 %vm708_vm1, %v2778_v14  ;;  %v1838_v43 = vpop.f32.mrf.mxu2 }
 0x1a4   : > { %v1839_v40 = vadd.f32 %v1838_v43, %v1626_v7  ;;  %v2113_v27 = vpop.f32.mrf.mxu3 }
 0x1a5   : > { %v5707_v0 = vadd.f32 %v2113_v27, %v1836_v15  ;;  %4705 = vmatmul.msk.f32.gmra.mxu1 %vm708_vm1, %v5614_v35 }
 0x1a6   : > { %v5711_v46 = vpop.f32.mrf.mxu0 }
 0x1a7   : > { %6922 = vst [vmem:[#allocation26_spill] sm:$0xff] %v5707_v0  ;;  %v5868_v0 = vld [vmem:[#allocation2 + $0x78] sm:$0xff] }
 0x1a8   : > { %4739 = vmatmul.msk.f32.gmra.mxu2 %vm708_vm1, %v5440_v28  ;;  %v2813_v28 = vmul.f32 %v4962_v42, %v5235_v25  ;;  %6942 = vst [vmem:[#allocation46_spill] sm:$0xff] %v5868_v0 }
 0x1a9   : > { %4772 = vmatmul.msk.f32.gmra.mxu3 %vm708_vm1, %v5713_v1 }
 0x1aa   : > { %v1632_v14 = vpop.f32.mrf.mxu1 }
 0x1ab   : > { %4671 = vmatmul.msk.f32.gmra.mxu0 %vm708_vm1, %v1915_v9  ;;  %v1841_v7 = vpop.f32.mrf.mxu2  ;;  %v5744_v9 = vld [vmem:[#allocation2 + $0x39] sm:$0xff] }
 0x1ac   : > { %v1842_v29 = vadd.f32 %v1841_v7, %v1629_v16  ;;  %v2116_v15 = vpop.f32.mrf.mxu3  ;;  %6925 = vst [vmem:[#allocation29_spill] sm:$0xff] %v5744_v9  ;;  %v1917_v7 = vmul.f32 %v4962_v42, %v5267_v56  ;;  %v5762_v42 = vld [vmem:[#allocation2 + $0x48] sm:$0xff] }
 0x1ad   : > { %v5723_v2 = vadd.f32 %v2116_v15, %v1839_v40  ;;  %4706 = vmatmul.msk.f32.gmra.mxu1 %vm708_vm1, %v2226_v23  ;;  %v5751_v15 = vld [vmem:[#allocation2 + $0x47] sm:$0xff]  ;;  %6927 = vst [vmem:[#allocation31_spill] sm:$0xff] %v5762_v42 }
 0x1ae   : > { %v5727_v43 = vpop.f32.mrf.mxu0  ;;  %v2228_v17 = vmul.f32 %v5628_v33, %v5751_v15 }
 0x1af   : > { %6923 = vst [vmem:[#allocation27_spill] sm:$0xff] %v5723_v2 }
 0x1b0   : > { %4740 = vmatmul.msk.f32.gmra.mxu2 %vm708_vm1, %v5467_v62 }
 0x1b1   : > { %4773 = vmatmul.msk.f32.gmra.mxu3 %vm708_vm1, %v2813_v28 }
 0x1b2   : > { %v1635_v50 = vpop.f32.mrf.mxu1 }
 0x1b3   : > { %4672 = vmatmul.msk.f32.gmra.mxu0 %vm708_vm1, %v5713_v1  ;;  %v1844_v16 = vpop.f32.mrf.mxu2 }
 0x1b4   : > { %v1845_v40 = vadd.f32 %v1844_v16, %v1632_v14  ;;  %v2119_v25 = vpop.f32.mrf.mxu3 }
 0x1b5   : > { %v5738_v27 = vadd.f32 %v2119_v25, %v1842_v29  ;;  %4707 = vmatmul.msk.f32.gmra.mxu1 %vm708_vm1, %v5657_v12 }
 0x1b6   : > { %v5742_v62 = vpop.f32.mrf.mxu0 }
 0x1b7   : > { %6924 = vst [vmem:[#allocation28_spill] sm:$0xff] %v5738_v27 }
 0x1b8   : > { %4741 = vmatmul.msk.f32.gmra.mxu2 %vm708_vm1, %v5478_v24  ;;  %v4963_v24 = vld [vmem:[#allocation2 + $0x41] sm:$0xff] }
 0x1b9   : > { %4774 = vmatmul.msk.f32.gmra.mxu3 %vm708_vm1, %v5744_v9  ;;  %v2815_v25 = vmul.f32 %v4963_v24, %v5267_v56 }
 0x1ba   : > { %v1638_v14 = vpop.f32.mrf.mxu1 }
 0x1bb   : > { %4673 = vmatmul.msk.f32.gmra.mxu0 %vm708_vm1, %v1917_v7  ;;  %v1847_v29 = vpop.f32.mrf.mxu2 }
 0x1bc   : > { %v1848_v23 = vadd.f32 %v1847_v29, %v1635_v50  ;;  %v2122_v28 = vpop.f32.mrf.mxu3 }
 0x1bd   : > { %v5756_v16 = vadd.f32 %v2122_v28, %v1845_v40  ;;  %4708 = vmatmul.msk.f32.gmra.mxu1 %vm708_vm1, %v2228_v17  ;;  %v5771_v17 = vld [vmem:[#allocation2 + $0x4f] sm:$0xff] }
 0x1be   : > { %v5760_v13 = vpop.f32.mrf.mxu0 }
 0x1bf   : > { %6926 = vst [vmem:[#allocation30_spill] sm:$0xff] %v5756_v16  ;;  %v5777_v16 = vld [vmem:[#allocation2 + $0x50] sm:$0xff] }
 0x1c0   : > { %4742 = vmatmul.msk.f32.gmra.mxu2 %vm708_vm1, %v5762_v42  ;;  %6929 = vst [vmem:[#allocation33_spill] sm:$0xff] %v5777_v16  ;;  %v5779_v42 = vld [vmem:[#allocation2 + $0x49] sm:$0xff] }
 0x1c1   : > { %4775 = vmatmul.msk.f32.gmra.mxu3 %vm708_vm1, %v2815_v25  ;;  %6930 = vst [vmem:[#allocation34_spill] sm:$0xff] %v5779_v42 }
 0x1c2   : > { %v1641_v50 = vpop.f32.mrf.mxu1 }
 0x1c3   : > { %4674 = vmatmul.msk.f32.gmra.mxu0 %vm708_vm1, %v5744_v9  ;;  %v1850_v40 = vpop.f32.mrf.mxu2 }
 0x1c4   : > { %v1851_v7 = vadd.f32 %v1850_v40, %v1638_v14  ;;  %v2125_v29 = vpop.f32.mrf.mxu3  ;;  %v1919_v14 = vmul.f32 %v4963_v24, %v5300_v31  ;;  %v5797_v24 = vld [vmem:[#allocation2 + $0x58] sm:$0xff] }
 0x1c5   : > { %v5769_v28 = vadd.f32 %v2125_v29, %v1848_v23  ;;  %4709 = vmatmul.msk.f32.gmra.mxu1 %vm708_vm1, %v5771_v17  ;;  %v5786_v23 = vld [vmem:[#allocation2 + $0x57] sm:$0xff]  ;;  %6932 = vst [vmem:[#allocation36_spill] sm:$0xff] %v5797_v24 }
 0x1c6   : > { %v5775_v56 = vpop.f32.mrf.mxu0  ;;  %v2230_v27 = vmul.f32 %v5229_v18, %v5786_v23 }
 0x1c7   : > { %6928 = vst [vmem:[#allocation32_spill] sm:$0xff] %v5769_v28 }
 0x1c8   : > { %4743 = vmatmul.msk.f32.gmra.mxu2 %vm708_vm1, %v5777_v16  ;;  %v4964_v16 = vld [vmem:[#allocation2 + $0x51] sm:$0xff] }
 0x1c9   : > { %4776 = vmatmul.msk.f32.gmra.mxu3 %vm708_vm1, %v5779_v42  ;;  %v2817_v42 = vmul.f32 %v4964_v16, %v5300_v31  ;;  %v5807_v31 = vld [vmem:[#allocation2 + $0x5f] sm:$0xff] }
 0x1ca   : > { %v1644_v25 = vpop.f32.mrf.mxu1 }
 0x1cb   : > { %4675 = vmatmul.msk.f32.gmra.mxu0 %vm708_vm1, %v1919_v14  ;;  %v1853_v40 = vpop.f32.mrf.mxu2 }
 0x1cc   : > { %v1854_v29 = vadd.f32 %v1853_v40, %v1641_v50  ;;  %v2128_v28 = vpop.f32.mrf.mxu3  ;;  %v3120_v50 = vmul.f32 %v5490_v51, %v5562_v39  ;;  %v5821_v51 = vld [vmem:[#allocation2 + $0x67] sm:$0xff] }
 0x1cd   : > { %v5791_v2 = vadd.f32 %v2128_v28, %v1851_v7  ;;  %4710 = vmatmul.msk.f32.gmra.mxu1 %vm708_vm1, %v2230_v27 }
 0x1ce   : > { %v5795_v9 = vpop.f32.mrf.mxu0 }
 0x1cf   : > { %6931 = vst [vmem:[#allocation35_spill] sm:$0xff] %v5791_v2  ;;  %v5813_v2 = vld [vmem:[#allocation2 + $0x60] sm:$0xff] }
 0x1d0   : > { %4744 = vmatmul.msk.f32.gmra.mxu2 %vm708_vm1, %v5797_v24  ;;  %6934 = vst [vmem:[#allocation38_spill] sm:$0xff] %v5813_v2  ;;  %v5833_v24 = vld [vmem:[#allocation2 + $0x68] sm:$0xff] }
 0x1d1   : > { %4777 = vmatmul.msk.f32.gmra.mxu3 %vm708_vm1, %v2817_v42  ;;  %v5815_v42 = vld [vmem:[#allocation2 + $0x59] sm:$0xff]  ;;  %6937 = vst [vmem:[#allocation41_spill] sm:$0xff] %v5833_v24 }
 0x1d2   : > { %v1647_v7 = vpop.f32.mrf.mxu1  ;;  %6935 = vst [vmem:[#allocation39_spill] sm:$0xff] %v5815_v42 }
 0x1d3   : > { %4804 = vmatmul.msk.f32.vlgmr.msra.gmra.mxu0 %vm708_vm1, %v3120_v50  ;;  %v1856_v28 = vpop.f32.mrf.mxu2 }
 0x1d4   : > { %v1857_v27 = vadd.f32 %v1856_v28, %v1644_v25  ;;  %v2131_v14 = vpop.f32.mrf.mxu3  ;;  %v2232_v28 = vmul.f32 %v5257_v47, %v5821_v51 }
 0x1d5   : > { %v5805_v40 = vadd.f32 %v2131_v14, %v1854_v29  ;;  %4711 = vmatmul.msk.f32.gmra.mxu1 %vm708_vm1, %v5807_v31 }
 0x1d6   : > { %v5811_v16 = vpop.f32.mrf.mxu0 }
 0x1d7   : > { %6933 = vst [vmem:[#allocation37_spill] sm:$0xff] %v5805_v40  ;;  %v4965_v40 = vld [vmem:[#allocation2 + $0x61] sm:$0xff] }
 0x1d8   : > { %4745 = vmatmul.msk.f32.gmra.mxu2 %vm708_vm1, %v5813_v2  ;;  %v2819_v2 = vmul.f32 %v4965_v40, %v5260_v48  ;;  %v5848_v40 = vld [vmem:[#allocation2 + $0x70] sm:$0xff] }
 0x1d9   : > { %4778 = vmatmul.msk.f32.gmra.mxu3 %vm708_vm1, %v5815_v42  ;;  %6939 = vst [vmem:[#allocation43_spill] sm:$0xff] %v5848_v40 }
 0x1da   : > { %v1650_v39 = vpop.f32.mrf.mxu1 }
 0x1db   : > { %4805 = vmatmul.msk.f32.gmra.mxu0 %vm708_vm1, %v5614_v35  ;;  %v1859_v25 = vpop.f32.mrf.mxu2 }
 0x1dc   : > { %v1860_v29 = vadd.f32 %v1859_v25, %v1647_v7  ;;  %v2134_v50 = vpop.f32.mrf.mxu3 }
 0x1dd   : > { %v5827_v14 = vadd.f32 %v2134_v50, %v1857_v27  ;;  %4712 = vmatmul.msk.f32.gmra.mxu1 %vm708_vm1, %v2232_v28  ;;  %v5842_v28 = vld [vmem:[#allocation2 + $0x6f] sm:$0xff] }
 0x1de   : > { %v5831_v42 = vpop.f32.mrf.mxu0 }
 0x1df   : > { %6936 = vst [vmem:[#allocation40_spill] sm:$0xff] %v5827_v14  ;;  %v5850_v14 = vld [vmem:[#allocation2 + $0x69] sm:$0xff] }
 0x1e0   : > { %4746 = vmatmul.msk.f32.gmra.mxu2 %vm708_vm1, %v5833_v24  ;;  %6940 = vst [vmem:[#allocation44_spill] sm:$0xff] %v5850_v14 }
 0x1e1   : > { %4779 = vmatmul.msk.f32.gmra.mxu3 %vm708_vm1, %v2819_v2 }
 0x1e2   : > { %v1653_v35 = vpop.f32.mrf.mxu1 }
 0x1e3   : > { %4806 = vmatmul.msk.f32.gmra.mxu0 %vm708_vm1, %v5213_v4  ;;  %v1862_v7 = vpop.f32.mrf.mxu2  ;;  %v5856_v4 = vld [vmem:[#allocation2 + $0x77] sm:$0xff] }
 0x1e4   : > { %v1863_v27 = vadd.f32 %v1862_v7, %v1650_v39  ;;  %v2137_v25 = vpop.f32.mrf.mxu3 }
 0x1e5   : > { %v5840_v50 = vadd.f32 %v2137_v25, %v1860_v29  ;;  %4713 = vmatmul.msk.f32.gmra.mxu1 %vm708_vm1, %v5842_v28  ;;  %v2234_v25 = vmul.f32 %v5290_v21, %v5856_v4 }
 0x1e6   : > { %v5846_v48 = vpop.f32.mrf.mxu0 }
 0x1e7   : > { %6938 = vst [vmem:[#allocation42_spill] sm:$0xff] %v5840_v50 }
 0x1e8   : > { %4747 = vmatmul.msk.f32.gmra.mxu2 %vm708_vm1, %v5848_v40  ;;  %v4966_v40 = vld [vmem:[#allocation2 + $0x71] sm:$0xff] }
 0x1e9   : > { %4780 = vmatmul.msk.f32.gmra.mxu3 %vm708_vm1, %v5850_v14  ;;  %v2821_v24 = vmul.f32 %v4966_v40, %v5293_v22  ;;  %v5878_v22 = vld [vmem:[#allocation2 + $0x7f] sm:$0xff] }
 0x1ea   : > { %v1656_v2 = vpop.f32.mrf.mxu1 }
 0x1eb   : > { %4807 = vmatmul.msk.f32.gmra.mxu0 %vm708_vm1, %v5657_v12  ;;  %v1865_v39 = vpop.f32.mrf.mxu2  ;;  %v3124_v12 = vmul.f32 %v5567_v61, %v5751_v15  ;;  %v5892_v61 = vld [vmem:[#allocation2 + $0x87] sm:$0xff] }
 0x1ec   : > { %v1866_v29 = vadd.f32 %v1865_v39, %v1653_v35  ;;  %v2140_v7 = vpop.f32.mrf.mxu3 }
 0x1ed   : > { %v5862_v50 = vadd.f32 %v2140_v7, %v1863_v27  ;;  %4714 = vmatmul.msk.f32.gmra.mxu1 %vm708_vm1, %v2234_v25 }
 0x1ef   : > { %6941 = vst [vmem:[#allocation45_spill] sm:$0xff] %v5862_v50  ;;  %v5866_v14 = vpop.f32.mrf.mxu0  ;;  %v5884_v50 = vld [vmem:[#allocation2 + $0x80] sm:$0xff] }
 0x1f0   : > { %4748 = vmatmul.msk.f32.gmra.mxu2 %vm708_vm1, %v5868_v0  ;;  %6944 = vst [vmem:[#allocation48_spill] sm:$0xff] %v5884_v50 }
 0x1f1   : > { %4781 = vmatmul.msk.f32.gmra.mxu3 %vm708_vm1, %v2821_v24  ;;  %v5886_v24 = vld [vmem:[#allocation2 + $0x79] sm:$0xff] }
 0x1f2   : > { %v1659_v35 = vpop.f32.mrf.mxu1  ;;  %6945 = vst [vmem:[#allocation49_spill] sm:$0xff] %v5886_v24 }
 0x1f3   : > { %4808 = vmatmul.msk.f32.gmra.mxu0 %vm708_vm1, %v3124_v12  ;;  %v1868_v27 = vpop.f32.mrf.mxu2 }
 0x1f4   : > { %v1869_v39 = vadd.f32 %v1868_v27, %v1656_v2  ;;  %v2143_v7 = vpop.f32.mrf.mxu3  ;;  %v2236_v27 = vmul.f32 %v5322_v54, %v5892_v61 }
 0x1f5   : > { %v5876_v25 = vadd.f32 %v2143_v7, %v1866_v29  ;;  %4715 = vmatmul.msk.f32.gmra.mxu1 %vm708_vm1, %v5878_v22 }
 0x1f7   : > { %6943 = vst [vmem:[#allocation47_spill] sm:$0xff] %v5876_v25  ;;  %v5882_v40 = vpop.f32.mrf.mxu0  ;;  %v4090_v25 = vld [vmem:[%s6859_s3] sm:$0xf] }
 0x1f8   : > { %4749 = vmatmul.msk.f32.gmra.mxu2 %vm708_vm1, %v5884_v50  ;;  %v4967_v50 = vld [vmem:[#allocation2 + $0x81] sm:$0xff]  ;;  %4904 = vmatpush.msk.msra.mxu3 %vm1551_vm2, %v4090_v25  ;;  %v5918_v25 = vld [vmem:[#allocation2 + $0x8f] sm:$0xff] }
 0x1f9   : > { %4782 = vmatmul.msk.f32.gmra.mxu3 %vm708_vm1, %v5886_v24  ;;  %v2823_v24 = vmul.f32 %v4967_v50, %v5325_v55 }
 0x1fa   : > { %v1662_v15 = vpop.f32.mrf.mxu1 }
 0x1fb   : > { %4809 = vmatmul.msk.f32.gmra.mxu0 %vm708_vm1, %v5771_v17  ;;  %v1871_v2 = vpop.f32.mrf.mxu2 }
 0x1fc   : > { %v1872_v29 = vadd.f32 %v1871_v2, %v1659_v35  ;;  %v2146_v12 = vpop.f32.mrf.mxu3  ;;  %v5908_v35 = vld [vmem:[#allocation2 + $0x88] sm:$0xff] }
 0x1fd   : > { %v5898_v7 = vadd.f32 %v2146_v12, %v1869_v39  ;;  %4716 = vmatmul.msk.f32.gmra.mxu1 %vm708_vm1, %v2236_v27  ;;  %6947 = vst [vmem:[#allocation51_spill] sm:$0xff] %v5908_v35  ;;  %v3126_v39 = vmul.f32 %v5628_v33, %v5786_v23  ;;  %v5932_v33 = vld [vmem:[#allocation2 + $0x97] sm:$0xff] }
 0x1ff   : > { %6946 = vst [vmem:[#allocation50_spill] sm:$0xff] %v5898_v7 }
 0x200   : > { %v5906_v17 = vpop.f32.mrf.mxu0  ;;  %4750 = vmatmul.msk.f32.gmra.mxu2 %vm708_vm1, %v5908_v35  ;;  %v5924_v35 = vld [vmem:[#allocation2 + $0x90] sm:$0xff] }
 0x201   : > { %4783 = vmatmul.msk.f32.gmra.mxu3 %vm708_vm1, %v2823_v24  ;;  %6949 = vst [vmem:[#allocation53_spill] sm:$0xff] %v5924_v35  ;;  %v5926_v24 = vld [vmem:[#allocation2 + $0x89] sm:$0xff] }
 0x202   : > { %v1665_v2 = vpop.f32.mrf.mxu1  ;;  %6950 = vst [vmem:[#allocation54_spill] sm:$0xff] %v5926_v24 }
 0x203   : > { %4810 = vmatmul.msk.f32.gmra.mxu0 %vm708_vm1, %v3126_v39  ;;  %v1874_v12 = vpop.f32.mrf.mxu2 }
 0x204   : > { %v1875_v27 = vadd.f32 %v1874_v12, %v1662_v15  ;;  %v2149_v55 = vpop.f32.mrf.mxu3 }
 0x205   : > { %v5916_v50 = vadd.f32 %v2149_v55, %v1872_v29  ;;  %4717 = vmatmul.msk.f32.gmra.mxu1 %vm708_vm1, %v5918_v25  ;;  %v1785_v29 = vadd.f32 %v5795_v9, %v5674_v63  ;;  %v2238_v55 = vmul.f32 %v5351_v30, %v5932_v33  ;;  %v3128_v63 = vmul.f32 %v5229_v18, %v5821_v51  ;;  %v5962_v18 = vld [vmem:[#allocation2 + $0x99] sm:$0xff] }
 0x207   : > { %6948 = vst [vmem:[#allocation52_spill] sm:$0xff] %v5916_v50 }
 0x208   : > { %v5922_v7 = vpop.f32.mrf.mxu0  ;;  %4751 = vmatmul.msk.f32.gmra.mxu2 %vm708_vm1, %v5924_v35  ;;  %v4968_v35 = vld [vmem:[#allocation2 + $0x91] sm:$0xff] }
 0x209   : > { %4784 = vmatmul.msk.f32.gmra.mxu3 %vm708_vm1, %v5926_v24  ;;  %v2825_v24 = vmul.f32 %v4968_v35, %v5354_v32  ;;  %v1788_v32 = vadd.f32 %v5811_v16, %v5688_v41  ;;  %v5968_v41 = vld [vmem:[#allocation2 + $0xa7] sm:$0xff] }
 0x20a   : > { %v2372_v15 = vpop.f32.mrf.mxu1 }
 0x20b   : > { %4811 = vmatmul.msk.f32.gmra.mxu0 %vm708_vm1, %v5807_v31  ;;  %v1877_v23 = vpop.f32.mrf.mxu2 }
 0x20c   : > { %v1878_v39 = vadd.f32 %v1877_v23, %v1665_v2  ;;  %v2152_v12 = vpop.f32.mrf.mxu3 }
 0x20d   : > { %v5940_v50 = vadd.f32 %v2152_v12, %v1875_v27  ;;  %4718 = vmatmul.msk.f32.gmra.mxu1 %vm708_vm1, %v2238_v55 }
 0x210   : > { %v2062_v0 = vpop.f32.mrf.mxu0  ;;  %4752 = vmatmul.msk.f32.gmra.mxu2 %vm708_vm1, %v5944_v58 }
 0x211   : > { %v2158_v31 = vadd.f32 %v2062_v0, %v1785_v29  ;;  %4785 = vmatmul.msk.f32.gmra.mxu3 %vm708_vm1, %v2825_v24  ;;  %v5956_v0 = vld [vmem:[#allocation2 + $0x9f] sm:$0xff] }
 0x212   : > { %v2375_v2 = vpop.f32.mrf.mxu1  ;;  %v5960_v29 = vld [vmem:[#allocation2 + $0xa0] sm:$0xff] }
 0x213   : > { %4812 = vmatmul.msk.f32.gmra.mxu0 %vm708_vm1, %v3128_v63  ;;  %v2468_v9 = vadd.f32 %v2372_v15, %v2158_v31  ;;  %v2650_v27 = vpop.f32.mrf.mxu2  ;;  %v2240_v63 = vmul.f32 %v5380_v3, %v5968_v41 }
 0x214   : > { %v2155_v35 = vpop.f32.mrf.mxu3 }
 0x215   : > { %v2746_v23 = vadd.f32 %v2650_v27, %v2468_v9  ;;  %v5954_v12 = vadd.f32 %v2155_v35, %v1878_v39  ;;  %4719 = vmatmul.msk.f32.gmra.mxu1 %vm708_vm1, %v5956_v0  ;;  %v1791_v27 = vadd.f32 %v5831_v42, %v5701_v20 }
 0x218   : > { %v2065_v24 = vpop.f32.mrf.mxu0  ;;  %4753 = vmatmul.msk.f32.gmra.mxu2 %vm708_vm1, %v5960_v29 }
 0x219   : > { %v2159_v51 = vadd.f32 %v2065_v24, %v1788_v32  ;;  %4786 = vmatmul.msk.f32.gmra.mxu3 %vm708_vm1, %v5962_v18  ;;  %v4969_v32 = vld [vmem:[#allocation2 + $0xa1] sm:$0xff] }
 0x21a   : > { %v2378_v15 = vpop.f32.mrf.mxu1  ;;  %v2827_v35 = vmul.f32 %v4969_v32, %v5383_v6  ;;  %v5996_v32 = vld [vmem:[#allocation2 + $0xb0] sm:$0xff] }
 0x21b   : > { %4813 = vmatmul.msk.f32.gmra.mxu0 %vm708_vm1, %v5842_v28  ;;  %v2469_v16 = vadd.f32 %v2375_v2, %v2159_v51  ;;  %v2653_v39 = vpop.f32.mrf.mxu2  ;;  %v5980_v28 = vld [vmem:[#allocation2 + $0xa8] sm:$0xff] }
 0x21c   : > { %v2960_v31 = vpop.f32.mrf.mxu3 }
 0x21d   : > { %v2747_v55 = vadd.f32 %v2653_v39, %v2469_v16  ;;  %v5974_v9 = vadd.f32 %v2960_v31, %v2746_v23  ;;  %4720 = vmatmul.msk.f32.gmra.mxu1 %vm708_vm1, %v2240_v63  ;;  %v3130_v23 = vmul.f32 %v5257_v47, %v5856_v4  ;;  %v5990_v31 = vld [vmem:[#allocation2 + $0xaf] sm:$0xff]  ;;  %v1794_v63 = vadd.f32 %v5846_v48, %v5711_v46 }
 0x21e   : > { %v5998_v47 = vld [vmem:[#allocation2 + $0xa9] sm:$0xff] }
 0x220   : > { %v2068_v24 = vpop.f32.mrf.mxu0  ;;  %4754 = vmatmul.msk.f32.gmra.mxu2 %vm708_vm1, %v5980_v28 }
 0x221   : > { %v2160_v2 = vadd.f32 %v2068_v24, %v1791_v27  ;;  %4787 = vmatmul.msk.f32.gmra.mxu3 %vm708_vm1, %v2827_v35 }
 0x222   : > { %v2381_v42 = vpop.f32.mrf.mxu1 }
 0x223   : > { %4814 = vmatmul.msk.f32.gmra.mxu0 %vm708_vm1, %v3130_v23  ;;  %v2470_v20 = vadd.f32 %v2378_v15, %v2160_v2  ;;  %v2656_v51 = vpop.f32.mrf.mxu2  ;;  %v6004_v15 = vld [vmem:[#allocation2 + $0xb7] sm:$0xff] }
 0x224   : > { %v2963_v39 = vpop.f32.mrf.mxu3  ;;  %v2242_v2 = vmul.f32 %v5413_v45, %v6004_v15 }
 0x225   : > { %v2748_v16 = vadd.f32 %v2656_v51, %v2470_v20  ;;  %v5988_v6 = vadd.f32 %v2963_v39, %v2747_v55  ;;  %4721 = vmatmul.msk.f32.gmra.mxu1 %vm708_vm1, %v5990_v31  ;;  %v1797_v20 = vadd.f32 %v5866_v14, %v5727_v43  ;;  %v4970_v51 = vld [vmem:[#allocation2 + $0xb1] sm:$0xff] }
 0x226   : > { %v2829_v39 = vmul.f32 %v4970_v51, %v5416_v49 }
 0x228   : > { %v2071_v27 = vpop.f32.mrf.mxu0  ;;  %4755 = vmatmul.msk.f32.gmra.mxu2 %vm708_vm1, %v5996_v32 }
 0x229   : > { %v2161_v4 = vadd.f32 %v2071_v27, %v1794_v63  ;;  %4788 = vmatmul.msk.f32.gmra.mxu3 %vm708_vm1, %v5998_v47 }
 0x22a   : > { %v2384_v48 = vpop.f32.mrf.mxu1 }
 0x22b   : > { %4815 = vmatmul.msk.f32.gmra.mxu0 %vm708_vm1, %v5878_v22  ;;  %v2471_v46 = vadd.f32 %v2381_v42, %v2161_v4  ;;  %v2659_v55 = vpop.f32.mrf.mxu2  ;;  %v6016_v22 = vld [vmem:[#allocation2 + $0xb8] sm:$0xff] }
 0x22c   : > { %v2966_v24 = vpop.f32.mrf.mxu3 }
 0x22d   : > { %v2749_v35 = vadd.f32 %v2659_v55, %v2471_v46  ;;  %v6010_v23 = vadd.f32 %v2966_v24, %v2748_v16  ;;  %4722 = vmatmul.msk.f32.gmra.mxu1 %vm708_vm1, %v2242_v2  ;;  %v3132_v16 = vmul.f32 %v5290_v21, %v5892_v61  ;;  %v6026_v55 = vld [vmem:[#allocation2 + $0xbf] sm:$0xff]  ;;  %v1800_v24 = vadd.f32 %v5882_v40, %v5742_v62 }
 0x22e   : > { %v6034_v21 = vld [vmem:[#allocation2 + $0xb9] sm:$0xff] }
 0x230   : > { %v2074_v63 = vpop.f32.mrf.mxu0  ;;  %4756 = vmatmul.msk.f32.gmra.mxu2 %vm708_vm1, %v6016_v22 }
 0x231   : > { %v2162_v42 = vadd.f32 %v2074_v63, %v1797_v20  ;;  %4789 = vmatmul.msk.f32.gmra.mxu3 %vm708_vm1, %v2829_v39  ;;  %v6032_v20 = vld [vmem:[#allocation2 + $0xc0] sm:$0xff] }
 0x232   : > { %v2387_v14 = vpop.f32.mrf.mxu1 }
 0x233   : > { %4816 = vmatmul.msk.f32.gmra.mxu0 %vm708_vm1, %v3132_v16  ;;  %v2472_v43 = vadd.f32 %v2384_v48, %v2162_v42  ;;  %v2662_v27 = vpop.f32.mrf.mxu2  ;;  %v6040_v48 = vld [vmem:[#allocation2 + $0xc7] sm:$0xff]  ;;  %v1803_v16 = vadd.f32 %v5906_v17, %v5760_v13 }
 0x234   : > { %v2969_v46 = vpop.f32.mrf.mxu3  ;;  %v2244_v63 = vmul.f32 %v5446_v34, %v6040_v48 }
 0x235   : > { %v2750_v4 = vadd.f32 %v2662_v27, %v2472_v43  ;;  %v6024_v49 = vadd.f32 %v2969_v46, %v2749_v35  ;;  %4723 = vmatmul.msk.f32.gmra.mxu1 %vm708_vm1, %v6026_v55  ;;  %v4971_v43 = vld [vmem:[#allocation2 + $0xc1] sm:$0xff] }
 0x236   : > { %v2831_v27 = vmul.f32 %v4971_v43, %v5449_v36 }
 0x238   : > { %v2077_v2 = vpop.f32.mrf.mxu0  ;;  %4757 = vmatmul.msk.f32.gmra.mxu2 %vm708_vm1, %v6032_v20 }
 0x239   : > { %v2163_v61 = vadd.f32 %v2077_v2, %v1800_v24  ;;  %4790 = vmatmul.msk.f32.gmra.mxu3 %vm708_vm1, %v6034_v21 }
 0x23a   : > { %v2390_v40 = vpop.f32.mrf.mxu1 }
 0x23b   : > { %4817 = vmatmul.msk.f32.gmra.mxu0 %vm708_vm1, %v5918_v25  ;;  %v2473_v62 = vadd.f32 %v2387_v14, %v2163_v61  ;;  %v2665_v35 = vpop.f32.mrf.mxu2  ;;  %v6052_v25 = vld [vmem:[#allocation2 + $0xc8] sm:$0xff] }
 0x23c   : > { %v2972_v39 = vpop.f32.mrf.mxu3 }
 0x23d   : > { %v2751_v51 = vadd.f32 %v2665_v35, %v2473_v62  ;;  %v6046_v42 = vadd.f32 %v2972_v39, %v2750_v4  ;;  %4724 = vmatmul.msk.f32.gmra.mxu1 %vm708_vm1, %v2244_v63  ;;  %v3134_v4 = vmul.f32 %v5322_v54, %v5932_v33  ;;  %v6062_v62 = vld [vmem:[#allocation2 + $0xcf] sm:$0xff]  ;;  %v1806_v35 = vadd.f32 %v5922_v7, %v5775_v56 }
 0x23e   : > { %v6068_v63 = vld [vmem:[#allocation2 + $0xd0] sm:$0xff] }
 0x23f   : > { %v6070_v54 = vld [vmem:[#allocation2 + $0xc9] sm:$0xff] }
 0x240   : > { %v2080_v46 = vpop.f32.mrf.mxu0  ;;  %4758 = vmatmul.msk.f32.gmra.mxu2 %vm708_vm1, %v6052_v25 }
 0x241   : > { %v2164_v14 = vadd.f32 %v2080_v46, %v1803_v16  ;;  %4791 = vmatmul.msk.f32.gmra.mxu3 %vm708_vm1, %v2831_v27 }
 0x242   : > { %v2393_v17 = vpop.f32.mrf.mxu1 }
 0x243   : > { %4818 = vmatmul.msk.f32.gmra.mxu0 %vm708_vm1, %v3134_v4  ;;  %v2474_v13 = vadd.f32 %v2390_v40, %v2164_v14  ;;  %v2668_v24 = vpop.f32.mrf.mxu2  ;;  %v6076_v40 = vld [vmem:[#allocation2 + $0xd7] sm:$0xff]  ;;  %v2833_v14 = vmul.f32 %v5487_v38, %v5528_v44  ;;  %v6100_v44 = vld [vmem:[#allocation2 + $0xdf] sm:$0xff] }
 0x244   : > { %v2975_v61 = vpop.f32.mrf.mxu3  ;;  %v2246_v27 = vmul.f32 %v5484_v37, %v6076_v40  ;;  %v6087_v4 = vld [vmem:[#allocation2 + $0xd8] sm:$0xff] }
 0x245   : > { %v2752_v2 = vadd.f32 %v2668_v24, %v2474_v13  ;;  %v6060_v36 = vadd.f32 %v2975_v61, %v2751_v51  ;;  %4725 = vmatmul.msk.f32.gmra.mxu1 %vm708_vm1, %v6062_v62 }
 0x248   : > { %v2083_v39 = vpop.f32.mrf.mxu0  ;;  %4759 = vmatmul.msk.f32.gmra.mxu2 %vm708_vm1, %v6068_v63 }
 0x249   : > { %v2165_v33 = vadd.f32 %v2083_v39, %v1806_v35  ;;  %4792 = vmatmul.msk.f32.gmra.mxu3 %vm708_vm1, %v6070_v54  ;;  %v6104_v35 = vld [vmem:[#allocation2 + $0xe0] sm:$0xff] }
 0x24a   : > { %v2396_v7 = vpop.f32.mrf.mxu1  ;;  %v6106_v39 = vld [vmem:[#allocation2 + $0xd9] sm:$0xff] }
 0x24b   : > { %4819 = vmatmul.msk.f32.gmra.mxu0 %vm708_vm1, %v5956_v0  ;;  %v2475_v56 = vadd.f32 %v2393_v17, %v2165_v33  ;;  %v2671_v51 = vpop.f32.mrf.mxu2  ;;  %v3136_v0 = vmul.f32 %v5351_v30, %v5968_v41  ;;  %v2476_v13 = vadd.f32 %v2396_v7, %v5513_v59  ;;  %v6112_v30 = vld [vmem:[#allocation2 + $0xe7] sm:$0xff] }
 0x24c   : > { %v2978_v43 = vpop.f32.mrf.mxu3  ;;  %v2248_v7 = vmul.f32 %v5517_v10, %v6112_v30 }
 0x24d   : > { %v2753_v16 = vadd.f32 %v2671_v51, %v2475_v56  ;;  %v6082_v46 = vadd.f32 %v2978_v43, %v2752_v2  ;;  %4726 = vmatmul.msk.f32.gmra.mxu1 %vm708_vm1, %v2246_v27  ;;  %v6951_v51 = vld [vmem:[#allocation16_spill] sm:$0xff]  ;;  %v6124_v43 = vld [vmem:[#allocation2 + $0xe8] sm:$0xff] }
 0x250   : > { %4760 = vmatmul.msk.f32.gmra.mxu2 %vm708_vm1, %v6087_v4 }
 0x251   : > { %4793 = vmatmul.msk.f32.gmra.mxu3 %vm708_vm1, %v2833_v14 }
 0x252   : > { %v2399_v17 = vpop.f32.mrf.mxu1 }
 0x253   : > { %4820 = vmatmul.msk.f32.gmra.mxu0 %vm708_vm1, %v3136_v0  ;;  %v2674_v24 = vpop.f32.mrf.mxu2  ;;  %v2477_v59 = vadd.f32 %v2399_v17, %v5544_v53  ;;  %v3138_v53 = vmul.f32 %v5380_v3, %v6004_v15  ;;  %v6135_v17 = vld [vmem:[#allocation2 + $0xef] sm:$0xff]  ;;  %v6147_v3 = vld [vmem:[#allocation2 + $0xf7] sm:$0xff] }
 0x254   : > { %v6096_v2 = vadd.f32 %v2674_v24, %v2476_v13  ;;  %v2981_v61 = vpop.f32.mrf.mxu3  ;;  %v6141_v24 = vld [vmem:[#allocation2 + $0xe9] sm:$0xff] }
 0x255   : > { %v6098_v38 = vadd.f32 %v2981_v61, %v2753_v16  ;;  %4727 = vmatmul.msk.f32.gmra.mxu1 %vm708_vm1, %v6100_v44  ;;  %v2835_v16 = vmul.f32 %v5520_v11, %v6951_v51  ;;  %v6139_v11 = vld [vmem:[#allocation2 + $0xf0] sm:$0xff]  ;;  %v6954_v51 = vld [vmem:[#allocation21_spill] sm:$0xff] }
 0x258   : > { %4761 = vmatmul.msk.f32.gmra.mxu2 %vm708_vm1, %v6104_v35 }
 0x259   : > { %4794 = vmatmul.msk.f32.gmra.mxu3 %vm708_vm1, %v6106_v39 }
 0x25a   : > { %v2402_v41 = vpop.f32.mrf.mxu1 }
 0x25b   : > { %4821 = vmatmul.msk.f32.gmra.mxu0 %vm708_vm1, %v5990_v31  ;;  %v2677_v33 = vpop.f32.mrf.mxu2  ;;  %v6952_v31 = vld [vmem:[#allocation15_spill] sm:$0xff] }
 0x25c   : > { %v6117_v56 = vadd.f32 %v2677_v33, %v2477_v59  ;;  %v2478_v27 = vadd.f32 %v2402_v41, %v6952_v31  ;;  %v6953_v33 = vld [vmem:[#allocation14_spill] sm:$0xff] }
 0x25d   : > { %4728 = vmatmul.msk.f32.gmra.mxu1 %vm708_vm1, %v2248_v7  ;;  %v2250_v7 = vmul.f32 %v6953_v33, %v6147_v3 }
 0x260   : > { %4762 = vmatmul.msk.f32.gmra.mxu2 %vm708_vm1, %v6124_v43 }
 0x261   : > { %4795 = vmatmul.msk.f32.gmra.mxu3 %vm708_vm1, %v2835_v16  ;;  %v2837_v16 = vmul.f32 %v5560_v19, %v6954_v51  ;;  %v6174_v19 = vld [vmem:[#allocation2 + $0x100] sm:$0xff] }
 0x262   : > { %v2405_v14 = vpop.f32.mrf.mxu1 }
 0x263   : > { %4822 = vmatmul.msk.f32.gmra.mxu0 %vm708_vm1, %v3138_v53  ;;  %v2680_v0 = vpop.f32.mrf.mxu2  ;;  %v2479_v15 = vadd.f32 %v2405_v14, %v5603_v5  ;;  %v6159_v53 = vld [vmem:[#allocation2 + $0xf8] sm:$0xff]  ;;  %v3140_v5 = vmul.f32 %v5413_v45, %v6040_v48  ;;  %v6182_v45 = vld [vmem:[#allocation2 + $0x107] sm:$0xff] }
 0x264   : > { %v6133_v13 = vadd.f32 %v2680_v0, %v2478_v27 }
 0x265   : > { %4729 = vmatmul.msk.f32.gmra.mxu1 %vm708_vm1, %v6135_v17 }
 0x268   : > { %4763 = vmatmul.msk.f32.gmra.mxu2 %vm708_vm1, %v6139_v11 }
 0x269   : > { %4796 = vmatmul.msk.f32.gmra.mxu3 %vm708_vm1, %v6141_v24 }
 0x26a   : > { %v2408_v61 = vpop.f32.mrf.mxu1 }
 0x26b   : > { %4823 = vmatmul.msk.f32.gmra.mxu0 %vm708_vm1, %v6026_v55  ;;  %v2683_v59 = vpop.f32.mrf.mxu2  ;;  %v6955_v55 = vld [vmem:[#allocation20_spill] sm:$0xff] }
 0x26c   : > { %v6152_v41 = vadd.f32 %v2683_v59, %v2479_v15  ;;  %v2480_v31 = vadd.f32 %v2408_v61, %v6955_v55  ;;  %v6170_v15 = vld [vmem:[#allocation2 + $0xff] sm:$0xff]  ;;  %v6958_v55 = vld [vmem:[#allocation19_spill] sm:$0xff] }
 0x26d   : > { %4730 = vmatmul.msk.f32.gmra.mxu1 %vm708_vm1, %v2250_v7  ;;  %v6176_v59 = vld [vmem:[#allocation2 + $0xf9] sm:$0xff] }
 0x270   : > { %4764 = vmatmul.msk.f32.gmra.mxu2 %vm708_vm1, %v6159_v53 }
 0x271   : > { %4797 = vmatmul.msk.f32.gmra.mxu3 %vm708_vm1, %v2837_v16  ;;  %v6957_v16 = vld [vmem:[#allocation18_spill] sm:$0xff] }
 0x272   : > { %v2411_v27 = vpop.f32.mrf.mxu1 }
 0x273   : > { %4824 = vmatmul.msk.f32.gmra.mxu0 %vm708_vm1, %v3140_v5  ;;  %v2686_v14 = vpop.f32.mrf.mxu2  ;;  %v2481_v48 = vadd.f32 %v2411_v27, %v5650_v8  ;;  %v2252_v5 = vmul.f32 %v6957_v16, %v6182_v45  ;;  %v3142_v8 = vmul.f32 %v5446_v34, %v6076_v40 }
 0x274   : > { %v6168_v0 = vadd.f32 %v2686_v14, %v2480_v31  ;;  %v2839_v31 = vmul.f32 %v6958_v55, %v5669_v57  ;;  %v6194_v14 = vld [vmem:[#allocation2 + $0x108] sm:$0xff]  ;;  %v6211_v55 = vld [vmem:[#allocation2 + $0x110] sm:$0xff] }
 0x275   : > { %4731 = vmatmul.msk.f32.gmra.mxu1 %vm708_vm1, %v6170_v15  ;;  %6959 = vst [vmem:[#allocation15_spill] sm:$0xff] %v6194_v14  ;;  %v6207_v57 = vld [vmem:[#allocation2 + $0x10f] sm:$0xff] }
 0x276   : > { %6961 = vst [vmem:[#allocation21_spill] sm:$0xff] %v6211_v55 }
 0x278   : > { %4765 = vmatmul.msk.f32.gmra.mxu2 %vm708_vm1, %v6174_v19 }
 0x279   : > { %4798 = vmatmul.msk.f32.gmra.mxu3 %vm708_vm1, %v6176_v59 }
 0x27a   : > { %v2414_v61 = vpop.f32.mrf.mxu1 }
 0x27b   : > { %4825 = vmatmul.msk.f32.gmra.mxu0 %vm708_vm1, %v6062_v62  ;;  %v2689_v7 = vpop.f32.mrf.mxu2  ;;  %v2482_v62 = vadd.f32 %v2414_v61, %v5667_v52  ;;  %v6222_v61 = vld [vmem:[#allocation2 + $0x111] sm:$0xff] }
 0x27c   : > { %v6187_v51 = vadd.f32 %v2689_v7, %v2481_v48  ;;  %v6203_v7 = vpop.f32.mrf.mxu0  ;;  %6963 = vst [vmem:[#allocation18_spill] sm:$0xff] %v6222_v61 }
 0x27d   : > { %4732 = vmatmul.msk.f32.gmra.mxu1 %vm708_vm1, %v2252_v5 }
 0x27e   : > { %6956 = vst [vmem:[#allocation16_spill] sm:$0xff] %v6187_v51 }
 0x280   : > { %4766 = vmatmul.msk.f32.gmra.mxu2 %vm708_vm1, %v6194_v14 }
 0x281   : > { %4799 = vmatmul.msk.f32.gmra.mxu3 %vm708_vm1, %v2839_v31  ;;  %v6213_v31 = vld [vmem:[#allocation2 + $0x109] sm:$0xff] }
 0x282   : > { %v2417_v27 = vpop.f32.mrf.mxu1  ;;  %6962 = vst [vmem:[#allocation20_spill] sm:$0xff] %v6213_v31 }
 0x283   : > { %4826 = vmatmul.msk.f32.gmra.mxu0 %vm708_vm1, %v3142_v8  ;;  %v2692_v48 = vpop.f32.mrf.mxu2  ;;  %v2483_v34 = vadd.f32 %v2417_v27, %v5684_v26  ;;  %v3144_v26 = vmul.f32 %v5484_v37, %v6112_v30 }
 0x284   : > { %v6205_v5 = vadd.f32 %v2692_v48, %v2482_v62  ;;  %v3398_v62 = vld [vmem:[#allocation2 + $0x28] sm:$0xff]  ;;  %v6226_v48 = vpop.f32.mrf.mxu0 }
 0x285   : > { %4733 = vmatmul.msk.f32.gmra.mxu1 %vm708_vm1, %v6207_v57 }
 0x286   : > { %6960 = vst [vmem:[#allocation14_spill] sm:$0xff] %v6205_v5  ;;  %v2841_v5 = vmul.f32 %v5663_v60, %v6222_v61 }
 0x288   : > { %4767 = vmatmul.msk.f32.gmra.mxu2 %vm708_vm1, %v6211_v55 }
 0x289   : > { %4800 = vmatmul.msk.f32.gmra.mxu3 %vm708_vm1, %v6213_v31 }
 0x28a   : > { %v2420_v52 = vpop.f32.mrf.mxu1 }
 0x28b   : > { %4827 = vmatmul.msk.f32.gmra.mxu0 %vm708_vm1, %v6100_v44  ;;  %v2695_v40 = vpop.f32.mrf.mxu2  ;;  %v6965_v44 = vld [vmem:[#allocation25_spill] sm:$0xff] }
 0x28c   : > { %v6224_v8 = vadd.f32 %v2695_v40, %v2483_v34  ;;  %v2484_v27 = vadd.f32 %v2420_v52, %v6965_v44  ;;  %v6241_v60 = vpop.f32.mrf.mxu0  ;;  %v6970_v44 = vld [vmem:[#allocation29_spill] sm:$0xff] }
 0x28d   : > { %4838 = vmatmul.msk.f32.vlgmr.msra.gmra.mxu1 %vm708_vm1, %v3398_v62  ;;  %v3399_v62 = vld [vmem:[#allocation2 + $0x30] sm:$0xff] }
 0x28e   : > { %6964 = vst [vmem:[#allocation55_spill] sm:$0xff] %v6224_v8 }
 0x290   : > { %4872 = vmatmul.msk.f32.vlgmr.msra.gmra.mxu2 %vm708_vm1, %v5713_v1  ;;  %v6968_v1 = vld [vmem:[#allocation26_spill] sm:$0xff] }
 0x291   : > { %4801 = vmatmul.msk.f32.gmra.mxu3 %vm708_vm1, %v2841_v5  ;;  %v6967_v5 = vld [vmem:[#allocation3_spill] sm:$0xff] }
 0x292   : > { %v2423_v34 = vpop.f32.mrf.mxu1 }
 0x293   : > { %4828 = vmatmul.msk.f32.gmra.mxu0 %vm708_vm1, %v3144_v26  ;;  %v2698_v40 = vpop.f32.mrf.mxu2  ;;  %v2485_v61 = vadd.f32 %v2423_v34, %v6968_v1  ;;  %v3400_v26 = vld [vmem:[#allocation2 + $0x38] sm:$0xff] }
 0x294   : > { %v6238_v8 = vadd.f32 %v2698_v40, %v2484_v27  ;;  %v3146_v27 = vmul.f32 %v5517_v10, %v6147_v3  ;;  %v6255_v40 = vpop.f32.mrf.mxu0 }
 0x295   : > { %4839 = vmatmul.msk.f32.gmra.mxu1 %vm708_vm1, %v3399_v62  ;;  %v6971_v62 = vld [vmem:[#allocation27_spill] sm:$0xff] }
 0x296   : > { %6966 = vst [vmem:[#allocation25_spill] sm:$0xff] %v6238_v8 }
 0x298   : > { %4873 = vmatmul.msk.f32.gmra.mxu2 %vm708_vm1, %v6967_v5 }
 0x29a   : > { %v2426_v37 = vpop.f32.mrf.mxu1 }
 0x29b   : > { %4829 = vmatmul.msk.f32.gmra.mxu0 %vm708_vm1, %v6135_v17  ;;  %v2701_v30 = vpop.f32.mrf.mxu2  ;;  %v2486_v34 = vadd.f32 %v2426_v37, %v6971_v62  ;;  %v6976_v62 = vld [vmem:[#allocation31_spill] sm:$0xff] }
 0x29c   : > { %v6248_v52 = vadd.f32 %v2701_v30, %v2485_v61  ;;  %v3401_v61 = vld [vmem:[#allocation2 + $0x40] sm:$0xff]  ;;  %v6973_v30 = vld [vmem:[#allocation4_spill] sm:$0xff]  ;;  %v6267_v37 = vpop.f32.mrf.mxu0 }
 0x29d   : > { %4840 = vmatmul.msk.f32.gmra.mxu1 %vm708_vm1, %v3400_v26  ;;  %v6974_v26 = vld [vmem:[#allocation28_spill] sm:$0xff] }
 0x29e   : > { %6969 = vst [vmem:[#allocation3_spill] sm:$0xff] %v6248_v52 }
 0x2a0   : > { %4874 = vmatmul.msk.f32.gmra.mxu2 %vm708_vm1, %v6970_v44 }
 0x2a2   : > { %v2429_v17 = vpop.f32.mrf.mxu1 }
 0x2a3   : > { %4830 = vmatmul.msk.f32.gmra.mxu0 %vm708_vm1, %v3146_v27  ;;  %v2704_v5 = vpop.f32.mrf.mxu2  ;;  %v2487_v44 = vadd.f32 %v2429_v17, %v6974_v26  ;;  %v3148_v17 = vmul.f32 %v6953_v33, %v6182_v45 }
 0x2a4   : > { %v6259_v1 = vadd.f32 %v2704_v5, %v2486_v34  ;;  %v6273_v34 = vpop.f32.mrf.mxu3  ;;  %v6977_v5 = vld [vmem:[#allocation34_spill] sm:$0xff] }
 0x2a5   : > { %4841 = vmatmul.msk.f32.gmra.mxu1 %vm708_vm1, %v3401_v61  ;;  %v6978_v61 = vld [vmem:[#allocation30_spill] sm:$0xff] }
 0x2a6   : > { %6972 = vst [vmem:[#allocation26_spill] sm:$0xff] %v6259_v1 }
 0x2a8   : > { %4875 = vmatmul.msk.f32.gmra.mxu2 %vm708_vm1, %v6973_v30 }
 0x2aa   : > { %v2432_v10 = vpop.f32.mrf.mxu1 }
 0x2ab   : > { %4831 = vmatmul.msk.f32.gmra.mxu0 %vm708_vm1, %v6170_v15  ;;  %v2707_v3 = vpop.f32.mrf.mxu2  ;;  %v2488_v30 = vadd.f32 %v2432_v10, %v6978_v61  ;;  %v3118_v61 = vld [vmem:[#allocation2 + $0x117] sm:$0xff] }
 0x2ac   : > { %v6269_v27 = vadd.f32 %v2707_v3, %v2487_v44  ;;  %v6283_v44 = vpop.f32.mrf.mxu0  ;;  %v6980_v3 = vld [vmem:[#allocation33_spill] sm:$0xff] }
 0x2ad   : > { %4842 = vmatmul.msk.f32.gmra.mxu1 %vm708_vm1, %v6976_v62  ;;  %v6981_v62 = vld [vmem:[#allocation5_spill] sm:$0xff] }
 0x2ae   : > { %6975 = vst [vmem:[#allocation29_spill] sm:$0xff] %v6269_v27  ;;  %v6982_v27 = vld [vmem:[#allocation32_spill] sm:$0xff] }
 0x2b0   : > { %4876 = vmatmul.msk.f32.gmra.mxu2 %vm708_vm1, %v6977_v5  ;;  %v6289_v5 = vpop.f32.mrf.mxu3 }
 0x2b2   : > { %v2435_v15 = vpop.f32.mrf.mxu1 }
 0x2b3   : > { %4832 = vmatmul.msk.f32.gmra.mxu0 %vm708_vm1, %v3148_v17  ;;  %v2710_v26 = vpop.f32.mrf.mxu2  ;;  %v2489_v33 = vadd.f32 %v2435_v15, %v6982_v27 }
 0x2b4   : > { %v6281_v1 = vadd.f32 %v2710_v26, %v2488_v30  ;;  %v6984_v30 = vld [vmem:[#allocation36_spill] sm:$0xff]  ;;  %v6298_v26 = vpop.f32.mrf.mxu0 }
 0x2b5   : > { %4843 = vmatmul.msk.f32.gmra.mxu1 %vm708_vm1, %v6980_v3  ;;  %v6985_v3 = vld [vmem:[#allocation39_spill] sm:$0xff] }
 0x2b6   : > { %6979 = vst [vmem:[#allocation27_spill] sm:$0xff] %v6281_v1  ;;  %v6986_v1 = vld [vmem:[#allocation35_spill] sm:$0xff] }
 0x2b8   : > { %4877 = vmatmul.msk.f32.gmra.mxu2 %vm708_vm1, %v6981_v62  ;;  %v3150_v62 = vmul.f32 %v6957_v16, %v3118_v61  ;;  %v6305_v52 = vpop.f32.mrf.mxu3  ;;  %v6990_v16 = vld [vmem:[#allocation37_spill] sm:$0xff] }
 0x2ba   : > { %v2438_v45 = vpop.f32.mrf.mxu1 }
 0x2bb   : > { %4833 = vmatmul.msk.f32.gmra.mxu0 %vm708_vm1, %v6207_v57  ;;  %v2713_v10 = vpop.f32.mrf.mxu2  ;;  %v2490_v27 = vadd.f32 %v2438_v45, %v6986_v1 }
 0x2bc   : > { %v6294_v17 = vadd.f32 %v2713_v10, %v2489_v33  ;;  %v6988_v10 = vld [vmem:[#allocation38_spill] sm:$0xff] }
 0x2bd   : > { %4844 = vmatmul.msk.f32.gmra.mxu1 %vm708_vm1, %v6984_v30  ;;  %v3119_v30 = vld [vmem:[#allocation2 + $0x11f] sm:$0xff] }
 0x2be   : > { %6983 = vst [vmem:[#allocation4_spill] sm:$0xff] %v6294_v17  ;;  %v6989_v17 = vld [vmem:[#allocation6_spill] sm:$0xff] }
 0x2c0   : > { %4878 = vmatmul.msk.f32.gmra.mxu2 %vm708_vm1, %v6985_v3  ;;  %v6313_v3 = vpop.f32.mrf.mxu0  ;;  %v6319_v8 = vpop.f32.mrf.mxu3 }
 0x2c2   : > { %v2441_v57 = vpop.f32.mrf.mxu1 }
 0x2c3   : > { %4834 = vmatmul.msk.f32.gmra.mxu0 %vm708_vm1, %v3150_v62  ;;  %v2716_v15 = vpop.f32.mrf.mxu2  ;;  %v2491_v61 = vadd.f32 %v2441_v57, %v6990_v16  ;;  %v6996_v57 = vld [vmem:[#allocation43_spill] sm:$0xff] }
 0x2c4   : > { %v6307_v33 = vadd.f32 %v2716_v15, %v2490_v27  ;;  %v6992_v27 = vld [vmem:[#allocation41_spill] sm:$0xff]  ;;  %v6993_v15 = vld [vmem:[#allocation44_spill] sm:$0xff]  ;;  %v6997_v16 = vld [vmem:[#allocation7_spill] sm:$0xff] }
 0x2c5   : > { %4845 = vmatmul.msk.f32.gmra.mxu1 %vm708_vm1, %v6988_v10  ;;  %v6994_v10 = vld [vmem:[#allocation40_spill] sm:$0xff] }
 0x2c6   : > { %6987 = vst [vmem:[#allocation28_spill] sm:$0xff] %v6307_v33 }
 0x2c8   : > { %4879 = vmatmul.msk.f32.gmra.mxu2 %vm708_vm1, %v6989_v17 }
 0x2ca   : > { %v2444_v1 = vpop.f32.mrf.mxu1 }
 0x2cb   : > { %4835 = vmatmul.msk.f32.gmra.mxu0 %vm708_vm1, %v3119_v30  ;;  %v2719_v45 = vpop.f32.mrf.mxu2  ;;  %v2492_v17 = vadd.f32 %v2444_v1, %v6994_v10  ;;  %v6330_v30 = vpop.f32.mrf.mxu3  ;;  %v7001_v1 = vld [vmem:[#allocation49_spill] sm:$0xff] }
 0x2cc   : > { %v6317_v62 = vadd.f32 %v2719_v45, %v2491_v61  ;;  %v6998_v61 = vld [vmem:[#allocation42_spill] sm:$0xff]  ;;  %v7003_v10 = vld [vmem:[#allocation45_spill] sm:$0xff] }
 0x2cd   : > { %4846 = vmatmul.msk.f32.gmra.mxu1 %vm708_vm1, %v6992_v27 }
 0x2ce   : > { %6991 = vst [vmem:[#allocation31_spill] sm:$0xff] %v6317_v62 }
 0x2d0   : > { %4880 = vmatmul.msk.f32.gmra.mxu2 %vm708_vm1, %v6993_v15  ;;  %v7000_v15 = vld [vmem:[#allocation46_spill] sm:$0xff] }
 0x2d2   : > { %v2447_v33 = vpop.f32.mrf.mxu1 }
 0x2d3   : > { %v2722_v55 = vpop.f32.mrf.mxu2  ;;  %v2493_v45 = vadd.f32 %v2447_v33, %v6998_v61  ;;  %v7006_v33 = vld [vmem:[#allocation8_spill] sm:$0xff] }
 0x2d4   : > { %v6326_v51 = vadd.f32 %v2722_v55, %v2492_v17  ;;  %v6341_v55 = vpop.f32.mrf.mxu3 }
 0x2d5   : > { %4847 = vmatmul.msk.f32.gmra.mxu1 %vm708_vm1, %v6996_v57  ;;  %7002 = vst [vmem:[#allocation33_spill] sm:$0xff] %v6341_v55  ;;  %v7010_v55 = vld [vmem:[#allocation51_spill] sm:$0xff] }
 0x2d6   : > { %6995 = vst [vmem:[#allocation34_spill] sm:$0xff] %v6326_v51 }
 0x2d8   : > { %4881 = vmatmul.msk.f32.gmra.mxu2 %vm708_vm1, %v6997_v16  ;;  %v7005_v16 = vld [vmem:[#allocation48_spill] sm:$0xff] }
 0x2da   : > { %v2450_v27 = vpop.f32.mrf.mxu1 }
 0x2db   : > { %v2725_v62 = vpop.f32.mrf.mxu2  ;;  %v2494_v17 = vadd.f32 %v2450_v27, %v7003_v10  ;;  %v7011_v27 = vld [vmem:[#allocation54_spill] sm:$0xff] }
 0x2dc   : > { %v6335_v31 = vadd.f32 %v2725_v62, %v2493_v45  ;;  %v7007_v62 = vld [vmem:[#allocation47_spill] sm:$0xff] }
 0x2dd   : > { %4848 = vmatmul.msk.f32.gmra.mxu1 %vm708_vm1, %v7000_v15 }
 0x2de   : > { %6999 = vst [vmem:[#allocation30_spill] sm:$0xff] %v6335_v31  ;;  %v6351_v31 = vpop.f32.mrf.mxu3 }
 0x2df   : > { %7008 = vst [vmem:[#allocation32_spill] sm:$0xff] %v6351_v31 }
 0x2e0   : > { %4882 = vmatmul.msk.f32.gmra.mxu2 %vm708_vm1, %v7001_v1 }
 0x2e2   : > { %v2453_v57 = vpop.f32.mrf.mxu1 }
 0x2e3   : > { %v2728_v51 = vpop.f32.mrf.mxu2  ;;  %v2495_v61 = vadd.f32 %v2453_v57, %v7007_v62  ;;  %v7013_v57 = vld [vmem:[#allocation53_spill] sm:$0xff] }
 0x2e4   : > { %v6344_v14 = vadd.f32 %v2728_v51, %v2494_v17  ;;  %v7012_v51 = vld [vmem:[#allocation50_spill] sm:$0xff]  ;;  %v7014_v62 = vld [vmem:[#allocation9_spill] sm:$0xff] }
 0x2e5   : > { %4849 = vmatmul.msk.f32.gmra.mxu1 %vm708_vm1, %v7005_v16 }
 0x2e6   : > { %7004 = vst [vmem:[#allocation5_spill] sm:$0xff] %v6344_v14 }
 0x2e8   : > { %4883 = vmatmul.msk.f32.gmra.mxu2 %vm708_vm1, %v7006_v33  ;;  %v6362_v33 = vpop.f32.mrf.mxu3 }
 0x2ea   : > { %v2456_v45 = vpop.f32.mrf.mxu1 }
 0x2eb   : > { %v2731_v15 = vpop.f32.mrf.mxu2  ;;  %v2496_v10 = vadd.f32 %v2456_v45, %v7012_v51 }
 0x2ec   : > { %v6353_v1 = vadd.f32 %v2731_v15, %v2495_v61  ;;  %v7015_v61 = vld [vmem:[#allocation52_spill] sm:$0xff] }
 0x2ed   : > { %4850 = vmatmul.msk.f32.gmra.mxu1 %vm708_vm1, %v7010_v55 }
 0x2ee   : > { %7009 = vst [vmem:[#allocation36_spill] sm:$0xff] %v6353_v1 }
 0x2f0   : > { %4884 = vmatmul.msk.f32.gmra.mxu2 %vm708_vm1, %v7011_v27  ;;  %v6373_v45 = vpop.f32.mrf.mxu3 }
 0x2f2   : > { %v2459_v17 = vpop.f32.mrf.mxu1 }
 0x2f3   : > { %v2734_v16 = vpop.f32.mrf.mxu2  ;;  %v2497_v15 = vadd.f32 %v2459_v17, %v7015_v61  ;;  %v7016_v17 = vld [vmem:[#allocation10_spill] sm:$0xff] }
 0x2f4   : > { %v6360_v14 = vadd.f32 %v2734_v16, %v2496_v10 }
 0x2f5   : > { %4851 = vmatmul.msk.f32.gmra.mxu1 %vm708_vm1, %v7013_v57 }
 0x2f8   : > { %4885 = vmatmul.msk.f32.gmra.mxu2 %vm708_vm1, %v7014_v62 }
 0x2fa   : > { %v2462_v55 = vpop.f32.mrf.mxu1 }
 0x2fb   : > { %v2737_v1 = vpop.f32.mrf.mxu2  ;;  %v2498_v27 = vadd.f32 %v2462_v55, %v5940_v50  ;;  %v3366_v50 = vadd.f32 %v6203_v7, %v5974_v9 }
 0x2fc   : > { %v6369_v31 = vadd.f32 %v2737_v1, %v2497_v15  ;;  %v6384_v1 = vpop.f32.mrf.mxu3 }
 0x2fd   : > { %4852 = vmatmul.msk.f32.gmra.mxu1 %vm708_vm1, %v5944_v58 }
 0x300   : > { %4886 = vmatmul.msk.f32.gmra.mxu2 %vm708_vm1, %v5962_v18  ;;  %v6398_v18 = vld [vmem:[%s6862_s6] ss:$0 sm:$0xff] }
 0x302   : > { %v2465_v51 = vpop.f32.mrf.mxu1 }
 0x303   : > { %v2740_v10 = vpop.f32.mrf.mxu2  ;;  %v2499_v58 = vadd.f32 %v2465_v51, %v5954_v12  ;;  %v7017_v51 = vld [vmem:[#allocation11_spill] sm:$0xff] }
 0x304   : > { %v6378_v16 = vadd.f32 %v2740_v10, %v2498_v27  ;;  %v6400_v55 = vpop.f32.mrf.mxu3 }
 0x305   : > { %4853 = vmatmul.msk.f32.gmra.mxu1 %vm708_vm1, %v5960_v29 }
 0x308   : > { %4887 = vmatmul.msk.f32.gmra.mxu2 %vm708_vm1, %v7016_v17 }
 0x30a   : > { %v3548_v62 = vpop.f32.mrf.mxu1 }
 0x30b   : > { %v2743_v57 = vpop.f32.mrf.mxu2  ;;  %v3644_v29 = vadd.f32 %v3548_v62, %v3366_v50  ;;  %v6416_v50 = vpop.f32.mrf.mxu0 }
 0x30c   : > { %v6387_v61 = vadd.f32 %v2743_v57, %v2499_v58 }
 0x30d   : > { %4854 = vmatmul.msk.f32.gmra.mxu1 %vm708_vm1, %v5980_v28  ;;  %v6405_v28 = vld [vmem:[%s6863_s7] ss:$0 sm:$0xff] }
 0x310   : > { %4888 = vmatmul.msk.f32.gmra.mxu2 %vm708_vm1, %v5998_v47  ;;  %v3367_v47 = vadd.f32 %v6226_v48, %v5988_v6  ;;  %v3368_v6 = vadd.f32 %v6241_v60, %v6010_v23  ;;  %v3369_v60 = vadd.f32 %v6255_v40, %v6024_v49  ;;  %v3370_v49 = vadd.f32 %v6267_v37, %v6046_v42  ;;  %v7019_v37 = vld [vmem:[#allocation13_spill] sm:$0xff] }
 0x311   : > { %v3371_v42 = vadd.f32 %v6283_v44, %v6060_v36  ;;  %v3372_v36 = vadd.f32 %v6298_v26, %v6082_v46  ;;  %v3373_v46 = vadd.f32 %v6313_v3, %v6098_v38  ;;  %v7020_v26 = vld [vmem:[#allocation17_spill] sm:$0xff] }
 0x312   : > { %v3551_v12 = vpop.f32.mrf.mxu1 }
 0x313   : > { %v3858_v15 = vpop.f32.mrf.mxu2  ;;  %v3645_v10 = vadd.f32 %v3551_v12, %v3367_v47  ;;  %v6434_v23 = vpop.f32.mrf.mxu0 }
 0x314   : > { %v3954_v27 = vadd.f32 %v3858_v15, %v3644_v29  ;;  %v6418_v29 = vpop.f32.mrf.mxu3 }
 0x315   : > { %4855 = vmatmul.msk.f32.gmra.mxu1 %vm708_vm1, %v5996_v32 }
 0x316   : > { %v3990_v9 = vmul.f32 %v6398_v18, %v3954_v27 }
 0x318   : > { %v4026_v7 = vadd.f32 %v6405_v28, %v3990_v9  ;;  %4889 = vmatmul.msk.f32.gmra.mxu2 %vm708_vm1, %v7017_v51  ;;  %v7018_v51 = vld [vmem:[#allocation12_spill] sm:$0xff] }
 0x31a   : > { %v4058_v17 = vmax.f32 %v4026_v7, 0.0  ;;  %v3554_v58 = vpop.f32.mrf.mxu1 }
 0x31b   : > { %v3861_v57 = vpop.f32.mrf.mxu2  ;;  %v3646_v12 = vadd.f32 %v3554_v58, %v3368_v6 }
 0x31c   : > { %v3955_v62 = vadd.f32 %v3861_v57, %v3645_v10  ;;  %4905 = vmatmul.msk.f32.vlgmr.msra.gmra.mxu3 %vm708_vm1, %v4058_v17 }
 0x31d   : > { %4856 = vmatmul.msk.f32.gmra.mxu1 %vm708_vm1, %v6016_v22  ;;  %v6436_v22 = vpop.f32.mrf.mxu3 }
 0x31e   : > { %v3991_v32 = vmul.f32 %v6398_v18, %v3955_v62 }
 0x320   : > { %v4027_v48 = vadd.f32 %v6405_v28, %v3991_v32  ;;  %4890 = vmatmul.msk.f32.gmra.mxu2 %vm708_vm1, %v6034_v21  ;;  %v6450_v32 = vpop.f32.mrf.mxu0 }
 0x322   : > { %v4059_v15 = vmax.f32 %v4027_v48, 0.0  ;;  %v3557_v27 = vpop.f32.mrf.mxu1 }
 0x323   : > { %v3864_v9 = vpop.f32.mrf.mxu2  ;;  %v3647_v10 = vadd.f32 %v3557_v27, %v3369_v60 }
 0x324   : > { %v3956_v47 = vadd.f32 %v3864_v9, %v3646_v12  ;;  %4906 = vmatmul.msk.f32.gmra.mxu3 %vm708_vm1, %v4059_v15 }
 0x325   : > { %4857 = vmatmul.msk.f32.gmra.mxu1 %vm708_vm1, %v6032_v20  ;;  %v6452_v6 = vpop.f32.mrf.mxu3 }
 0x326   : > { %v3992_v7 = vmul.f32 %v6398_v18, %v3956_v47 }
 0x328   : > { %v4028_v21 = vadd.f32 %v6405_v28, %v3992_v7  ;;  %4891 = vmatmul.msk.f32.gmra.mxu2 %vm708_vm1, %v7018_v51  ;;  %v6463_v51 = vpop.f32.mrf.mxu0 }
 0x32a   : > { %v4060_v17 = vmax.f32 %v4028_v21, 0.0  ;;  %v3560_v58 = vpop.f32.mrf.mxu1 }
 0x32b   : > { %v3867_v57 = vpop.f32.mrf.mxu2  ;;  %v3648_v48 = vadd.f32 %v3560_v58, %v3370_v49 }
 0x32c   : > { %v3957_v62 = vadd.f32 %v3867_v57, %v3647_v10  ;;  %4907 = vmatmul.msk.f32.gmra.mxu3 %vm708_vm1, %v4060_v17 }
 0x32d   : > { %4858 = vmatmul.msk.f32.gmra.mxu1 %vm708_vm1, %v6052_v25  ;;  %v6465_v10 = vpop.f32.mrf.mxu3 }
 0x32e   : > { %v3993_v20 = vmul.f32 %v6398_v18, %v3957_v62 }
 0x330   : > { %v4029_v40 = vadd.f32 %v6405_v28, %v3993_v20  ;;  %4892 = vmatmul.msk.f32.gmra.mxu2 %vm708_vm1, %v6070_v54 }
 0x332   : > { %v4061_v12 = vmax.f32 %v4029_v40, 0.0  ;;  %v3563_v15 = vpop.f32.mrf.mxu1  ;;  %v6477_v40 = vpop.f32.mrf.mxu0 }
 0x333   : > { %v3870_v27 = vpop.f32.mrf.mxu2  ;;  %v3649_v47 = vadd.f32 %v3563_v15, %v3371_v42  ;;  %v3064_v42 = vadd.f32 %v6273_v34, %v6096_v2 }
 0x334   : > { %v3958_v9 = vadd.f32 %v3870_v27, %v3648_v48  ;;  %4908 = vmatmul.msk.f32.gmra.mxu3 %vm708_vm1, %v4061_v12 }
 0x335   : > { %4859 = vmatmul.msk.f32.gmra.mxu1 %vm708_vm1, %v6068_v63  ;;  %v6479_v48 = vpop.f32.mrf.mxu3  ;;  %v3374_v38 = vadd.f32 %v6416_v50, %v3064_v42 }
 0x336   : > { %v3994_v25 = vmul.f32 %v6398_v18, %v3958_v9 }
 0x338   : > { %v4030_v54 = vadd.f32 %v6405_v28, %v3994_v25  ;;  %4893 = vmatmul.msk.f32.gmra.mxu2 %vm708_vm1, %v7019_v37 }
 0x33a   : > { %v4062_v7 = vmax.f32 %v4030_v54, 0.0  ;;  %v3566_v60 = vpop.f32.mrf.mxu1  ;;  %v6496_v3 = vpop.f32.mrf.mxu0 }
 0x33b   : > { %v3873_v21 = vpop.f32.mrf.mxu2  ;;  %v3650_v58 = vadd.f32 %v3566_v60, %v3372_v36 }
 0x33c   : > { %v3959_v17 = vadd.f32 %v3873_v21, %v3649_v47  ;;  %4909 = vmatmul.msk.f32.gmra.mxu3 %vm708_vm1, %v4062_v7 }
 0x33d   : > { %4860 = vmatmul.msk.f32.gmra.mxu1 %vm708_vm1, %v6087_v4  ;;  %v6498_v54 = vpop.f32.mrf.mxu3 }
 0x33e   : > { %v3995_v63 = vmul.f32 %v6398_v18, %v3959_v17 }
 0x340   : > { %v4031_v44 = vadd.f32 %v6405_v28, %v3995_v63  ;;  %4894 = vmatmul.msk.f32.gmra.mxu2 %vm708_vm1, %v6106_v39 }
 0x342   : > { %v4063_v57 = vmax.f32 %v4031_v44, 0.0  ;;  %v3569_v62 = vpop.f32.mrf.mxu1  ;;  %v6513_v63 = vpop.f32.mrf.mxu0 }
 0x343   : > { %v3876_v20 = vpop.f32.mrf.mxu2  ;;  %v3651_v12 = vadd.f32 %v3569_v62, %v3373_v46 }
 0x344   : > { %v3960_v49 = vadd.f32 %v3876_v20, %v3650_v58  ;;  %4910 = vmatmul.msk.f32.gmra.mxu3 %vm708_vm1, %v4063_v57 }
 0x345   : > { %4861 = vmatmul.msk.f32.gmra.mxu1 %vm708_vm1, %v6104_v35  ;;  %v6515_v36 = vpop.f32.mrf.mxu3 }
 0x346   : > { %v3996_v4 = vmul.f32 %v6398_v18, %v3960_v49 }
 0x348   : > { %v4032_v39 = vadd.f32 %v6405_v28, %v3996_v4  ;;  %4895 = vmatmul.msk.f32.gmra.mxu2 %vm708_vm1, %v7020_v26 }
 0x34a   : > { %v4064_v15 = vmax.f32 %v4032_v39, 0.0  ;;  %v3572_v27 = vpop.f32.mrf.mxu1  ;;  %v6527_v26 = vpop.f32.mrf.mxu0 }
 0x34b   : > { %v3879_v9 = vpop.f32.mrf.mxu2  ;;  %v3652_v47 = vadd.f32 %v3572_v27, %v3374_v38  ;;  %v7023_v38 = vld [vmem:[#allocation15_spill] sm:$0xff] }
 0x34c   : > { %v3961_v25 = vadd.f32 %v3879_v9, %v3651_v12  ;;  %4911 = vmatmul.msk.f32.gmra.mxu3 %vm708_vm1, %v4064_v15  ;;  %v7022_v15 = vld [vmem:[#allocation24_spill] sm:$0xff] }
 0x34d   : > { %4862 = vmatmul.msk.f32.gmra.mxu1 %vm708_vm1, %v6124_v43  ;;  %v3065_v43 = vadd.f32 %v6289_v5, %v6117_v56  ;;  %v6529_v12 = vpop.f32.mrf.mxu3 }
 0x34e   : > { %v3997_v35 = vmul.f32 %v6398_v18, %v3961_v25 }
 0x34f   : > { %v3375_v21 = vadd.f32 %v6434_v23, %v3065_v43  ;;  %v7025_v43 = vld [vmem:[#allocation16_spill] sm:$0xff] }
 0x350   : > { %v4033_v37 = vadd.f32 %v6405_v28, %v3997_v35  ;;  %4896 = vmatmul.msk.f32.gmra.mxu2 %vm708_vm1, %v6141_v24  ;;  %v7021_v24 = vld [vmem:[#allocation22_spill] sm:$0xff] }
 0x352   : > { %v4065_v7 = vmax.f32 %v4033_v37, 0.0  ;;  %v3575_v60 = vpop.f32.mrf.mxu1 }
 0x353   : > { %v3882_v2 = vpop.f32.mrf.mxu2  ;;  %v3653_v44 = vadd.f32 %v3575_v60, %v3375_v21 }
 0x354   : > { %v3962_v34 = vadd.f32 %v3882_v2, %v3652_v47  ;;  %4912 = vmatmul.msk.f32.gmra.mxu3 %vm708_vm1, %v4065_v7  ;;  %v7024_v7 = vld [vmem:[#allocation20_spill] sm:$0xff] }
 0x355   : > { %4863 = vmatmul.msk.f32.gmra.mxu1 %vm708_vm1, %v6139_v11  ;;  %v3066_v11 = vadd.f32 %v6305_v52, %v6133_v13 }
 0x356   : > { %v3998_v50 = vmul.f32 %v6398_v18, %v3962_v34 }
 0x357   : > { %v3376_v62 = vadd.f32 %v6450_v32, %v3066_v11 }
 0x358   : > { %v4034_v17 = vadd.f32 %v6405_v28, %v3998_v50  ;;  %4897 = vmatmul.msk.f32.gmra.mxu2 %vm708_vm1, %v7021_v24  ;;  %v7026_v50 = vld [vmem:[#allocation33_spill] sm:$0xff] }
 0x359   : > { %v3069_v21 = vadd.f32 %v7026_v50, %v7025_v43  ;;  %v7027_v24 = vld [vmem:[#allocation21_spill] sm:$0xff] }
 0x35a   : > { %v4066_v58 = vmax.f32 %v4034_v17, 0.0  ;;  %v3578_v57 = vpop.f32.mrf.mxu1 }
 0x35b   : > { %v3885_v56 = vpop.f32.mrf.mxu2  ;;  %v3654_v49 = vadd.f32 %v3578_v57, %v3376_v62  ;;  %v3379_v57 = vadd.f32 %v6496_v3, %v3069_v21 }
 0x35c   : > { %v3963_v5 = vadd.f32 %v3885_v56, %v3653_v44  ;;  %4913 = vmatmul.msk.f32.gmra.mxu3 %vm708_vm1, %v4066_v58  ;;  %v7029_v44 = vld [vmem:[#allocation19_spill] sm:$0xff] }
 0x35d   : > { %4864 = vmatmul.msk.f32.gmra.mxu1 %vm708_vm1, %v6159_v53  ;;  %v3067_v53 = vadd.f32 %v6319_v8, %v6152_v41  ;;  %v3068_v41 = vadd.f32 %v6330_v30, %v6168_v0  ;;  %v6544_v8 = vpop.f32.mrf.mxu0 }
 0x35e   : > { %v3999_v23 = vmul.f32 %v6398_v18, %v3963_v5 }
 0x35f   : > { %v3378_v37 = vadd.f32 %v6477_v40, %v3068_v41  ;;  %v7028_v40 = vld [vmem:[#allocation18_spill] sm:$0xff] }
 0x360   : > { %v4035_v20 = vadd.f32 %v6405_v28, %v3999_v23  ;;  %4898 = vmatmul.msk.f32.gmra.mxu2 %vm708_vm1, %v6176_v59  ;;  %v3377_v59 = vadd.f32 %v6463_v51, %v3067_v53  ;;  %v3737_v58 = vmul.f32 %v7029_v44, %v7028_v40  ;;  %v7031_v53 = vld [vmem:[#allocation32_spill] sm:$0xff] }
 0x362   : > { %v4067_v4 = vmax.f32 %v4035_v20, 0.0  ;;  %v3581_v46 = vpop.f32.mrf.mxu1 }
 0x363   : > { %v3888_v39 = vpop.f32.mrf.mxu2  ;;  %v3655_v27 = vadd.f32 %v3581_v46, %v3377_v59 }
 0x364   : > { %v3964_v13 = vadd.f32 %v3888_v39, %v3654_v49  ;;  %4914 = vmatmul.msk.f32.gmra.mxu3 %vm708_vm1, %v4067_v4  ;;  %v3428_v4 = vld [vmem:[#allocation2 + $0x118] sm:$0xff] }
 0x365   : > { %4865 = vmatmul.msk.f32.gmra.mxu1 %vm708_vm1, %v6174_v19  ;;  %v6546_v19 = vpop.f32.mrf.mxu3  ;;  %v3321_v56 = vpop.f32.mrf.mxu0  ;;  %v3706_v39 = vld [vmem:[#allocation2 + $0x119] sm:$0xff] }
 0x366   : > { %v4000_v52 = vmul.f32 %v6398_v18, %v3964_v13  ;;  %v7030_v13 = vld [vmem:[#allocation14_spill] sm:$0xff] }
 0x368   : > { %v4036_v32 = vadd.f32 %v6405_v28, %v4000_v52  ;;  %4899 = vmatmul.msk.f32.gmra.mxu2 %vm708_vm1, %v7022_v15  ;;  %v3070_v52 = vadd.f32 %v7031_v53, %v7030_v13  ;;  %v3707_v15 = vld [vmem:[#allocation2 + $0x121] sm:$0xff] }
 0x36a   : > { %v4068_v9 = vmax.f32 %v4036_v32, 0.0  ;;  %v3584_v25 = vpop.f32.mrf.mxu1  ;;  %v3380_v59 = vadd.f32 %v6513_v63, %v3070_v52 }
 0x36b   : > { %v3891_v42 = vpop.f32.mrf.mxu2  ;;  %v3656_v60 = vadd.f32 %v3584_v25, %v3378_v37  ;;  %v7032_v37 = vld [vmem:[#allocation23_spill] sm:$0xff] }
 0x36c   : > { %v3965_v35 = vadd.f32 %v3891_v42, %v3655_v27  ;;  %4915 = vmatmul.msk.f32.gmra.mxu3 %vm708_vm1, %v4068_v9 }
 0x36d   : > { %4866 = vmatmul.msk.f32.gmra.mxu1 %vm708_vm1, %v7023_v38  ;;  %v6564_v5 = vpop.f32.mrf.mxu3  ;;  %v3324_v27 = vpop.f32.mrf.mxu0 }
 0x36e   : > { %v4001_v51 = vmul.f32 %v6398_v18, %v3965_v35 }
 0x370   : > { %v4037_v47 = vadd.f32 %v6405_v28, %v4001_v51  ;;  %4900 = vmatmul.msk.f32.gmra.mxu2 %vm708_vm1, %v7024_v7  ;;  %v3429_v51 = vld [vmem:[#allocation2 + $0x120] sm:$0xff]  ;;  %v7033_v7 = vld [vmem:[#allocation55_spill] sm:$0xff] }
 0x371   : > { %v3071_v63 = vadd.f32 %v6362_v33, %v7033_v7  ;;  %v7034_v33 = vld [vmem:[#allocation25_spill] sm:$0xff] }
 0x372   : > { %v4069_v2 = vmax.f32 %v4037_v47, 0.0  ;;  %v3587_v34 = vpop.f32.mrf.mxu1  ;;  %v3739_v47 = vmul.f32 %v7032_v37, %v3707_v15  ;;  %v3072_v40 = vadd.f32 %v6373_v45, %v7034_v33  ;;  %v7036_v15 = vld [vmem:[#allocation26_spill] sm:$0xff] }
 0x373   : > { %v3894_v0 = vpop.f32.mrf.mxu2  ;;  %v3657_v23 = vadd.f32 %v3587_v34, %v3379_v57 }
 0x374   : > { %v3966_v30 = vadd.f32 %v3894_v0, %v3656_v60  ;;  %4916 = vmatmul.msk.f32.gmra.mxu3 %vm708_vm1, %v4069_v2  ;;  %v3381_v2 = vadd.f32 %v6527_v26, %v3071_v63  ;;  %v3382_v26 = vadd.f32 %v6544_v8, %v3072_v40 }
 0x375   : > { %4867 = vmatmul.msk.f32.gmra.mxu1 %vm708_vm1, %v7027_v24  ;;  %v6576_v9 = vpop.f32.mrf.mxu3  ;;  %v3327_v21 = vpop.f32.mrf.mxu0 }
 0x376   : > { %v4002_v17 = vmul.f32 %v6398_v18, %v3966_v30 }
 0x378   : > { %v4038_v11 = vadd.f32 %v6405_v28, %v4002_v17  ;;  %4901 = vmatmul.msk.f32.gmra.mxu2 %vm708_vm1, %v3737_v58 }
 0x37a   : > { %v4070_v62 = vmax.f32 %v4038_v11, 0.0  ;;  %v3590_v20 = vpop.f32.mrf.mxu1 }
 0x37b   : > { %v3897_v49 = vpop.f32.mrf.mxu2  ;;  %v3658_v25 = vadd.f32 %v3590_v20, %v3380_v59 }
 0x37c   : > { %v3967_v46 = vadd.f32 %v3897_v49, %v3657_v23  ;;  %4917 = vmatmul.msk.f32.gmra.mxu3 %vm708_vm1, %v4070_v62  ;;  %v7035_v49 = vld [vmem:[#allocation3_spill] sm:$0xff] }
 0x37d   : > { %4868 = vmatmul.msk.f32.gmra.mxu1 %vm708_vm1, %v3428_v4  ;;  %v6588_v24 = vpop.f32.mrf.mxu3  ;;  %v3073_v4 = vadd.f32 %v6384_v1, %v7035_v49  ;;  %v6606_v1 = vld [vmem:[%s6864_s8] ss:$0 sm:$0xff] }
 0x37e   : > { %v4003_v3 = vmul.f32 %v6398_v18, %v3967_v46  ;;  %v3330_v46 = vpop.f32.mrf.mxu0 }
 0x37f   : > { %v3383_v13 = vadd.f32 %v3321_v56, %v3073_v4 }
 0x380   : > { %v4039_v32 = vadd.f32 %v6405_v28, %v4003_v3  ;;  %4902 = vmatmul.msk.f32.gmra.mxu2 %vm708_vm1, %v3706_v39 }
 0x382   : > { %v4071_v42 = vmax.f32 %v4039_v32, 0.0  ;;  %v3593_v35 = vpop.f32.mrf.mxu1 }
 0x383   : > { %v3900_v41 = vpop.f32.mrf.mxu2  ;;  %v3659_v0 = vadd.f32 %v3593_v35, %v3381_v2  ;;  %v4972_v2 = vld [vmem:[%s5090_s22] sm:$0xff] }
 0x384   : > { %v3968_v38 = vadd.f32 %v3900_v41, %v3658_v25  ;;  %4918 = vmatmul.msk.f32.gmra.mxu3 %vm708_vm1, %v4071_v42  ;;  %v3074_v25 = vadd.f32 %v6400_v55, %v7036_v15  ;;  %v6614_v42 = vld [vmem:[%s6865_s9] ss:$0 sm:$0xff] }
 0x385   : > { %4869 = vmatmul.msk.f32.gmra.mxu1 %vm708_vm1, %v3429_v51  ;;  %v6599_v45 = vpop.f32.mrf.mxu3 }
 0x386   : > { %v4004_v60 = vmul.f32 %v6398_v18, %v3968_v38  ;;  %v3384_v41 = vadd.f32 %v3324_v27, %v3074_v25  ;;  %v3333_v51 = vpop.f32.mrf.mxu0  ;;  %v7037_v27 = vld [vmem:[#allocation29_spill] sm:$0xff] }
 0x388   : > { %v4040_v34 = vadd.f32 %v6405_v28, %v4004_v60  ;;  %4903 = vmatmul.msk.f32.gmra.mxu2 %vm708_vm1, %v3739_v47 }
 0x38a   : > { %v4072_v30 = vmax.f32 %v4040_v34, 0.0  ;;  %v3596_v43 = vpop.f32.mrf.mxu1 }
 0x38b   : > { %v3903_v50 = vpop.f32.mrf.mxu2  ;;  %v3660_v57 = vadd.f32 %v3596_v43, %v3382_v26 }
 0x38c   : > { %v3969_v17 = vadd.f32 %v3903_v50, %v3659_v0  ;;  %4919 = vmatmul.msk.f32.gmra.mxu3 %vm708_vm1, %v4072_v30  ;;  %v3075_v30 = vadd.f32 %v6418_v29, %v7037_v27  ;;  %v4973_v29 = vld [vmem:[%s5090_s22 + $0x8] sm:$0xff] }
 0x38e   : > { %v4005_v44 = vmul.f32 %v6398_v18, %v3969_v17  ;;  %v3385_v33 = vadd.f32 %v3327_v21, %v3075_v30  ;;  %v3336_v26 = vpop.f32.mrf.mxu0  ;;  %v7038_v21 = vld [vmem:[#allocation27_spill] sm:$0xff] }
 0x38f   : > { %v3076_v4 = vadd.f32 %v6436_v22, %v7038_v21  ;;  %v4974_v22 = vld [vmem:[%s5090_s22 + $0x10] sm:$0xff] }
 0x390   : > { %v4041_v58 = vadd.f32 %v6405_v28, %v4005_v44 }
 0x392   : > { %v4073_v11 = vmax.f32 %v4041_v58, 0.0  ;;  %v3599_v23 = vpop.f32.mrf.mxu1 }
 0x393   : > { %v3906_v62 = vpop.f32.mrf.mxu2  ;;  %v3661_v53 = vadd.f32 %v3599_v23, %v3383_v13 }
 0x394   : > { %v3970_v20 = vadd.f32 %v3906_v62, %v3660_v57  ;;  %4920 = vmatmul.msk.f32.gmra.mxu3 %vm708_vm1, %v4073_v11 }
 0x396   : > { %v4006_v39 = vmul.f32 %v6398_v18, %v3970_v20 }
 0x398   : > { %v4042_v8 = vadd.f32 %v6405_v28, %v4006_v39 }
 0x39a   : > { %v4074_v52 = vmax.f32 %v4042_v8, 0.0  ;;  %v3602_v3 = vpop.f32.mrf.mxu1 }
 0x39b   : > { %v3909_v59 = vpop.f32.mrf.mxu2  ;;  %v3662_v47 = vadd.f32 %v3602_v3, %v3384_v41 }
 0x39c   : > { %v3971_v32 = vadd.f32 %v3909_v59, %v3661_v53  ;;  %4921 = vmatmul.msk.f32.gmra.mxu3 %vm708_vm1, %v4074_v52  ;;  %v3386_v53 = vadd.f32 %v3330_v46, %v3076_v4  ;;  %v7039_v46 = vld [vmem:[#allocation4_spill] sm:$0xff] }
 0x39e   : > { %v4007_v56 = vmul.f32 %v6398_v18, %v3971_v32 }
 0x39f   : > { %v4207_v35 = vpop.f32.mrf.mxu3 }
 0x3a0   : > { %v4043_v38 = vadd.f32 %v6405_v28, %v4007_v56  ;;  %v4307_v37 = vmul.f32 %v6606_v1, %v4207_v35  ;;  %v3339_v35 = vpop.f32.mrf.mxu0 }
 0x3a2   : > { %v4075_v7 = vmax.f32 %v4043_v38, 0.0  ;;  %v4343_v63 = vadd.f32 %v6614_v42, %v4307_v37  ;;  %v3605_v55 = vpop.f32.mrf.mxu1  ;;  %v3077_v37 = vadd.f32 %v6452_v6, %v7039_v46 }
 0x3a3   : > { %v3912_v60 = vpop.f32.mrf.mxu2  ;;  %v3663_v58 = vadd.f32 %v3605_v55, %v3385_v33 }
 0x3a4   : > { %v4375_v34 = vadd.f32 %v4972_v2, %v4343_v63  ;;  %v3972_v0 = vadd.f32 %v3912_v60, %v3662_v47  ;;  %4922 = vmatmul.msk.f32.gmra.mxu3 %vm708_vm1, %v4075_v7  ;;  %v3387_v55 = vadd.f32 %v3333_v51, %v3077_v37  ;;  %v7040_v51 = vld [vmem:[#allocation28_spill] sm:$0xff] }
 0x3a5   : > { %v3078_v33 = vadd.f32 %v6465_v10, %v7040_v51  ;;  %v4976_v10 = vld [vmem:[%s5090_s22 + $0x20] sm:$0xff] }
 0x3a6   : > { %v4407_v43 = vmax.f32 %v4375_v34, 0.0  ;;  %v4008_v50 = vmul.f32 %v6398_v18, %v3972_v0 }
 0x3a7   : > { %v4210_v17 = vpop.f32.mrf.mxu3 }
 0x3a8   : > { %4439 = vst.msk [vmem:[%s6626_s29] sm:$0xff] %vm394_vm0, %v4407_v43  ;;  %v4044_v40 = vadd.f32 %v6405_v28, %v4008_v50  ;;  %v4308_v44 = vmul.f32 %v6606_v1, %v4210_v17  ;;  %v4975_v50 = vld [vmem:[%s5090_s22 + $0x18] sm:$0xff] }
 0x3aa   : > { %v4076_v57 = vmax.f32 %v4044_v40, 0.0  ;;  %v4344_v11 = vadd.f32 %v6614_v42, %v4308_v44  ;;  %v3608_v23 = vpop.f32.mrf.mxu1  ;;  %v3342_v40 = vpop.f32.mrf.mxu0 }
 0x3ab   : > { %v3915_v62 = vpop.f32.mrf.mxu2  ;;  %v3664_v59 = vadd.f32 %v3608_v23, %v3386_v53 }
 0x3ac   : > { %v4376_v20 = vadd.f32 %v4973_v29, %v4344_v11  ;;  %v3973_v49 = vadd.f32 %v3915_v62, %v3663_v58  ;;  %4923 = vmatmul.msk.f32.gmra.mxu3 %vm708_vm1, %v4076_v57  ;;  %v3388_v11 = vadd.f32 %v3336_v26, %v3078_v33  ;;  %v7041_v26 = vld [vmem:[#allocation31_spill] sm:$0xff] }
 0x3ae   : > { %v4408_v39 = vmax.f32 %v4376_v20, 0.0  ;;  %v4009_v13 = vmul.f32 %v6398_v18, %v3973_v49 }
 0x3af   : > { %v4213_v8 = vpop.f32.mrf.mxu3 }
 0x3b0   : > { %4440 = vst.msk [vmem:[%s6626_s29 + $0x8] sm:$0xff] %vm394_vm0, %v4408_v39  ;;  %v4045_v52 = vadd.f32 %v6405_v28, %v4009_v13  ;;  %v4309_v3 = vmul.f32 %v6606_v1, %v4213_v8  ;;  %v3079_v8 = vadd.f32 %v6479_v48, %v7041_v26  ;;  %v4977_v48 = vld [vmem:[%s5090_s22 + $0x28] sm:$0xff] }
 0x3b2   : > { %v4077_v32 = vmax.f32 %v4045_v52, 0.0  ;;  %v4345_v15 = vadd.f32 %v6614_v42, %v4309_v3  ;;  %v3611_v25 = vpop.f32.mrf.mxu1 }
 0x3b3   : > { %v3918_v56 = vpop.f32.mrf.mxu2  ;;  %v3665_v34 = vadd.f32 %v3611_v25, %v3387_v55 }
 0x3b4   : > { %v4377_v41 = vadd.f32 %v4974_v22, %v4345_v15  ;;  %v3974_v38 = vadd.f32 %v3918_v56, %v3664_v59  ;;  %4924 = vmatmul.msk.f32.gmra.mxu3 %vm708_vm1, %v4077_v32  ;;  %v3389_v59 = vadd.f32 %v3339_v35, %v3079_v8  ;;  %v3345_v32 = vpop.f32.mrf.mxu0  ;;  %v7042_v35 = vld [vmem:[#allocation34_spill] sm:$0xff]  ;;  %v7044_v8 = vld [vmem:[#allocation5_spill] sm:$0xff] }
 0x3b6   : > { %v4409_v47 = vmax.f32 %v4377_v41, 0.0  ;;  %v4010_v7 = vmul.f32 %v6398_v18, %v3974_v38 }
 0x3b7   : > { %v4216_v63 = vpop.f32.mrf.mxu3 }
 0x3b8   : > { %4441 = vst.msk [vmem:[%s6626_s29 + $0x10] sm:$0xff] %vm394_vm0, %v4409_v47  ;;  %v4046_v60 = vadd.f32 %v6405_v28, %v4010_v7  ;;  %v4310_v2 = vmul.f32 %v6606_v1, %v4216_v63  ;;  %v3080_v7 = vadd.f32 %v6498_v54, %v7042_v35  ;;  %v4978_v54 = vld [vmem:[%s5090_s22 + $0x30] sm:$0xff] }
 0x3ba   : > { %v4078_v0 = vmax.f32 %v4046_v60, 0.0  ;;  %v4346_v27 = vadd.f32 %v6614_v42, %v4310_v2  ;;  %v3614_v30 = vpop.f32.mrf.mxu1  ;;  %v3390_v2 = vadd.f32 %v3342_v40, %v3080_v7  ;;  %v7043_v40 = vld [vmem:[#allocation30_spill] sm:$0xff] }
 0x3bb   : > { %v3921_v43 = vpop.f32.mrf.mxu2  ;;  %v3666_v29 = vadd.f32 %v3614_v30, %v3388_v11 }
 0x3bc   : > { %v4378_v6 = vadd.f32 %v4975_v50, %v4346_v27  ;;  %v3975_v17 = vadd.f32 %v3921_v43, %v3665_v34  ;;  %4925 = vmatmul.msk.f32.gmra.mxu3 %vm708_vm1, %v4078_v0  ;;  %v3348_v27 = vpop.f32.mrf.mxu0 }
 0x3be   : > { %v4410_v44 = vmax.f32 %v4378_v6, 0.0  ;;  %v4011_v58 = vmul.f32 %v6398_v18, %v3975_v17 }
 0x3bf   : > { %v4219_v57 = vpop.f32.mrf.mxu3 }
 0x3c0   : > { %4442 = vst.msk [vmem:[%s6626_s29 + $0x18] sm:$0xff] %vm394_vm0, %v4410_v44  ;;  %v4047_v23 = vadd.f32 %v6405_v28, %v4011_v58  ;;  %v4311_v62 = vmul.f32 %v6606_v1, %v4219_v57  ;;  %v3081_v44 = vadd.f32 %v6515_v36, %v7043_v40 }
 0x3c2   : > { %v4079_v20 = vmax.f32 %v4047_v23, 0.0  ;;  %v4347_v49 = vadd.f32 %v6614_v42, %v4311_v62  ;;  %v3617_v21 = vpop.f32.mrf.mxu1  ;;  %v3391_v23 = vadd.f32 %v3345_v32, %v3081_v44 }
 0x3c3   : > { %v3924_v4 = vpop.f32.mrf.mxu2  ;;  %v3667_v56 = vadd.f32 %v3617_v21, %v3389_v59 }
 0x3c4   : > { %v4379_v39 = vadd.f32 %v4976_v10, %v4347_v49  ;;  %v3976_v13 = vadd.f32 %v3924_v4, %v3666_v29  ;;  %4926 = vmatmul.msk.f32.gmra.mxu3 %vm708_vm1, %v4079_v20  ;;  %v3351_v26 = vpop.f32.mrf.mxu0 }
 0x3c6   : > { %v4411_v53 = vmax.f32 %v4379_v39, 0.0  ;;  %v4012_v52 = vmul.f32 %v6398_v18, %v3976_v13  ;;  %v4979_v39 = vld [vmem:[%s5090_s22 + $0x38] sm:$0xff] }
 0x3c7   : > { %v4222_v3 = vpop.f32.mrf.mxu3 }
 0x3c8   : > { %4443 = vst.msk [vmem:[%s6626_s29 + $0x20] sm:$0xff] %vm394_vm0, %v4411_v53  ;;  %v4048_v15 = vadd.f32 %v6405_v28, %v4012_v52  ;;  %v4312_v25 = vmul.f32 %v6606_v1, %v4222_v3  ;;  %v3082_v53 = vadd.f32 %v6529_v12, %v7044_v8 }
 0x3ca   : > { %v4080_v22 = vmax.f32 %v4048_v15, 0.0  ;;  %v4348_v41 = vadd.f32 %v6614_v42, %v4312_v25  ;;  %v3620_v38 = vpop.f32.mrf.mxu1  ;;  %v3392_v32 = vadd.f32 %v3348_v27, %v3082_v53 }
 0x3cb   : > { %v3927_v46 = vpop.f32.mrf.mxu2  ;;  %v3668_v30 = vadd.f32 %v3620_v38, %v3390_v2 }
 0x3cc   : > { %v4380_v37 = vadd.f32 %v4977_v48, %v4348_v41  ;;  %v3977_v47 = vadd.f32 %v3927_v46, %v3667_v56  ;;  %4927 = vmatmul.msk.f32.gmra.mxu3 %vm708_vm1, %v4080_v22  ;;  %v4980_v48 = vld [vmem:[%s5090_s22 + $0x40] sm:$0xff] }
 0x3ce   : > { %v4412_v63 = vmax.f32 %v4380_v37, 0.0  ;;  %v4013_v55 = vmul.f32 %v6398_v18, %v3977_v47  ;;  %v7045_v47 = vld [vmem:[#allocation36_spill] sm:$0xff] }
 0x3cf   : > { %v4225_v60 = vpop.f32.mrf.mxu3  ;;  %v3083_v35 = vadd.f32 %v6546_v19, %v7045_v47  ;;  %v4981_v19 = vld [vmem:[%s5090_s22 + $0x48] sm:$0xff] }
 0x3d0   : > { %4444 = vst.msk [vmem:[%s6626_s29 + $0x28] sm:$0xff] %vm394_vm0, %v4412_v63  ;;  %v4049_v34 = vadd.f32 %v6405_v28, %v4013_v55  ;;  %v4313_v0 = vmul.f32 %v6606_v1, %v4225_v60  ;;  %v3354_v55 = vpop.f32.mrf.mxu0 }
 0x3d1   : > { %v3393_v2 = vadd.f32 %v3351_v26, %v3083_v35 }
 0x3d2   : > { %v4081_v43 = vmax.f32 %v4049_v34, 0.0  ;;  %v4349_v50 = vadd.f32 %v6614_v42, %v4313_v0  ;;  %v3623_v6 = vpop.f32.mrf.mxu1 }
 0x3d3   : > { %v3930_v17 = vpop.f32.mrf.mxu2  ;;  %v3669_v20 = vadd.f32 %v3623_v6, %v3391_v23 }
 0x3d4   : > { %v4381_v51 = vadd.f32 %v4978_v54, %v4349_v50  ;;  %v3978_v33 = vadd.f32 %v3930_v17, %v3668_v30  ;;  %4928 = vmatmul.msk.f32.gmra.mxu3 %vm708_vm1, %v4081_v43 }
 0x3d6   : > { %v4413_v58 = vmax.f32 %v4381_v51, 0.0  ;;  %v4014_v57 = vmul.f32 %v6398_v18, %v3978_v33  ;;  %v3084_v51 = vadd.f32 %v6564_v5, %v6360_v14  ;;  %v4982_v14 = vld [vmem:[%s5090_s22 + $0x50] sm:$0xff] }
 0x3d7   : > { %v4228_v11 = vpop.f32.mrf.mxu3 }
 0x3d8   : > { %4445 = vst.msk [vmem:[%s6626_s29 + $0x30] sm:$0xff] %vm394_vm0, %v4413_v58  ;;  %v4050_v62 = vadd.f32 %v6405_v28, %v4014_v57  ;;  %v4314_v29 = vmul.f32 %v6606_v1, %v4228_v11  ;;  %v3394_v58 = vadd.f32 %v3354_v55, %v3084_v51  ;;  %v3357_v23 = vpop.f32.mrf.mxu0  ;;  %v4984_v55 = vld [vmem:[%s5090_s22 + $0x60] sm:$0xff] }
 0x3da   : > { %v4082_v49 = vmax.f32 %v4050_v62, 0.0  ;;  %v4350_v21 = vadd.f32 %v6614_v42, %v4314_v29  ;;  %v3626_v4 = vpop.f32.mrf.mxu1 }
 0x3db   : > { %v3933_v10 = vpop.f32.mrf.mxu2  ;;  %v3670_v56 = vadd.f32 %v3626_v4, %v3392_v32 }
 0x3dc   : > { %v4382_v36 = vadd.f32 %v4979_v39, %v4350_v21  ;;  %v3979_v13 = vadd.f32 %v3933_v10, %v3669_v20  ;;  %4929 = vmatmul.msk.f32.gmra.mxu3 %vm708_vm1, %v4082_v49  ;;  %v3085_v10 = vadd.f32 %v6576_v9, %v6369_v31 }
 0x3de   : > { %v4414_v52 = vmax.f32 %v4382_v36, 0.0  ;;  %v4015_v3 = vmul.f32 %v6398_v18, %v3979_v13  ;;  %v3395_v26 = vadd.f32 %v3357_v23, %v3085_v10 }
 0x3df   : > { %v4231_v59 = vpop.f32.mrf.mxu3 }
 0x3e0   : > { %4446 = vst.msk [vmem:[%s6626_s29 + $0x38] sm:$0xff] %vm394_vm0, %v4414_v52  ;;  %v4051_v15 = vadd.f32 %v6405_v28, %v4015_v3  ;;  %v4315_v25 = vmul.f32 %v6606_v1, %v4231_v59  ;;  %v3360_v32 = vpop.f32.mrf.mxu0 }
 0x3e2   : > { %v4083_v22 = vmax.f32 %v4051_v15, 0.0  ;;  %v4351_v41 = vadd.f32 %v6614_v42, %v4315_v25  ;;  %v3629_v38 = vpop.f32.mrf.mxu1  ;;  %v4983_v25 = vld [vmem:[%s5090_s22 + $0x58] sm:$0xff] }
 0x3e3   : > { %v3936_v46 = vpop.f32.mrf.mxu2  ;;  %v3671_v27 = vadd.f32 %v3629_v38, %v3393_v2  ;;  %v3087_v2 = vadd.f32 %v6599_v45, %v6387_v61  ;;  %v4985_v61 = vld [vmem:[%s5090_s22 + $0x68] sm:$0xff] }
 0x3e4   : > { %v4383_v12 = vadd.f32 %v4980_v48, %v4351_v41  ;;  %v3980_v37 = vadd.f32 %v3936_v46, %v3670_v56  ;;  %4930 = vmatmul.msk.f32.gmra.mxu3 %vm708_vm1, %v4083_v22  ;;  %v3086_v22 = vadd.f32 %v6588_v24, %v6378_v16 }
 0x3e6   : > { %v4415_v7 = vmax.f32 %v4383_v12, 0.0  ;;  %v4016_v63 = vmul.f32 %v6398_v18, %v3980_v37  ;;  %v3396_v48 = vadd.f32 %v3360_v32, %v3086_v22 }
 0x3e7   : > { %v4234_v60 = vpop.f32.mrf.mxu3 }
 0x3e8   : > { %4447 = vst.msk [vmem:[%s6626_s29 + $0x40] sm:$0xff] %vm394_vm0, %v4415_v7  ;;  %v4052_v34 = vadd.f32 %v6405_v28, %v4016_v63  ;;  %v4316_v0 = vmul.f32 %v6606_v1, %v4234_v60  ;;  %v3363_v24 = vpop.f32.mrf.mxu0 }
 0x3ea   : > { %v4084_v30 = vmax.f32 %v4052_v34, 0.0  ;;  %v4352_v43 = vadd.f32 %v6614_v42, %v4316_v0  ;;  %v3632_v50 = vpop.f32.mrf.mxu1 }
 0x3eb   : > { %v3939_v6 = vpop.f32.mrf.mxu2  ;;  %v3672_v62 = vadd.f32 %v3632_v50, %v3394_v58 }
 0x3ec   : > { %v4384_v17 = vadd.f32 %v4981_v19, %v4352_v43  ;;  %v3981_v54 = vadd.f32 %v3939_v6, %v3671_v27  ;;  %4931 = vmatmul.msk.f32.gmra.mxu3 %vm708_vm1, %v4084_v30  ;;  %v3397_v43 = vadd.f32 %v3363_v24, %v3087_v2 }
 0x3ee   : > { %v4416_v33 = vmax.f32 %v4384_v17, 0.0  ;;  %v4017_v40 = vmul.f32 %v6398_v18, %v3981_v54 }
 0x3ef   : > { %v4237_v44 = vpop.f32.mrf.mxu3 }
 0x3f0   : > { %4448 = vst.msk [vmem:[%s6626_s29 + $0x48] sm:$0xff] %vm394_vm0, %v4416_v33  ;;  %v4053_v57 = vadd.f32 %v6405_v28, %v4017_v40  ;;  %v4317_v11 = vmul.f32 %v6606_v1, %v4237_v44 }
 0x3f2   : > { %v4085_v29 = vmax.f32 %v4053_v57, 0.0  ;;  %v4353_v20 = vadd.f32 %v6614_v42, %v4317_v11  ;;  %v3635_v49 = vpop.f32.mrf.mxu1 }
 0x3f3   : > { %v3942_v21 = vpop.f32.mrf.mxu2  ;;  %v3673_v52 = vadd.f32 %v3635_v49, %v3395_v26 }
 0x3f4   : > { %v4385_v5 = vadd.f32 %v4982_v14, %v4353_v20  ;;  %v3982_v4 = vadd.f32 %v3942_v21, %v3672_v62  ;;  %4932 = vmatmul.msk.f32.gmra.mxu3 %vm708_vm1, %v4085_v29  ;;  %v4986_v29 = vld [vmem:[%s5090_s22 + $0x70] sm:$0xff]  ;;  %v4987_v14 = vld [vmem:[%s5090_s22 + $0x78] sm:$0xff] }
 0x3f6   : > { %v4417_v39 = vmax.f32 %v4385_v5, 0.0  ;;  %v4018_v36 = vmul.f32 %v6398_v18, %v3982_v4 }
 0x3f7   : > { %v4240_v13 = vpop.f32.mrf.mxu3 }
 0x3f8   : > { %4449 = vst.msk [vmem:[%s6626_s29 + $0x50] sm:$0xff] %vm394_vm0, %v4417_v39  ;;  %v4054_v8 = vadd.f32 %v6405_v28, %v4018_v36  ;;  %v4318_v53 = vmul.f32 %v6606_v1, %v4240_v13  ;;  %v4988_v13 = vld [vmem:[%s5090_s22 + $0x80] sm:$0xff] }
 0x3fa   : > { %v4086_v3 = vmax.f32 %v4054_v8, 0.0  ;;  %v4354_v59 = vadd.f32 %v6614_v42, %v4318_v53  ;;  %v3638_v56 = vpop.f32.mrf.mxu1 }
 0x3fb   : > { %v3945_v15 = vpop.f32.mrf.mxu2  ;;  %v3674_v47 = vadd.f32 %v3638_v56, %v3396_v48  ;;  %v4990_v56 = vld [vmem:[%s5090_s22 + $0x90] sm:$0xff] }
 0x3fc   : > { %v4386_v31 = vadd.f32 %v4983_v25, %v4354_v59  ;;  %v3983_v9 = vadd.f32 %v3945_v15, %v3673_v52  ;;  %4933 = vmatmul.msk.f32.gmra.mxu3 %vm708_vm1, %v4086_v3  ;;  %v4989_v59 = vld [vmem:[%s5090_s22 + $0x88] sm:$0xff] }
 0x3fe   : > { %v4418_v41 = vmax.f32 %v4386_v31, 0.0  ;;  %v4019_v38 = vmul.f32 %v6398_v18, %v3983_v9 }
 0x3ff   : > { %v4243_v46 = vpop.f32.mrf.mxu3 }
 0x400   : > { %4450 = vst.msk [vmem:[%s6626_s29 + $0x58] sm:$0xff] %vm394_vm0, %v4418_v41  ;;  %v4055_v12 = vadd.f32 %v6405_v28, %v4019_v38  ;;  %v4319_v37 = vmul.f32 %v6606_v1, %v4243_v46 }
 0x402   : > { %v4087_v35 = vmax.f32 %v4055_v12, 0.0  ;;  %v4355_v7 = vadd.f32 %v6614_v42, %v4319_v37  ;;  %v3641_v27 = vpop.f32.mrf.mxu1  ;;  %v4991_v12 = vld [vmem:[%s5090_s22 + $0x98] sm:$0xff] }
 0x403   : > { %v3948_v63 = vpop.f32.mrf.mxu2  ;;  %v3675_v19 = vadd.f32 %v3641_v27, %v3397_v43 }
 0x404   : > { %v4387_v60 = vadd.f32 %v4984_v55, %v4355_v7  ;;  %v3984_v16 = vadd.f32 %v3948_v63, %v3674_v47  ;;  %4934 = vmatmul.msk.f32.gmra.mxu3 %vm708_vm1, %v4087_v35  ;;  %v4992_v55 = vld [vmem:[%s5090_s22 + $0xa0] sm:$0xff] }
 0x406   : > { %v4419_v34 = vmax.f32 %v4387_v60, 0.0  ;;  %v4020_v0 = vmul.f32 %v6398_v18, %v3984_v16 }
 0x407   : > { %v4246_v30 = vpop.f32.mrf.mxu3 }
 0x408   : > { %4451 = vst.msk [vmem:[%s6626_s29 + $0x60] sm:$0xff] %vm394_vm0, %v4419_v34  ;;  %v4056_v50 = vadd.f32 %v6405_v28, %v4020_v0  ;;  %v4320_v6 = vmul.f32 %v6606_v1, %v4246_v30  ;;  %v4993_v0 = vld [vmem:[%s5090_s22 + $0xa8] sm:$0xff] }
 0x40a   : > { %v4088_v17 = vmax.f32 %v4056_v50, 0.0  ;;  %v4356_v54 = vadd.f32 %v6614_v42, %v4320_v6 }
 0x40b   : > { %v3951_v51 = vpop.f32.mrf.mxu2 }
 0x40c   : > { %v4388_v45 = vadd.f32 %v4985_v61, %v4356_v54  ;;  %v3985_v33 = vadd.f32 %v3951_v51, %v3675_v19  ;;  %4935 = vmatmul.msk.f32.gmra.mxu3 %vm708_vm1, %v4088_v17  ;;  %v4994_v19 = vld [vmem:[%s5090_s22 + $0xb0] sm:$0xff] }
 0x40e   : > { %v4420_v40 = vmax.f32 %v4388_v45, 0.0  ;;  %v4021_v44 = vmul.f32 %v6398_v18, %v3985_v33  ;;  %v4995_v33 = vld [vmem:[%s5090_s22 + $0xb8] sm:$0xff] }
 0x40f   : > { %v4249_v58 = vpop.f32.mrf.mxu3 }
 0x410   : > { %4452 = vst.msk [vmem:[%s6626_s29 + $0x68] sm:$0xff] %vm394_vm0, %v4420_v40  ;;  %v4057_v57 = vadd.f32 %v6405_v28, %v4021_v44  ;;  %v4321_v11 = vmul.f32 %v6606_v1, %v4249_v58 }
 0x412   : > { %v4089_v23 = vmax.f32 %v4057_v57, 0.0  ;;  %v4357_v62 = vadd.f32 %v6614_v42, %v4321_v11 }
 0x414   : > { %v4389_v20 = vadd.f32 %v4986_v29, %v4357_v62  ;;  %4936 = vmatmul.msk.f32.gmra.mxu3 %vm708_vm1, %v4089_v23  ;;  %v4996_v23 = vld [vmem:[%s5090_s22 + $0xc0] sm:$0xff] }
 0x416   : > { %v4421_v49 = vmax.f32 %v4389_v20, 0.0 }
 0x417   : > { %v4252_v21 = vpop.f32.mrf.mxu3 }
 0x418   : > { %4453 = vst.msk [vmem:[%s6626_s29 + $0x70] sm:$0xff] %vm394_vm0, %v4421_v49  ;;  %v4322_v18 = vmul.f32 %v6606_v1, %v4252_v21 }
 0x41a   : > { %v4358_v28 = vadd.f32 %v6614_v42, %v4322_v18  ;;  %v4997_v18 = vld [vmem:[%s5090_s22 + $0xc8] sm:$0xff] }
 0x41c   : > { %v4390_v5 = vadd.f32 %v4987_v14, %v4358_v28 }
 0x41e   : > { %v4422_v4 = vmax.f32 %v4390_v5, 0.0 }
 0x41f   : > { %v4255_v10 = vpop.f32.mrf.mxu3 }
 0x420   : > { %4454 = vst.msk [vmem:[%s6626_s29 + $0x78] sm:$0xff] %vm394_vm0, %v4422_v4  ;;  %v4323_v39 = vmul.f32 %v6606_v1, %v4255_v10 }
 0x422   : > { %v4359_v36 = vadd.f32 %v6614_v42, %v4323_v39  ;;  %v4998_v39 = vld [vmem:[%s5090_s22 + $0xd0] sm:$0xff] }
 0x424   : > { %v4391_v26 = vadd.f32 %v4988_v13, %v4359_v36 }
 0x426   : > { %v4423_v8 = vmax.f32 %v4391_v26, 0.0 }
 0x427   : > { %v4258_v53 = vpop.f32.mrf.mxu3 }
 0x428   : > { %4455 = vst.msk [vmem:[%s6626_s29 + $0x80] sm:$0xff] %vm394_vm0, %v4423_v8  ;;  %v4324_v52 = vmul.f32 %v6606_v1, %v4258_v53 }
 0x42a   : > { %v4360_v3 = vadd.f32 %v6614_v42, %v4324_v52  ;;  %v4999_v52 = vld [vmem:[%s5090_s22 + $0xd8] sm:$0xff] }
 0x42c   : > { %v4392_v32 = vadd.f32 %v4989_v59, %v4360_v3 }
 0x42e   : > { %v4424_v15 = vmax.f32 %v4392_v32, 0.0 }
 0x42f   : > { %v4261_v25 = vpop.f32.mrf.mxu3 }
 0x430   : > { %4456 = vst.msk [vmem:[%s6626_s29 + $0x88] sm:$0xff] %vm394_vm0, %v4424_v15  ;;  %v4325_v31 = vmul.f32 %v6606_v1, %v4261_v25 }
 0x432   : > { %v4361_v9 = vadd.f32 %v6614_v42, %v4325_v31  ;;  %v5000_v31 = vld [vmem:[%s5090_s22 + $0xe0] sm:$0xff] }
 0x434   : > { %v4393_v22 = vadd.f32 %v4990_v56, %v4361_v9 }
 0x436   : > { %v4425_v41 = vmax.f32 %v4393_v22, 0.0 }
 0x437   : > { %v4264_v38 = vpop.f32.mrf.mxu3 }
 0x438   : > { %4457 = vst.msk [vmem:[%s6626_s29 + $0x90] sm:$0xff] %vm394_vm0, %v4425_v41  ;;  %v4326_v46 = vmul.f32 %v6606_v1, %v4264_v38 }
 0x43a   : > { %v4362_v48 = vadd.f32 %v6614_v42, %v4326_v46  ;;  %v5001_v46 = vld [vmem:[%s5090_s22 + $0xe8] sm:$0xff] }
 0x43c   : > { %v4394_v37 = vadd.f32 %v4991_v12, %v4362_v48 }
 0x43e   : > { %v4426_v47 = vmax.f32 %v4394_v37, 0.0 }
 0x43f   : > { %v4267_v35 = vpop.f32.mrf.mxu3 }
 0x440   : > { %4458 = vst.msk [vmem:[%s6626_s29 + $0x98] sm:$0xff] %vm394_vm0, %v4426_v47  ;;  %v4327_v7 = vmul.f32 %v6606_v1, %v4267_v35 }
 0x442   : > { %v4363_v63 = vadd.f32 %v6614_v42, %v4327_v7  ;;  %v5002_v7 = vld [vmem:[%s5090_s22 + $0xf0] sm:$0xff] }
 0x444   : > { %v4395_v60 = vadd.f32 %v4992_v55, %v4363_v63 }
 0x446   : > { %v4427_v16 = vmax.f32 %v4395_v60, 0.0 }
 0x447   : > { %v4270_v24 = vpop.f32.mrf.mxu3 }
 0x448   : > { %4459 = vst.msk [vmem:[%s6626_s29 + $0xa0] sm:$0xff] %vm394_vm0, %v4427_v16  ;;  %v4328_v2 = vmul.f32 %v6606_v1, %v4270_v24 }
 0x44a   : > { %v4364_v34 = vadd.f32 %v6614_v42, %v4328_v2  ;;  %v5003_v2 = vld [vmem:[%s5090_s22 + $0xf8] sm:$0xff] }
 0x44c   : > { %v4396_v27 = vadd.f32 %v4993_v0, %v4364_v34 }
 0x44e   : > { %v4428_v30 = vmax.f32 %v4396_v27, 0.0 }
 0x44f   : > { %v4273_v43 = vpop.f32.mrf.mxu3 }
 0x450   : > { %4460 = vst.msk [vmem:[%s6626_s29 + $0xa8] sm:$0xff] %vm394_vm0, %v4428_v30  ;;  %v4329_v50 = vmul.f32 %v6606_v1, %v4273_v43 }
 0x452   : > { %v4365_v6 = vadd.f32 %v6614_v42, %v4329_v50 }
 0x454   : > { %v4397_v17 = vadd.f32 %v4994_v19, %v4365_v6 }
 0x456   : > { %v4429_v54 = vmax.f32 %v4397_v17, 0.0 }
 0x457   : > { %v4276_v51 = vpop.f32.mrf.mxu3 }
 0x458   : > { %4461 = vst.msk [vmem:[%s6626_s29 + $0xb0] sm:$0xff] %vm394_vm0, %v4429_v54  ;;  %v4330_v61 = vmul.f32 %v6606_v1, %v4276_v51 }
 0x45a   : > { %v4366_v45 = vadd.f32 %v6614_v42, %v4330_v61 }
 0x45c   : > { %v4398_v40 = vadd.f32 %v4995_v33, %v4366_v45 }
 0x45e   : > { %v4430_v44 = vmax.f32 %v4398_v40, 0.0 }
 0x45f   : > { %v4279_v58 = vpop.f32.mrf.mxu3 }
 0x460   : > { %4462 = vst.msk [vmem:[%s6626_s29 + $0xb8] sm:$0xff] %vm394_vm0, %v4430_v44  ;;  %v4331_v57 = vmul.f32 %v6606_v1, %v4279_v58 }
 0x462   : > { %v4367_v11 = vadd.f32 %v6614_v42, %v4331_v57 }
 0x464   : > { %v4399_v62 = vadd.f32 %v4996_v23, %v4367_v11 }
 0x466   : > { %v4431_v29 = vmax.f32 %v4399_v62, 0.0 }
 0x467   : > { %v4282_v20 = vpop.f32.mrf.mxu3 }
 0x468   : > { %4463 = vst.msk [vmem:[%s6626_s29 + $0xc0] sm:$0xff] %vm394_vm0, %v4431_v29  ;;  %v4332_v49 = vmul.f32 %v6606_v1, %v4282_v20 }
 0x46a   : > { %v4368_v21 = vadd.f32 %v6614_v42, %v4332_v49 }
 0x46c   : > { %v4400_v28 = vadd.f32 %v4997_v18, %v4368_v21 }
 0x46e   : > { %v4432_v14 = vmax.f32 %v4400_v28, 0.0 }
 0x46f   : > { %v4285_v5 = vpop.f32.mrf.mxu3 }
 0x470   : > { %4464 = vst.msk [vmem:[%s6626_s29 + $0xc8] sm:$0xff] %vm394_vm0, %v4432_v14  ;;  %v4333_v4 = vmul.f32 %v6606_v1, %v4285_v5 }
 0x472   : > { %v4369_v10 = vadd.f32 %v6614_v42, %v4333_v4 }
 0x474   : > { %v4401_v36 = vadd.f32 %v4998_v39, %v4369_v10 }
 0x476   : > { %v4433_v13 = vmax.f32 %v4401_v36, 0.0 }
 0x477   : > { %v4288_v26 = vpop.f32.mrf.mxu3 }
 0x478   : > { %4465 = vst.msk [vmem:[%s6626_s29 + $0xd0] sm:$0xff] %vm394_vm0, %v4433_v13  ;;  %v4334_v8 = vmul.f32 %v6606_v1, %v4288_v26 }
 0x47a   : > { %v4370_v53 = vadd.f32 %v6614_v42, %v4334_v8 }
 0x47c   : > { %v4402_v3 = vadd.f32 %v4999_v52, %v4370_v53 }
 0x47e   : > { %v4434_v59 = vmax.f32 %v4402_v3, 0.0 }
 0x47f   : > { %v4291_v32 = vpop.f32.mrf.mxu3 }
 0x480   : > { %4466 = vst.msk [vmem:[%s6626_s29 + $0xd8] sm:$0xff] %vm394_vm0, %v4434_v59  ;;  %v4335_v15 = vmul.f32 %v6606_v1, %v4291_v32 }
 0x482   : > { %v4371_v25 = vadd.f32 %v6614_v42, %v4335_v15 }
 0x484   : > { %v4403_v9 = vadd.f32 %v5000_v31, %v4371_v25 }
 0x486   : > { %v4435_v56 = vmax.f32 %v4403_v9, 0.0 }
 0x487   : > { %v4294_v22 = vpop.f32.mrf.mxu3 }
 0x488   : > { %4467 = vst.msk [vmem:[%s6626_s29 + $0xe0] sm:$0xff] %vm394_vm0, %v4435_v56  ;;  %v4336_v41 = vmul.f32 %v6606_v1, %v4294_v22 }
 0x48a   : > { %v4372_v38 = vadd.f32 %v6614_v42, %v4336_v41 }
 0x48c   : > { %v4404_v48 = vadd.f32 %v5001_v46, %v4372_v38 }
 0x48e   : > { %v4436_v12 = vmax.f32 %v4404_v48, 0.0 }
 0x48f   : > { %v4297_v37 = vpop.f32.mrf.mxu3 }
 0x490   : > { %4468 = vst.msk [vmem:[%s6626_s29 + $0xe8] sm:$0xff] %vm394_vm0, %v4436_v12  ;;  %v4337_v47 = vmul.f32 %v6606_v1, %v4297_v37 }
 0x492   : > { %v4373_v35 = vadd.f32 %v6614_v42, %v4337_v47 }
 0x494   : > { %v4405_v63 = vadd.f32 %v5002_v7, %v4373_v35 }
 0x496   : > { %v4437_v55 = vmax.f32 %v4405_v63, 0.0 }
 0x497   : > { %v4300_v60 = vpop.f32.mrf.mxu3 }
 0x498   : > { %4469 = vst.msk [vmem:[%s6626_s29 + $0xf0] sm:$0xff] %vm394_vm0, %v4437_v55  ;;  %v4338_v16 = vmul.f32 %v6606_v1, %v4300_v60 }
 0x49a   : > { %v4374_v24 = vadd.f32 %v6614_v42, %v4338_v16 }
 0x49c   : > { %v4406_v34 = vadd.f32 %v5003_v2, %v4374_v24 }
 0x49e   : > { %v4438_v0 = vmax.f32 %v4406_v34, 0.0 }
 0x4a0   : > { %4470 = vst.msk [vmem:[%s6626_s29 + $0xf8] sm:$0xff] %vm394_vm0, %v4438_v0 }
 0x4a1 PF: > { %s20_s13 = sadd.s32 1, %s5010_s13  }
 0x4a2   : > { %p17_p4 = scmp.ge.s32.totalorder %s20_s13, 4  }
 0x4a4   :  { %19 = sbr.rel (!%p17_p4) target bundleno = 1 (0x1), region = 98 }

</bundles_post_ra>
